<compile_context>
chip_gen: v6e
topology: v6e:2x2x1
jax: 0.10.0
libtpu: 0.0.40
codegen_flags: <defaults>
</compile_context>

<pallas_src>
import numpy as np
import jax
import jax.numpy as jnp
from jax import lax
from jax.experimental import pallas as pl
from jax.experimental.pallas import tpu as pltpu

HIGH = lax.Precision.HIGHEST

# TODO(synk): FCNEncoder is not provided in the reference; synthetic multi-scale
# encoder features are used as inputs to the RelationModule chain.


# --------------------------------------------------------------------------
# Pallas kernel: one RelationModule, full batch in a single grid step.
# --------------------------------------------------------------------------
def make_relation_kernel(batch, has_y):
    def kernel(x_ref, wcu_ref, bcu_ref, wcv_ref, bcv_ref,
               wsxup_ref, wszup_ref, biasup_ref, *rest):
        if has_y:
            yaddup_ref, out_ref = rest
        else:
            (out_ref,) = rest
        f32, bf16 = jnp.float32, jnp.bfloat16

        wcu = wcu_ref[...]          # (C, C)  bf16  (= Wcu^T)
        wcv = wcv_ref[...]          # (C, C)  bf16  (= Wcv^T)
        bcu = bcu_ref[...]          # (1, C)  f32
        bcv = bcv_ref[...]          # (1, C)  f32
        wsxup = wsxup_ref[...]      # (C,  KP) bf16 (= Wscore_x^T @ Wup, lane-dense)
        wszup = wszup_ref[...]      # (HW, KP) bf16 (= Wscore_z^T @ Wup, lane-dense)
        bias = biasup_ref[...]      # (1,  KP) f32  (= b_score @ Wup)

        for b in range(batch):      # batch is tiny & static -> unrolled
            x = x_ref[b]            # (HW, C) f32
            hw = x.shape[0]

            # --- channel attention from global-average-pooled features ------
            cpool = (jnp.sum(x, axis=0, keepdims=True) * (1.0 / hw)).astype(bf16)
            u = jnp.dot(cpool, wcu, preferred_element_type=f32) + bcu   # (1, C)
            v = jnp.dot(cpool, wcv, preferred_element_type=f32) + bcv   # (1, C)
            # cc[i, j] = u_i * v_j ; softmax over i (torch dim=1)
            cc = lax.dot_general(u.astype(bf16), v.astype(bf16),
                                 (((0,), (0,)), ((), ())),
                                 preferred_element_type=f32)            # (C, C)
            m = jnp.max(cc, axis=0, keepdims=True)
            e = jnp.exp(cc - m)
            att = (e / jnp.sum(e, axis=0, keepdims=True)).astype(bf16)  # (C, C)

            # x2[p, i] = sum_j att[i, j] * x[p, j]   (torch: bmm(att, z))
            x2 = lax.dot_general(x.astype(bf16), att, (((1,), (1,)), ((), ())),
                                 preferred_element_type=f32)            # (HW, C)
            x2b = x2.astype(bf16)

            # second use of channel_u / channel_v on the re-weighted features
            u2 = (jnp.dot(x2b, wcu, preferred_element_type=f32) + bcu).astype(bf16)
            v2 = (jnp.dot(x2b, wcv, preferred_element_type=f32) + bcv).astype(bf16)

            # spatial-relation branch, reassociated (no (HW,HW) z-map) and
            # pre-folded through the ConvTranspose weights:
            #   (v2 @ (u2^T @ Wsz)) @ Wup == v2 @ (u2^T @ (Wsz @ Wup))
            # NOTE: u2^T absorbs the transpose between the reference z2 and the
            # "zmap" of the naive formulation; keep the contraction dims as-is.
            t_up = lax.dot_general(u2, wszup, (((0,), (0,)), ((), ())),
                                   preferred_element_type=f32)          # (C, KP)

            contrib = (jnp.dot(x2b, wsxup, preferred_element_type=f32)
                       + jnp.dot(v2, t_up.astype(bf16), preferred_element_type=f32)
                       + bias)                                          # (HW, KP)
            if has_y:
                # cropped coarser-scale logits already folded through Wup
                contrib = contrib + yaddup_ref[b]
            out_ref[b] = contrib
    return kernel


# --------------------------------------------------------------------------
# Wrapper: one RelationModule forward (NCHW in, NHWC out).
# --------------------------------------------------------------------------
def relation_module(x_nchw, y_prev_nhwc, p, f):
    B, C, H, W = x_nchw.shape
    HW = H * W
    ncls = p["wsc"].shape[0]
    K = 2 * f
    kc = K * K * ncls                       # real contribution columns
    kkp = ((kc + 127) // 128) * 128         # pad to lane-dense multiple of 128

    x_flat = jnp.transpose(x_nchw, (0, 2, 3, 1)).reshape(B, HW, C)

    # ---- weight preparation (plain JAX, f32/HIGHEST; all tiny) -------------
    wcu_t = p["wcu"].T.astype(jnp.bfloat16)                  # (C, C)
    wcv_t = p["wcv"].T.astype(jnp.bfloat16)
    wsx = p["wsc"][:, :C].T                                  # (C, ncls)
    wsz = p["wsc"][:, C:].T                                  # (HW, ncls)
    # ConvTranspose2d weight (Cin=ncls, Cout=ncls, K, K) rearranged with
    # quadrant-major columns (dy, dx, ry, rx, co) where ky = dy*f+ry, kx = dx*f+rx,
    # then zero-padded to kkp lane-dense columns.
    wup_q = jnp.transpose(p["wup"].reshape(ncls, ncls, 2, f, 2, f),
                          (0, 2, 4, 3, 5, 1)).reshape(ncls, kc)
    if kkp != kc:
        wup_q = jnp.pad(wup_q, ((0, 0), (0, kkp - kc)))
    wsxup = jnp.dot(wsx, wup_q, precision=HIGH)                          # (C, kkp)
    wszup = jnp.dot(wsz, wup_q, precision=HIGH)                          # (HW, kkp)
    biasup = jnp.dot(p["bsc"].reshape(1, ncls), wup_q, precision=HIGH)   # (1, kkp)

    has_y = y_prev_nhwc is not None
    operands = [x_flat,
                wcu_t, p["bcu"].reshape(1, C),
                wcv_t, p["bcv"].reshape(1, C),
                wsxup.astype(jnp.bfloat16), wszup.astype(jnp.bfloat16), biasup]
    in_specs = [
        pl.BlockSpec((B, HW, C), lambda i: (0, 0, 0)),
        pl.BlockSpec((C, C), lambda i: (0, 0)),
        pl.BlockSpec((1, C), lambda i: (0, 0)),
        pl.BlockSpec((C, C), lambda i: (0, 0)),
        pl.BlockSpec((1, C), lambda i: (0, 0)),
        pl.BlockSpec((C, kkp), lambda i: (0, 0)),
        pl.BlockSpec((HW, kkp), lambda i: (0, 0)),
        pl.BlockSpec((1, kkp), lambda i: (0, 0)),
    ]
    if has_y:
        # Fold the cropped coarser-scale logits through the upsample weights in
        # the wrapper so the kernel never touches 4-lane-wide tensors.
        y_add = y_prev_nhwc[:, 1:-1, 1:-1, :].reshape(B, HW, ncls)
        yaddup = jnp.einsum("bpn,nk->bpk", y_add, wup_q, precision=HIGH)
        operands.append(yaddup)
        in_specs.append(pl.BlockSpec((B, HW, kkp), lambda i: (0, 0, 0)))

    contrib = pl.pallas_call(
        make_relation_kernel(B, has_y),
        out_shape=jax.ShapeDtypeStruct((B, HW, kkp), jnp.float32),
        grid=(1,),                          # whole batch in one step
        in_specs=in_specs,
        out_specs=pl.BlockSpec((B, HW, kkp), lambda i: (0, 0, 0)),
        compiler_params=pltpu.CompilerParams(dimension_semantics=("arbitrary",)),
    )(*operands)

    # ---- ConvTranspose2d assembly: quadrant pads + adds (data movement) ----
    c6 = contrib[..., :kc].reshape(B, H, W, 2, 2, f, f, ncls)
    out5 = (jnp.pad(c6[:, :, :, 0, 0], ((0, 0), (0, 1), (0, 1), (0, 0), (0, 0), (0, 0)))
            + jnp.pad(c6[:, :, :, 0, 1], ((0, 0), (0, 1), (1, 0), (0, 0), (0, 0), (0, 0)))
            + jnp.pad(c6[:, :, :, 1, 0], ((0, 0), (1, 0), (0, 1), (0, 0), (0, 0), (0, 0)))
            + jnp.pad(c6[:, :, :, 1, 1], ((0, 0), (1, 0), (1, 0), (0, 0), (0, 0), (0, 0))))
    out = jnp.transpose(out5, (0, 1, 3, 2, 4, 5)).reshape(
        B, (H + 1) * f, (W + 1) * f, ncls)
    return out                                              # NHWC


# --------------------------------------------------------------------------
# RAFCN head: output8(y8, output16(y16, output32(y32))), crop, loss.
# --------------------------------------------------------------------------
def weighted_ce(logits_nchw, labels, weight, ignore_index):
    B, C, H, W = logits_nchw.shape
    logits = jnp.transpose(logits_nchw, (0, 2, 3, 1)).reshape(-1, C)
    lab = labels.reshape(-1)
    valid = (lab != ignore_index)
    lab_safe = jnp.where(valid, lab, 0)
    logp = jax.nn.log_softmax(logits, axis=-1)
    nll = -jnp.take_along_axis(logp, lab_safe[:, None], axis=1)[:, 0]
    w = weight[lab_safe] * valid.astype(jnp.float32)
    return jnp.sum(nll * w) / jnp.maximum(jnp.sum(w), 1e-8)


def rafcn_forward(feat8, feat16, feat32, params, yt, class_weight, ignore_index):
    o32 = relation_module(feat32, None, params["output32"], f=2)
    o16 = relation_module(feat16, o32, params["output16"], f=2)
    o8 = relation_module(feat8, o16, params["output8"], f=8)
    yp = jnp.transpose(o8[:, 4:-4, 4:-4, :], (0, 3, 1, 2))   # NCHW, like torch
    loss = weighted_ce(yp, yt, class_weight, ignore_index)
    return yp, loss


# --------------------------------------------------------------------------
# Pure-JAX reference (mirrors the PyTorch code directly, NCHW, full precision).
# --------------------------------------------------------------------------
def _conv1x1_ref(t, w, b):
    return jnp.einsum("bchw,oc->bohw", t, w, precision=HIGH) + b[None, :, None, None]


def _convT_ref(x, Wt, f):
    K = Wt.shape[2]
    Wc = jnp.transpose(jnp.flip(Wt, axis=(2, 3)), (1, 0, 2, 3))
    return lax.conv_general_dilated(
        x, Wc, window_strides=(1, 1),
        padding=((K - 1, K - 1), (K - 1, K - 1)),
        lhs_dilation=(f, f), dimension_numbers=("NCHW", "OIHW", "NCHW"),
        precision=HIGH)


def relation_ref(x, p, f, y=None):
    B, C, H, W = x.shape
    c = jnp.mean(x, axis=(2, 3), keepdims=True)
    u = _conv1x1_ref(c, p["wcu"], p["bcu"]).reshape(B, C)[:, :, None]
    v = _conv1x1_ref(c, p["wcv"], p["bcv"]).reshape(B, C)[:, None, :]
    cc = jax.nn.softmax(jnp.matmul(u, v, precision=HIGH), axis=1)
    z = x.reshape(B, C, H * W)
    x2 = jnp.matmul(cc, z, precision=HIGH).reshape(B, C, H, W)
    u2 = _conv1x1_ref(x2, p["wcu"], p["bcu"]).reshape(B, C, H * W).transpose(0, 2, 1)
    v2 = _conv1x1_ref(x2, p["wcv"], p["bcv"]).reshape(B, C, H * W)
    z2 = jnp.matmul(u2, v2, precision=HIGH).reshape(B, H * W, H, W)
    feat = jnp.concatenate([x2, z2], axis=1)
    s = _conv1x1_ref(feat, p["wsc"], p["bsc"])
    if y is not None:
        s = s + y[:, :, 1:-1, 1:-1]
    return _convT_ref(s, p["wup"], f)


# --------------------------------------------------------------------------
# Deterministic parameter init (same shapes as the PyTorch module __init__).
# --------------------------------------------------------------------------
def init_relation_params(key, c_in, ncls, hw, f):
    k = jax.random.split(key, 7)

    def lin(kk, cout, cin):
        return jax.random.normal(kk, (cout, cin), jnp.float32) / np.sqrt(cin)

    return dict(
        wcu=lin(k[0], c_in, c_in),
        bcu=0.1 * jax.random.normal(k[1], (c_in,), jnp.float32),
        wcv=lin(k[2], c_in, c_in),
        bcv=0.1 * jax.random.normal(k[3], (c_in,), jnp.float32),
        wsc=lin(k[4], ncls, c_in + hw),
        bsc=0.1 * jax.random.normal(k[5], (ncls,), jnp.float32),
        # ConvTranspose2d(ncls, ncls, 2f, stride=f, bias=False)
        wup=jax.random.normal(k[6], (ncls, ncls, 2 * f, 2 * f), jnp.float32) / (2.0 * f),
    )
    # NOTE: spatial_u / spatial_v exist in the torch module but are unused in forward.


if __name__ == "__main__":
    key = jax.random.PRNGKey(0)
    ks = jax.random.split(key, 8)

    B = 2
    img = 64                      # square input, as required by RAFCN
    num_classes = 4
    num_features = (16, 24, 32)   # encoder.num_features[-3:]
    s8, s16, s32 = img // 8, img // 16, img // 32

    # synthetic encoder outputs (NCHW)
    feat8 = jax.random.normal(ks[0], (B, num_features[0], s8, s8), jnp.float32)
    feat16 = jax.random.normal(ks[1], (B, num_features[1], s16, s16), jnp.float32)
    feat32 = jax.random.normal(ks[2], (B, num_features[2], s32, s32), jnp.float32)

    params = {
        "output32": init_relation_params(ks[3], num_features[2], num_classes, s32 * s32, 2),
        "output16": init_relation_params(ks[4], num_features[1], num_classes, s16 * s16, 2),
        "output8": init_relation_params(ks[5], num_features[0], num_classes, s8 * s8, 8),
    }

    yt = jax.random.randint(ks[6], (B, img, img), 0, num_classes)
    ignore_index = 255
    yt = jnp.where(jax.random.uniform(ks[7], (B, img, img)) < 0.05, ignore_index, yt)
    class_weight = jnp.ones((num_classes,), jnp.float32)

    fwd = jax.jit(rafcn_forward)
    yp, loss = fwd(feat8, feat16, feat32, params, yt, class_weight, ignore_index)
    yp = jax.block_until_ready(yp)
    loss = jax.block_until_ready(loss)

    # pure-JAX (full-precision) reference of the same RelationModule chain
    r32 = relation_ref(feat32, params["output32"], 2)
    r16 = relation_ref(feat16, params["output16"], 2, r32)
    r8 = relation_ref(feat8, params["output8"], 8, r16)
    yp_ref = r8[:, :, 4:-4, 4:-4]

    a = np.asarray(jax.device_get(yp))
    b = np.asarray(jax.device_get(yp_ref))
    rel_err = np.max(np.abs(a - b)) / (np.max(np.abs(b)) + 1e-6)
    assert np.isfinite(float(loss))
    # kernel matmuls use bf16 MXU inputs (f32 accumulation), so tolerance is
    # slightly looser than a pure-f32 comparison.
    assert rel_err < 3e-2, f"mismatch vs reference, rel_err={rel_err}"

    print("KERNEL_OK")
</pallas_src>

<mosaic_0001>
module attributes {stable_mosaic.version = 11 : i64} {
  func.func @kernel(%arg0: i32, %arg1: memref<2x4x32xf32, #tpu.memory_space<vmem>>, %arg2: memref<32x32xbf16, #tpu.memory_space<vmem>>, %arg3: memref<1x32xf32, #tpu.memory_space<vmem>>, %arg4: memref<32x32xbf16, #tpu.memory_space<vmem>>, %arg5: memref<1x32xf32, #tpu.memory_space<vmem>>, %arg6: memref<32x128xbf16, #tpu.memory_space<vmem>>, %arg7: memref<4x128xbf16, #tpu.memory_space<vmem>>, %arg8: memref<1x128xf32, #tpu.memory_space<vmem>>, %arg9: memref<2x4x128xf32, #tpu.memory_space<vmem>>) attributes {dimension_semantics = [#tpu.dimension_semantics<arbitrary>], iteration_bounds = array<i64: 1>, scalar_prefetch = 0 : i64, scratch_operands = 0 : i64, tpu.core_type = #tpu.core_type<tc>, window_params = [{pipeline_mode = #tpu.pipeline_mode<synchronous>, transform_indices = @transform_0, window_bounds = array<i64: 2, 4, 32>}, {pipeline_mode = #tpu.pipeline_mode<synchronous>, transform_indices = @transform_1, window_bounds = array<i64: 32, 32>}, {pipeline_mode = #tpu.pipeline_mode<synchronous>, transform_indices = @transform_2, window_bounds = array<i64: 1, 32>}, {pipeline_mode = #tpu.pipeline_mode<synchronous>, transform_indices = @transform_3, window_bounds = array<i64: 32, 32>}, {pipeline_mode = #tpu.pipeline_mode<synchronous>, transform_indices = @transform_4, window_bounds = array<i64: 1, 32>}, {pipeline_mode = #tpu.pipeline_mode<synchronous>, transform_indices = @transform_5, window_bounds = array<i64: 32, 128>}, {pipeline_mode = #tpu.pipeline_mode<synchronous>, transform_indices = @transform_6, window_bounds = array<i64: 4, 128>}, {pipeline_mode = #tpu.pipeline_mode<synchronous>, transform_indices = @transform_7, window_bounds = array<i64: 1, 128>}, {pipeline_mode = #tpu.pipeline_mode<synchronous>, transform_indices = @transform_8, window_bounds = array<i64: 2, 4, 128>}]} {
    %c0 = arith.constant 0 : index
    %c0_0 = arith.constant 0 : index
    %0 = vector.load %arg2[%c0, %c0_0] : memref<32x32xbf16, #tpu.memory_space<vmem>>, vector<32x32xbf16>
    %c0_1 = arith.constant 0 : index
    %c0_2 = arith.constant 0 : index
    %1 = vector.load %arg4[%c0_1, %c0_2] : memref<32x32xbf16, #tpu.memory_space<vmem>>, vector<32x32xbf16>
    %c0_3 = arith.constant 0 : index
    %c0_4 = arith.constant 0 : index
    %2 = vector.load %arg3[%c0_3, %c0_4] : memref<1x32xf32, #tpu.memory_space<vmem>>, vector<1x32xf32>
    %c0_5 = arith.constant 0 : index
    %c0_6 = arith.constant 0 : index
    %3 = vector.load %arg5[%c0_5, %c0_6] : memref<1x32xf32, #tpu.memory_space<vmem>>, vector<1x32xf32>
    %c0_7 = arith.constant 0 : index
    %c0_8 = arith.constant 0 : index
    %4 = vector.load %arg6[%c0_7, %c0_8] : memref<32x128xbf16, #tpu.memory_space<vmem>>, vector<32x128xbf16>
    %c0_9 = arith.constant 0 : index
    %c0_10 = arith.constant 0 : index
    %5 = vector.load %arg7[%c0_9, %c0_10] : memref<4x128xbf16, #tpu.memory_space<vmem>>, vector<4x128xbf16>
    %c0_11 = arith.constant 0 : index
    %c0_12 = arith.constant 0 : index
    %6 = vector.load %arg8[%c0_11, %c0_12] : memref<1x128xf32, #tpu.memory_space<vmem>>, vector<1x128xf32>
    %c0_13 = arith.constant 0 : index
    %c0_14 = arith.constant 0 : index
    %c0_15 = arith.constant 0 : index
    %7 = vector.load %arg1[%c0_13, %c0_14, %c0_15] : memref<2x4x32xf32, #tpu.memory_space<vmem>>, vector<1x4x32xf32>
    %8 = vector.shape_cast %7 : vector<1x4x32xf32> to vector<4x32xf32>
    %cst = arith.constant dense<0.000000e+00> : vector<32xf32>
    %9 = vector.multi_reduction <add>, %8, %cst [0] : vector<4x32xf32> to vector<32xf32>
    %10 = vector.shape_cast %9 : vector<32xf32> to vector<1x32xf32>
    %cst_16 = arith.constant 2.500000e-01 : f32
    %11 = vector.broadcast %cst_16 : f32 to vector<1x32xf32>
    %12 = arith.mulf %10, %11 : vector<1x32xf32>
    %13 = arith.truncf %12 : vector<1x32xf32> to vector<1x32xbf16>
    %cst_17 = arith.constant dense<0.000000e+00> : vector<1x32xf32>
    %14 = tpu.matmul %13, %0, %cst_17 {dimension_numbers = #tpu.dot_dimension_numbers<[1], [0], [0], [1], [0, 0, 1, 1], [], []>} : vector<1x32xbf16>, vector<32x32xbf16>, vector<1x32xf32> -> vector<1x32xf32>
    %15 = arith.addf %14, %2 : vector<1x32xf32>
    %cst_18 = arith.constant dense<0.000000e+00> : vector<1x32xf32>
    %16 = tpu.matmul %13, %1, %cst_18 {dimension_numbers = #tpu.dot_dimension_numbers<[1], [0], [0], [1], [0, 0, 1, 1], [], []>} : vector<1x32xbf16>, vector<32x32xbf16>, vector<1x32xf32> -> vector<1x32xf32>
    %17 = arith.addf %16, %3 : vector<1x32xf32>
    %18 = arith.truncf %15 : vector<1x32xf32> to vector<1x32xbf16>
    %19 = arith.truncf %17 : vector<1x32xf32> to vector<1x32xbf16>
    %cst_19 = arith.constant dense<0.000000e+00> : vector<32x32xf32>
    %20 = tpu.matmul %18, %19, %cst_19 {dimension_numbers = #tpu.dot_dimension_numbers<[0], [0], [1], [1], [0, 1, 1, 1], [], []>} : vector<1x32xbf16>, vector<1x32xbf16>, vector<32x32xf32> -> vector<32x32xf32>
    %cst_20 = arith.constant dense<0xFF800000> : vector<32xf32>
    %21 = vector.multi_reduction <maximumf>, %20, %cst_20 [0] : vector<32x32xf32> to vector<32xf32>
    %22 = vector.shape_cast %21 : vector<32xf32> to vector<1x32xf32>
    %23 = vector.broadcast %22 : vector<1x32xf32> to vector<32x32xf32>
    %24 = arith.subf %20, %23 : vector<32x32xf32>
    %25 = math.exp %24 : vector<32x32xf32>
    %cst_21 = arith.constant dense<0.000000e+00> : vector<32xf32>
    %26 = vector.multi_reduction <add>, %25, %cst_21 [0] : vector<32x32xf32> to vector<32xf32>
    %27 = vector.shape_cast %26 : vector<32xf32> to vector<1x32xf32>
    %28 = vector.broadcast %27 : vector<1x32xf32> to vector<32x32xf32>
    %29 = arith.divf %25, %28 : vector<32x32xf32>
    %30 = arith.truncf %29 : vector<32x32xf32> to vector<32x32xbf16>
    %31 = arith.truncf %8 : vector<4x32xf32> to vector<4x32xbf16>
    %cst_22 = arith.constant dense<0.000000e+00> : vector<4x32xf32>
    %32 = tpu.matmul %31, %30, %cst_22 {dimension_numbers = #tpu.dot_dimension_numbers<[1], [1], [0], [0], [0, 0, 1, 0], [], []>} : vector<4x32xbf16>, vector<32x32xbf16>, vector<4x32xf32> -> vector<4x32xf32>
    %33 = arith.truncf %32 : vector<4x32xf32> to vector<4x32xbf16>
    %cst_23 = arith.constant dense<0.000000e+00> : vector<4x32xf32>
    %34 = tpu.matmul %33, %0, %cst_23 {dimension_numbers = #tpu.dot_dimension_numbers<[1], [0], [0], [1], [0, 0, 1, 1], [], []>} : vector<4x32xbf16>, vector<32x32xbf16>, vector<4x32xf32> -> vector<4x32xf32>
    %35 = vector.broadcast %2 : vector<1x32xf32> to vector<4x32xf32>
    %36 = arith.addf %34, %35 : vector<4x32xf32>
    %37 = arith.truncf %36 : vector<4x32xf32> to vector<4x32xbf16>
    %cst_24 = arith.constant dense<0.000000e+00> : vector<4x32xf32>
    %38 = tpu.matmul %33, %1, %cst_24 {dimension_numbers = #tpu.dot_dimension_numbers<[1], [0], [0], [1], [0, 0, 1, 1], [], []>} : vector<4x32xbf16>, vector<32x32xbf16>, vector<4x32xf32> -> vector<4x32xf32>
    %39 = vector.broadcast %3 : vector<1x32xf32> to vector<4x32xf32>
    %40 = arith.addf %38, %39 : vector<4x32xf32>
    %41 = arith.truncf %40 : vector<4x32xf32> to vector<4x32xbf16>
    %cst_25 = arith.constant dense<0.000000e+00> : vector<32x128xf32>
    %42 = tpu.matmul %37, %5, %cst_25 {dimension_numbers = #tpu.dot_dimension_numbers<[0], [0], [1], [1], [0, 1, 1, 1], [], []>} : vector<4x32xbf16>, vector<4x128xbf16>, vector<32x128xf32> -> vector<32x128xf32>
    %cst_26 = arith.constant dense<0.000000e+00> : vector<4x128xf32>
    %43 = tpu.matmul %33, %4, %cst_26 {dimension_numbers = #tpu.dot_dimension_numbers<[1], [0], [0], [1], [0, 0, 1, 1], [], []>} : vector<4x32xbf16>, vector<32x128xbf16>, vector<4x128xf32> -> vector<4x128xf32>
    %44 = arith.truncf %42 : vector<32x128xf32> to vector<32x128xbf16>
    %cst_27 = arith.constant dense<0.000000e+00> : vector<4x128xf32>
    %45 = tpu.matmul %41, %44, %cst_27 {dimension_numbers = #tpu.dot_dimension_numbers<[1], [0], [0], [1], [0, 0, 1, 1], [], []>} : vector<4x32xbf16>, vector<32x128xbf16>, vector<4x128xf32> -> vector<4x128xf32>
    %46 = arith.addf %43, %45 : vector<4x128xf32>
    %47 = vector.broadcast %6 : vector<1x128xf32> to vector<4x128xf32>
    %48 = arith.addf %46, %47 : vector<4x128xf32>
    %c0_28 = arith.constant 0 : index
    %c0_29 = arith.constant 0 : index
    %c0_30 = arith.constant 0 : index
    %49 = vector.load %arg9[%c0_28, %c0_29, %c0_30] : memref<2x4x128xf32, #tpu.memory_space<vmem>>, vector<1x4x128xf32>
    %50 = vector.shape_cast %49 : vector<1x4x128xf32> to vector<4x128xf32>
    %51 = vector.shape_cast %48 : vector<4x128xf32> to vector<1x4x128xf32>
    tpu.vector_store %arg9[%c0_28, %c0_29, %c0_30], %51 {strides = array<i32>} : memref<2x4x128xf32, #tpu.memory_space<vmem>>, vector<1x4x128xf32>,
    %c1 = arith.constant 1 : index
    %c0_31 = arith.constant 0 : index
    %c0_32 = arith.constant 0 : index
    %52 = vector.load %arg1[%c1, %c0_31, %c0_32] : memref<2x4x32xf32, #tpu.memory_space<vmem>>, vector<1x4x32xf32>
    %53 = vector.shape_cast %52 : vector<1x4x32xf32> to vector<4x32xf32>
    %cst_33 = arith.constant dense<0.000000e+00> : vector<32xf32>
    %54 = vector.multi_reduction <add>, %53, %cst_33 [0] : vector<4x32xf32> to vector<32xf32>
    %55 = vector.shape_cast %54 : vector<32xf32> to vector<1x32xf32>
    %cst_34 = arith.constant 2.500000e-01 : f32
    %56 = vector.broadcast %cst_34 : f32 to vector<1x32xf32>
    %57 = arith.mulf %55, %56 : vector<1x32xf32>
    %58 = arith.truncf %57 : vector<1x32xf32> to vector<1x32xbf16>
    %cst_35 = arith.constant dense<0.000000e+00> : vector<1x32xf32>
    %59 = tpu.matmul %58, %0, %cst_35 {dimension_numbers = #tpu.dot_dimension_numbers<[1], [0], [0], [1], [0, 0, 1, 1], [], []>} : vector<1x32xbf16>, vector<32x32xbf16>, vector<1x32xf32> -> vector<1x32xf32>
    %60 = arith.addf %59, %2 : vector<1x32xf32>
    %cst_36 = arith.constant dense<0.000000e+00> : vector<1x32xf32>
    %61 = tpu.matmul %58, %1, %cst_36 {dimension_numbers = #tpu.dot_dimension_numbers<[1], [0], [0], [1], [0, 0, 1, 1], [], []>} : vector<1x32xbf16>, vector<32x32xbf16>, vector<1x32xf32> -> vector<1x32xf32>
    %62 = arith.addf %61, %3 : vector<1x32xf32>
    %63 = arith.truncf %60 : vector<1x32xf32> to vector<1x32xbf16>
    %64 = arith.truncf %62 : vector<1x32xf32> to vector<1x32xbf16>
    %cst_37 = arith.constant dense<0.000000e+00> : vector<32x32xf32>
    %65 = tpu.matmul %63, %64, %cst_37 {dimension_numbers = #tpu.dot_dimension_numbers<[0], [0], [1], [1], [0, 1, 1, 1], [], []>} : vector<1x32xbf16>, vector<1x32xbf16>, vector<32x32xf32> -> vector<32x32xf32>
    %cst_38 = arith.constant dense<0xFF800000> : vector<32xf32>
    %66 = vector.multi_reduction <maximumf>, %65, %cst_38 [0] : vector<32x32xf32> to vector<32xf32>
    %67 = vector.shape_cast %66 : vector<32xf32> to vector<1x32xf32>
    %68 = vector.broadcast %67 : vector<1x32xf32> to vector<32x32xf32>
    %69 = arith.subf %65, %68 : vector<32x32xf32>
    %70 = math.exp %69 : vector<32x32xf32>
    %cst_39 = arith.constant dense<0.000000e+00> : vector<32xf32>
    %71 = vector.multi_reduction <add>, %70, %cst_39 [0] : vector<32x32xf32> to vector<32xf32>
    %72 = vector.shape_cast %71 : vector<32xf32> to vector<1x32xf32>
    %73 = vector.broadcast %72 : vector<1x32xf32> to vector<32x32xf32>
    %74 = arith.divf %70, %73 : vector<32x32xf32>
    %75 = arith.truncf %74 : vector<32x32xf32> to vector<32x32xbf16>
    %76 = arith.truncf %53 : vector<4x32xf32> to vector<4x32xbf16>
    %cst_40 = arith.constant dense<0.000000e+00> : vector<4x32xf32>
    %77 = tpu.matmul %76, %75, %cst_40 {dimension_numbers = #tpu.dot_dimension_numbers<[1], [1], [0], [0], [0, 0, 1, 0], [], []>} : vector<4x32xbf16>, vector<32x32xbf16>, vector<4x32xf32> -> vector<4x32xf32>
    %78 = arith.truncf %77 : vector<4x32xf32> to vector<4x32xbf16>
    %cst_41 = arith.constant dense<0.000000e+00> : vector<4x32xf32>
    %79 = tpu.matmul %78, %0, %cst_41 {dimension_numbers = #tpu.dot_dimension_numbers<[1], [0], [0], [1], [0, 0, 1, 1], [], []>} : vector<4x32xbf16>, vector<32x32xbf16>, vector<4x32xf32> -> vector<4x32xf32>
    %80 = vector.broadcast %2 : vector<1x32xf32> to vector<4x32xf32>
    %81 = arith.addf %79, %80 : vector<4x32xf32>
    %82 = arith.truncf %81 : vector<4x32xf32> to vector<4x32xbf16>
    %cst_42 = arith.constant dense<0.000000e+00> : vector<4x32xf32>
    %83 = tpu.matmul %78, %1, %cst_42 {dimension_numbers = #tpu.dot_dimension_numbers<[1], [0], [0], [1], [0, 0, 1, 1], [], []>} : vector<4x32xbf16>, vector<32x32xbf16>, vector<4x32xf32> -> vector<4x32xf32>
    %84 = vector.broadcast %3 : vector<1x32xf32> to vector<4x32xf32>
    %85 = arith.addf %83, %84 : vector<4x32xf32>
    %86 = arith.truncf %85 : vector<4x32xf32> to vector<4x32xbf16>
    %cst_43 = arith.constant dense<0.000000e+00> : vector<32x128xf32>
    %87 = tpu.matmul %82, %5, %cst_43 {dimension_numbers = #tpu.dot_dimension_numbers<[0], [0], [1], [1], [0, 1, 1, 1], [], []>} : vector<4x32xbf16>, vector<4x128xbf16>, vector<32x128xf32> -> vector<32x128xf32>
    %cst_44 = arith.constant dense<0.000000e+00> : vector<4x128xf32>
    %88 = tpu.matmul %78, %4, %cst_44 {dimension_numbers = #tpu.dot_dimension_numbers<[1], [0], [0], [1], [0, 0, 1, 1], [], []>} : vector<4x32xbf16>, vector<32x128xbf16>, vector<4x128xf32> -> vector<4x128xf32>
    %89 = arith.truncf %87 : vector<32x128xf32> to vector<32x128xbf16>
    %cst_45 = arith.constant dense<0.000000e+00> : vector<4x128xf32>
    %90 = tpu.matmul %86, %89, %cst_45 {dimension_numbers = #tpu.dot_dimension_numbers<[1], [0], [0], [1], [0, 0, 1, 1], [], []>} : vector<4x32xbf16>, vector<32x128xbf16>, vector<4x128xf32> -> vector<4x128xf32>
    %91 = arith.addf %88, %90 : vector<4x128xf32>
    %92 = vector.broadcast %6 : vector<1x128xf32> to vector<4x128xf32>
    %93 = arith.addf %91, %92 : vector<4x128xf32>
    %c1_46 = arith.constant 1 : index
    %c0_47 = arith.constant 0 : index
    %c0_48 = arith.constant 0 : index
    %94 = vector.load %arg9[%c1_46, %c0_47, %c0_48] : memref<2x4x128xf32, #tpu.memory_space<vmem>>, vector<1x4x128xf32>
    %95 = vector.shape_cast %94 : vector<1x4x128xf32> to vector<4x128xf32>
    %96 = vector.shape_cast %93 : vector<4x128xf32> to vector<1x4x128xf32>
    tpu.vector_store %arg9[%c1_46, %c0_47, %c0_48], %96 {strides = array<i32>} : memref<2x4x128xf32, #tpu.memory_space<vmem>>, vector<1x4x128xf32>,
    return
  }
  func.func @transform_0(%arg0: i32) -> (i32, i32, i32) {
    %c0_i32 = arith.constant 0 : i32
    %c0_i32_0 = arith.constant 0 : i32
    %c0_i32_1 = arith.constant 0 : i32
    %c0_i32_2 = arith.constant 0 : i32
    return %c0_i32, %c0_i32_0, %c0_i32_1 : i32, i32, i32
  }
  func.func @transform_1(%arg0: i32) -> (i32, i32) {
    %c0_i32 = arith.constant 0 : i32
    %c0_i32_0 = arith.constant 0 : i32
    %c0_i32_1 = arith.constant 0 : i32
    return %c0_i32, %c0_i32_0 : i32, i32
  }
  func.func @transform_2(%arg0: i32) -> (i32, i32) {
    %c0_i32 = arith.constant 0 : i32
    %c0_i32_0 = arith.constant 0 : i32
    %c0_i32_1 = arith.constant 0 : i32
    return %c0_i32, %c0_i32_0 : i32, i32
  }
  func.func @transform_3(%arg0: i32) -> (i32, i32) {
    %c0_i32 = arith.constant 0 : i32
    %c0_i32_0 = arith.constant 0 : i32
    %c0_i32_1 = arith.constant 0 : i32
    return %c0_i32, %c0_i32_0 : i32, i32
  }
  func.func @transform_4(%arg0: i32) -> (i32, i32) {
    %c0_i32 = arith.constant 0 : i32
    %c0_i32_0 = arith.constant 0 : i32
    %c0_i32_1 = arith.constant 0 : i32
    return %c0_i32, %c0_i32_0 : i32, i32
  }
  func.func @transform_5(%arg0: i32) -> (i32, i32) {
    %c0_i32 = arith.constant 0 : i32
    %c0_i32_0 = arith.constant 0 : i32
    %c0_i32_1 = arith.constant 0 : i32
    return %c0_i32, %c0_i32_0 : i32, i32
  }
  func.func @transform_6(%arg0: i32) -> (i32, i32) {
    %c0_i32 = arith.constant 0 : i32
    %c0_i32_0 = arith.constant 0 : i32
    %c0_i32_1 = arith.constant 0 : i32
    return %c0_i32, %c0_i32_0 : i32, i32
  }
  func.func @transform_7(%arg0: i32) -> (i32, i32) {
    %c0_i32 = arith.constant 0 : i32
    %c0_i32_0 = arith.constant 0 : i32
    %c0_i32_1 = arith.constant 0 : i32
    return %c0_i32, %c0_i32_0 : i32, i32
  }
  func.func @transform_8(%arg0: i32) -> (i32, i32, i32) {
    %c0_i32 = arith.constant 0 : i32
    %c0_i32_0 = arith.constant 0 : i32
    %c0_i32_1 = arith.constant 0 : i32
    %c0_i32_2 = arith.constant 0 : i32
    return %c0_i32, %c0_i32_0, %c0_i32_1 : i32, i32, i32
  }
}

module attributes {stable_mosaic.version = 11 : i64} {
  func.func @kernel(%arg0: i32, %arg1: memref<2x16x24xf32, #tpu.memory_space<vmem>>, %arg2: memref<24x24xbf16, #tpu.memory_space<vmem>>, %arg3: memref<1x24xf32, #tpu.memory_space<vmem>>, %arg4: memref<24x24xbf16, #tpu.memory_space<vmem>>, %arg5: memref<1x24xf32, #tpu.memory_space<vmem>>, %arg6: memref<24x128xbf16, #tpu.memory_space<vmem>>, %arg7: memref<16x128xbf16, #tpu.memory_space<vmem>>, %arg8: memref<1x128xf32, #tpu.memory_space<vmem>>, %arg9: memref<2x16x128xf32, #tpu.memory_space<vmem>>, %arg10: memref<2x16x128xf32, #tpu.memory_space<vmem>>) attributes {dimension_semantics = [#tpu.dimension_semantics<arbitrary>], iteration_bounds = array<i64: 1>, scalar_prefetch = 0 : i64, scratch_operands = 0 : i64, tpu.core_type = #tpu.core_type<tc>, window_params = [{pipeline_mode = #tpu.pipeline_mode<synchronous>, transform_indices = @transform_0, window_bounds = array<i64: 2, 16, 24>}, {pipeline_mode = #tpu.pipeline_mode<synchronous>, transform_indices = @transform_1, window_bounds = array<i64: 24, 24>}, {pipeline_mode = #tpu.pipeline_mode<synchronous>, transform_indices = @transform_2, window_bounds = array<i64: 1, 24>}, {pipeline_mode = #tpu.pipeline_mode<synchronous>, transform_indices = @transform_3, window_bounds = array<i64: 24, 24>}, {pipeline_mode = #tpu.pipeline_mode<synchronous>, transform_indices = @transform_4, window_bounds = array<i64: 1, 24>}, {pipeline_mode = #tpu.pipeline_mode<synchronous>, transform_indices = @transform_5, window_bounds = array<i64: 24, 128>}, {pipeline_mode = #tpu.pipeline_mode<synchronous>, transform_indices = @transform_6, window_bounds = array<i64: 16, 128>}, {pipeline_mode = #tpu.pipeline_mode<synchronous>, transform_indices = @transform_7, window_bounds = array<i64: 1, 128>}, {pipeline_mode = #tpu.pipeline_mode<synchronous>, transform_indices = @transform_8, window_bounds = array<i64: 2, 16, 128>}, {pipeline_mode = #tpu.pipeline_mode<synchronous>, transform_indices = @transform_9, window_bounds = array<i64: 2, 16, 128>}]} {
    %c0 = arith.constant 0 : index
    %c0_0 = arith.constant 0 : index
    %0 = vector.load %arg2[%c0, %c0_0] : memref<24x24xbf16, #tpu.memory_space<vmem>>, vector<24x24xbf16>
    %c0_1 = arith.constant 0 : index
    %c0_2 = arith.constant 0 : index
    %1 = vector.load %arg4[%c0_1, %c0_2] : memref<24x24xbf16, #tpu.memory_space<vmem>>, vector<24x24xbf16>
    %c0_3 = arith.constant 0 : index
    %c0_4 = arith.constant 0 : index
    %2 = vector.load %arg3[%c0_3, %c0_4] : memref<1x24xf32, #tpu.memory_space<vmem>>, vector<1x24xf32>
    %c0_5 = arith.constant 0 : index
    %c0_6 = arith.constant 0 : index
    %3 = vector.load %arg5[%c0_5, %c0_6] : memref<1x24xf32, #tpu.memory_space<vmem>>, vector<1x24xf32>
    %c0_7 = arith.constant 0 : index
    %c0_8 = arith.constant 0 : index
    %4 = vector.load %arg6[%c0_7, %c0_8] : memref<24x128xbf16, #tpu.memory_space<vmem>>, vector<24x128xbf16>
    %c0_9 = arith.constant 0 : index
    %c0_10 = arith.constant 0 : index
    %5 = vector.load %arg7[%c0_9, %c0_10] : memref<16x128xbf16, #tpu.memory_space<vmem>>, vector<16x128xbf16>
    %c0_11 = arith.constant 0 : index
    %c0_12 = arith.constant 0 : index
    %6 = vector.load %arg8[%c0_11, %c0_12] : memref<1x128xf32, #tpu.memory_space<vmem>>, vector<1x128xf32>
    %c0_13 = arith.constant 0 : index
    %c0_14 = arith.constant 0 : index
    %c0_15 = arith.constant 0 : index
    %7 = vector.load %arg1[%c0_13, %c0_14, %c0_15] : memref<2x16x24xf32, #tpu.memory_space<vmem>>, vector<1x16x24xf32>
    %8 = vector.shape_cast %7 : vector<1x16x24xf32> to vector<16x24xf32>
    %cst = arith.constant dense<0.000000e+00> : vector<24xf32>
    %9 = vector.multi_reduction <add>, %8, %cst [0] : vector<16x24xf32> to vector<24xf32>
    %10 = vector.shape_cast %9 : vector<24xf32> to vector<1x24xf32>
    %cst_16 = arith.constant 6.250000e-02 : f32
    %11 = vector.broadcast %cst_16 : f32 to vector<1x24xf32>
    %12 = arith.mulf %10, %11 : vector<1x24xf32>
    %13 = arith.truncf %12 : vector<1x24xf32> to vector<1x24xbf16>
    %cst_17 = arith.constant dense<0.000000e+00> : vector<1x24xf32>
    %14 = tpu.matmul %13, %0, %cst_17 {dimension_numbers = #tpu.dot_dimension_numbers<[1], [0], [0], [1], [0, 0, 1, 1], [], []>} : vector<1x24xbf16>, vector<24x24xbf16>, vector<1x24xf32> -> vector<1x24xf32>
    %15 = arith.addf %14, %2 : vector<1x24xf32>
    %cst_18 = arith.constant dense<0.000000e+00> : vector<1x24xf32>
    %16 = tpu.matmul %13, %1, %cst_18 {dimension_numbers = #tpu.dot_dimension_numbers<[1], [0], [0], [1], [0, 0, 1, 1], [], []>} : vector<1x24xbf16>, vector<24x24xbf16>, vector<1x24xf32> -> vector<1x24xf32>
    %17 = arith.addf %16, %3 : vector<1x24xf32>
    %18 = arith.truncf %15 : vector<1x24xf32> to vector<1x24xbf16>
    %19 = arith.truncf %17 : vector<1x24xf32> to vector<1x24xbf16>
    %cst_19 = arith.constant dense<0.000000e+00> : vector<24x24xf32>
    %20 = tpu.matmul %18, %19, %cst_19 {dimension_numbers = #tpu.dot_dimension_numbers<[0], [0], [1], [1], [0, 1, 1, 1], [], []>} : vector<1x24xbf16>, vector<1x24xbf16>, vector<24x24xf32> -> vector<24x24xf32>
    %cst_20 = arith.constant dense<0xFF800000> : vector<24xf32>
    %21 = vector.multi_reduction <maximumf>, %20, %cst_20 [0] : vector<24x24xf32> to vector<24xf32>
    %22 = vector.shape_cast %21 : vector<24xf32> to vector<1x24xf32>
    %23 = vector.broadcast %22 : vector<1x24xf32> to vector<24x24xf32>
    %24 = arith.subf %20, %23 : vector<24x24xf32>
    %25 = math.exp %24 : vector<24x24xf32>
    %cst_21 = arith.constant dense<0.000000e+00> : vector<24xf32>
    %26 = vector.multi_reduction <add>, %25, %cst_21 [0] : vector<24x24xf32> to vector<24xf32>
    %27 = vector.shape_cast %26 : vector<24xf32> to vector<1x24xf32>
    %28 = vector.broadcast %27 : vector<1x24xf32> to vector<24x24xf32>
    %29 = arith.divf %25, %28 : vector<24x24xf32>
    %30 = arith.truncf %29 : vector<24x24xf32> to vector<24x24xbf16>
    %31 = arith.truncf %8 : vector<16x24xf32> to vector<16x24xbf16>
    %cst_22 = arith.constant dense<0.000000e+00> : vector<16x24xf32>
    %32 = tpu.matmul %31, %30, %cst_22 {dimension_numbers = #tpu.dot_dimension_numbers<[1], [1], [0], [0], [0, 0, 1, 0], [], []>} : vector<16x24xbf16>, vector<24x24xbf16>, vector<16x24xf32> -> vector<16x24xf32>
    %33 = arith.truncf %32 : vector<16x24xf32> to vector<16x24xbf16>
    %cst_23 = arith.constant dense<0.000000e+00> : vector<16x24xf32>
    %34 = tpu.matmul %33, %0, %cst_23 {dimension_numbers = #tpu.dot_dimension_numbers<[1], [0], [0], [1], [0, 0, 1, 1], [], []>} : vector<16x24xbf16>, vector<24x24xbf16>, vector<16x24xf32> -> vector<16x24xf32>
    %35 = vector.broadcast %2 : vector<1x24xf32> to vector<16x24xf32>
    %36 = arith.addf %34, %35 : vector<16x24xf32>
    %37 = arith.truncf %36 : vector<16x24xf32> to vector<16x24xbf16>
    %cst_24 = arith.constant dense<0.000000e+00> : vector<16x24xf32>
    %38 = tpu.matmul %33, %1, %cst_24 {dimension_numbers = #tpu.dot_dimension_numbers<[1], [0], [0], [1], [0, 0, 1, 1], [], []>} : vector<16x24xbf16>, vector<24x24xbf16>, vector<16x24xf32> -> vector<16x24xf32>
    %39 = vector.broadcast %3 : vector<1x24xf32> to vector<16x24xf32>
    %40 = arith.addf %38, %39 : vector<16x24xf32>
    %41 = arith.truncf %40 : vector<16x24xf32> to vector<16x24xbf16>
    %cst_25 = arith.constant dense<0.000000e+00> : vector<24x128xf32>
    %42 = tpu.matmul %37, %5, %cst_25 {dimension_numbers = #tpu.dot_dimension_numbers<[0], [0], [1], [1], [0, 1, 1, 1], [], []>} : vector<16x24xbf16>, vector<16x128xbf16>, vector<24x128xf32> -> vector<24x128xf32>
    %cst_26 = arith.constant dense<0.000000e+00> : vector<16x128xf32>
    %43 = tpu.matmul %33, %4, %cst_26 {dimension_numbers = #tpu.dot_dimension_numbers<[1], [0], [0], [1], [0, 0, 1, 1], [], []>} : vector<16x24xbf16>, vector<24x128xbf16>, vector<16x128xf32> -> vector<16x128xf32>
    %44 = arith.truncf %42 : vector<24x128xf32> to vector<24x128xbf16>
    %cst_27 = arith.constant dense<0.000000e+00> : vector<16x128xf32>
    %45 = tpu.matmul %41, %44, %cst_27 {dimension_numbers = #tpu.dot_dimension_numbers<[1], [0], [0], [1], [0, 0, 1, 1], [], []>} : vector<16x24xbf16>, vector<24x128xbf16>, vector<16x128xf32> -> vector<16x128xf32>
    %46 = arith.addf %43, %45 : vector<16x128xf32>
    %47 = vector.broadcast %6 : vector<1x128xf32> to vector<16x128xf32>
    %48 = arith.addf %46, %47 : vector<16x128xf32>
    %c0_28 = arith.constant 0 : index
    %c0_29 = arith.constant 0 : index
    %c0_30 = arith.constant 0 : index
    %49 = vector.load %arg9[%c0_28, %c0_29, %c0_30] : memref<2x16x128xf32, #tpu.memory_space<vmem>>, vector<1x16x128xf32>
    %50 = vector.shape_cast %49 : vector<1x16x128xf32> to vector<16x128xf32>
    %51 = arith.addf %48, %50 : vector<16x128xf32>
    %c0_31 = arith.constant 0 : index
    %c0_32 = arith.constant 0 : index
    %c0_33 = arith.constant 0 : index
    %52 = vector.load %arg10[%c0_31, %c0_32, %c0_33] : memref<2x16x128xf32, #tpu.memory_space<vmem>>, vector<1x16x128xf32>
    %53 = vector.shape_cast %52 : vector<1x16x128xf32> to vector<16x128xf32>
    %54 = vector.shape_cast %51 : vector<16x128xf32> to vector<1x16x128xf32>
    tpu.vector_store %arg10[%c0_31, %c0_32, %c0_33], %54 {strides = array<i32>} : memref<2x16x128xf32, #tpu.memory_space<vmem>>, vector<1x16x128xf32>,
    %c1 = arith.constant 1 : index
    %c0_34 = arith.constant 0 : index
    %c0_35 = arith.constant 0 : index
    %55 = vector.load %arg1[%c1, %c0_34, %c0_35] : memref<2x16x24xf32, #tpu.memory_space<vmem>>, vector<1x16x24xf32>
    %56 = vector.shape_cast %55 : vector<1x16x24xf32> to vector<16x24xf32>
    %cst_36 = arith.constant dense<0.000000e+00> : vector<24xf32>
    %57 = vector.multi_reduction <add>, %56, %cst_36 [0] : vector<16x24xf32> to vector<24xf32>
    %58 = vector.shape_cast %57 : vector<24xf32> to vector<1x24xf32>
    %cst_37 = arith.constant 6.250000e-02 : f32
    %59 = vector.broadcast %cst_37 : f32 to vector<1x24xf32>
    %60 = arith.mulf %58, %59 : vector<1x24xf32>
    %61 = arith.truncf %60 : vector<1x24xf32> to vector<1x24xbf16>
    %cst_38 = arith.constant dense<0.000000e+00> : vector<1x24xf32>
    %62 = tpu.matmul %61, %0, %cst_38 {dimension_numbers = #tpu.dot_dimension_numbers<[1], [0], [0], [1], [0, 0, 1, 1], [], []>} : vector<1x24xbf16>, vector<24x24xbf16>, vector<1x24xf32> -> vector<1x24xf32>
    %63 = arith.addf %62, %2 : vector<1x24xf32>
    %cst_39 = arith.constant dense<0.000000e+00> : vector<1x24xf32>
    %64 = tpu.matmul %61, %1, %cst_39 {dimension_numbers = #tpu.dot_dimension_numbers<[1], [0], [0], [1], [0, 0, 1, 1], [], []>} : vector<1x24xbf16>, vector<24x24xbf16>, vector<1x24xf32> -> vector<1x24xf32>
    %65 = arith.addf %64, %3 : vector<1x24xf32>
    %66 = arith.truncf %63 : vector<1x24xf32> to vector<1x24xbf16>
    %67 = arith.truncf %65 : vector<1x24xf32> to vector<1x24xbf16>
    %cst_40 = arith.constant dense<0.000000e+00> : vector<24x24xf32>
    %68 = tpu.matmul %66, %67, %cst_40 {dimension_numbers = #tpu.dot_dimension_numbers<[0], [0], [1], [1], [0, 1, 1, 1], [], []>} : vector<1x24xbf16>, vector<1x24xbf16>, vector<24x24xf32> -> vector<24x24xf32>
    %cst_41 = arith.constant dense<0xFF800000> : vector<24xf32>
    %69 = vector.multi_reduction <maximumf>, %68, %cst_41 [0] : vector<24x24xf32> to vector<24xf32>
    %70 = vector.shape_cast %69 : vector<24xf32> to vector<1x24xf32>
    %71 = vector.broadcast %70 : vector<1x24xf32> to vector<24x24xf32>
    %72 = arith.subf %68, %71 : vector<24x24xf32>
    %73 = math.exp %72 : vector<24x24xf32>
    %cst_42 = arith.constant dense<0.000000e+00> : vector<24xf32>
    %74 = vector.multi_reduction <add>, %73, %cst_42 [0] : vector<24x24xf32> to vector<24xf32>
    %75 = vector.shape_cast %74 : vector<24xf32> to vector<1x24xf32>
    %76 = vector.broadcast %75 : vector<1x24xf32> to vector<24x24xf32>
    %77 = arith.divf %73, %76 : vector<24x24xf32>
    %78 = arith.truncf %77 : vector<24x24xf32> to vector<24x24xbf16>
    %79 = arith.truncf %56 : vector<16x24xf32> to vector<16x24xbf16>
    %cst_43 = arith.constant dense<0.000000e+00> : vector<16x24xf32>
    %80 = tpu.matmul %79, %78, %cst_43 {dimension_numbers = #tpu.dot_dimension_numbers<[1], [1], [0], [0], [0, 0, 1, 0], [], []>} : vector<16x24xbf16>, vector<24x24xbf16>, vector<16x24xf32> -> vector<16x24xf32>
    %81 = arith.truncf %80 : vector<16x24xf32> to vector<16x24xbf16>
    %cst_44 = arith.constant dense<0.000000e+00> : vector<16x24xf32>
    %82 = tpu.matmul %81, %0, %cst_44 {dimension_numbers = #tpu.dot_dimension_numbers<[1], [0], [0], [1], [0, 0, 1, 1], [], []>} : vector<16x24xbf16>, vector<24x24xbf16>, vector<16x24xf32> -> vector<16x24xf32>
    %83 = vector.broadcast %2 : vector<1x24xf32> to vector<16x24xf32>
    %84 = arith.addf %82, %83 : vector<16x24xf32>
    %85 = arith.truncf %84 : vector<16x24xf32> to vector<16x24xbf16>
    %cst_45 = arith.constant dense<0.000000e+00> : vector<16x24xf32>
    %86 = tpu.matmul %81, %1, %cst_45 {dimension_numbers = #tpu.dot_dimension_numbers<[1], [0], [0], [1], [0, 0, 1, 1], [], []>} : vector<16x24xbf16>, vector<24x24xbf16>, vector<16x24xf32> -> vector<16x24xf32>
    %87 = vector.broadcast %3 : vector<1x24xf32> to vector<16x24xf32>
    %88 = arith.addf %86, %87 : vector<16x24xf32>
    %89 = arith.truncf %88 : vector<16x24xf32> to vector<16x24xbf16>
    %cst_46 = arith.constant dense<0.000000e+00> : vector<24x128xf32>
    %90 = tpu.matmul %85, %5, %cst_46 {dimension_numbers = #tpu.dot_dimension_numbers<[0], [0], [1], [1], [0, 1, 1, 1], [], []>} : vector<16x24xbf16>, vector<16x128xbf16>, vector<24x128xf32> -> vector<24x128xf32>
    %cst_47 = arith.constant dense<0.000000e+00> : vector<16x128xf32>
    %91 = tpu.matmul %81, %4, %cst_47 {dimension_numbers = #tpu.dot_dimension_numbers<[1], [0], [0], [1], [0, 0, 1, 1], [], []>} : vector<16x24xbf16>, vector<24x128xbf16>, vector<16x128xf32> -> vector<16x128xf32>
    %92 = arith.truncf %90 : vector<24x128xf32> to vector<24x128xbf16>
    %cst_48 = arith.constant dense<0.000000e+00> : vector<16x128xf32>
    %93 = tpu.matmul %89, %92, %cst_48 {dimension_numbers = #tpu.dot_dimension_numbers<[1], [0], [0], [1], [0, 0, 1, 1], [], []>} : vector<16x24xbf16>, vector<24x128xbf16>, vector<16x128xf32> -> vector<16x128xf32>
    %94 = arith.addf %91, %93 : vector<16x128xf32>
    %95 = vector.broadcast %6 : vector<1x128xf32> to vector<16x128xf32>
    %96 = arith.addf %94, %95 : vector<16x128xf32>
    %c1_49 = arith.constant 1 : index
    %c0_50 = arith.constant 0 : index
    %c0_51 = arith.constant 0 : index
    %97 = vector.load %arg9[%c1_49, %c0_50, %c0_51] : memref<2x16x128xf32, #tpu.memory_space<vmem>>, vector<1x16x128xf32>
    %98 = vector.shape_cast %97 : vector<1x16x128xf32> to vector<16x128xf32>
    %99 = arith.addf %96, %98 : vector<16x128xf32>
    %c1_52 = arith.constant 1 : index
    %c0_53 = arith.constant 0 : index
    %c0_54 = arith.constant 0 : index
    %100 = vector.load %arg10[%c1_52, %c0_53, %c0_54] : memref<2x16x128xf32, #tpu.memory_space<vmem>>, vector<1x16x128xf32>
    %101 = vector.shape_cast %100 : vector<1x16x128xf32> to vector<16x128xf32>
    %102 = vector.shape_cast %99 : vector<16x128xf32> to vector<1x16x128xf32>
    tpu.vector_store %arg10[%c1_52, %c0_53, %c0_54], %102 {strides = array<i32>} : memref<2x16x128xf32, #tpu.memory_space<vmem>>, vector<1x16x128xf32>,
    return
  }
  func.func @transform_0(%arg0: i32) -> (i32, i32, i32) {
    %c0_i32 = arith.constant 0 : i32
    %c0_i32_0 = arith.constant 0 : i32
    %c0_i32_1 = arith.constant 0 : i32
    %c0_i32_2 = arith.constant 0 : i32
    return %c0_i32, %c0_i32_0, %c0_i32_1 : i32, i32, i32
  }
  func.func @transform_1(%arg0: i32) -> (i32, i32) {
    %c0_i32 = arith.constant 0 : i32
    %c0_i32_0 = arith.constant 0 : i32
    %c0_i32_1 = arith.constant 0 : i32
    return %c0_i32, %c0_i32_0 : i32, i32
  }
  func.func @transform_2(%arg0: i32) -> (i32, i32) {
    %c0_i32 = arith.constant 0 : i32
    %c0_i32_0 = arith.constant 0 : i32
    %c0_i32_1 = arith.constant 0 : i32
    return %c0_i32, %c0_i32_0 : i32, i32
  }
  func.func @transform_3(%arg0: i32) -> (i32, i32) {
    %c0_i32 = arith.constant 0 : i32
    %c0_i32_0 = arith.constant 0 : i32
    %c0_i32_1 = arith.constant 0 : i32
    return %c0_i32, %c0_i32_0 : i32, i32
  }
  func.func @transform_4(%arg0: i32) -> (i32, i32) {
    %c0_i32 = arith.constant 0 : i32
    %c0_i32_0 = arith.constant 0 : i32
    %c0_i32_1 = arith.constant 0 : i32
    return %c0_i32, %c0_i32_0 : i32, i32
  }
  func.func @transform_5(%arg0: i32) -> (i32, i32) {
    %c0_i32 = arith.constant 0 : i32
    %c0_i32_0 = arith.constant 0 : i32
    %c0_i32_1 = arith.constant 0 : i32
    return %c0_i32, %c0_i32_0 : i32, i32
  }
  func.func @transform_6(%arg0: i32) -> (i32, i32) {
    %c0_i32 = arith.constant 0 : i32
    %c0_i32_0 = arith.constant 0 : i32
    %c0_i32_1 = arith.constant 0 : i32
    return %c0_i32, %c0_i32_0 : i32, i32
  }
  func.func @transform_7(%arg0: i32) -> (i32, i32) {
    %c0_i32 = arith.constant 0 : i32
    %c0_i32_0 = arith.constant 0 : i32
    %c0_i32_1 = arith.constant 0 : i32
    return %c0_i32, %c0_i32_0 : i32, i32
  }
  func.func @transform_8(%arg0: i32) -> (i32, i32, i32) {
    %c0_i32 = arith.constant 0 : i32
    %c0_i32_0 = arith.constant 0 : i32
    %c0_i32_1 = arith.constant 0 : i32
    %c0_i32_2 = arith.constant 0 : i32
    return %c0_i32, %c0_i32_0, %c0_i32_1 : i32, i32, i32
  }
  func.func @transform_9(%arg0: i32) -> (i32, i32, i32) {
    %c0_i32 = arith.constant 0 : i32
    %c0_i32_0 = arith.constant 0 : i32
    %c0_i32_1 = arith.constant 0 : i32
    %c0_i32_2 = arith.constant 0 : i32
    return %c0_i32, %c0_i32_0, %c0_i32_1 : i32, i32, i32
  }
}

module attributes {stable_mosaic.version = 11 : i64} {
  func.func @kernel(%arg0: i32, %arg1: memref<2x64x16xf32, #tpu.memory_space<vmem>>, %arg2: memref<16x16xbf16, #tpu.memory_space<vmem>>, %arg3: memref<1x16xf32, #tpu.memory_space<vmem>>, %arg4: memref<16x16xbf16, #tpu.memory_space<vmem>>, %arg5: memref<1x16xf32, #tpu.memory_space<vmem>>, %arg6: memref<16x1024xbf16, #tpu.memory_space<vmem>>, %arg7: memref<64x1024xbf16, #tpu.memory_space<vmem>>, %arg8: memref<1x1024xf32, #tpu.memory_space<vmem>>, %arg9: memref<2x64x1024xf32, #tpu.memory_space<vmem>>, %arg10: memref<2x64x1024xf32, #tpu.memory_space<vmem>>) attributes {dimension_semantics = [#tpu.dimension_semantics<arbitrary>], iteration_bounds = array<i64: 1>, scalar_prefetch = 0 : i64, scratch_operands = 0 : i64, tpu.core_type = #tpu.core_type<tc>, window_params = [{pipeline_mode = #tpu.pipeline_mode<synchronous>, transform_indices = @transform_0, window_bounds = array<i64: 2, 64, 16>}, {pipeline_mode = #tpu.pipeline_mode<synchronous>, transform_indices = @transform_1, window_bounds = array<i64: 16, 16>}, {pipeline_mode = #tpu.pipeline_mode<synchronous>, transform_indices = @transform_2, window_bounds = array<i64: 1, 16>}, {pipeline_mode = #tpu.pipeline_mode<synchronous>, transform_indices = @transform_3, window_bounds = array<i64: 16, 16>}, {pipeline_mode = #tpu.pipeline_mode<synchronous>, transform_indices = @transform_4, window_bounds = array<i64: 1, 16>}, {pipeline_mode = #tpu.pipeline_mode<synchronous>, transform_indices = @transform_5, window_bounds = array<i64: 16, 1024>}, {pipeline_mode = #tpu.pipeline_mode<synchronous>, transform_indices = @transform_6, window_bounds = array<i64: 64, 1024>}, {pipeline_mode = #tpu.pipeline_mode<synchronous>, transform_indices = @transform_7, window_bounds = array<i64: 1, 1024>}, {pipeline_mode = #tpu.pipeline_mode<synchronous>, transform_indices = @transform_8, window_bounds = array<i64: 2, 64, 1024>}, {pipeline_mode = #tpu.pipeline_mode<synchronous>, transform_indices = @transform_9, window_bounds = array<i64: 2, 64, 1024>}]} {
    %c0 = arith.constant 0 : index
    %c0_0 = arith.constant 0 : index
    %0 = vector.load %arg2[%c0, %c0_0] : memref<16x16xbf16, #tpu.memory_space<vmem>>, vector<16x16xbf16>
    %c0_1 = arith.constant 0 : index
    %c0_2 = arith.constant 0 : index
    %1 = vector.load %arg4[%c0_1, %c0_2] : memref<16x16xbf16, #tpu.memory_space<vmem>>, vector<16x16xbf16>
    %c0_3 = arith.constant 0 : index
    %c0_4 = arith.constant 0 : index
    %2 = vector.load %arg3[%c0_3, %c0_4] : memref<1x16xf32, #tpu.memory_space<vmem>>, vector<1x16xf32>
    %c0_5 = arith.constant 0 : index
    %c0_6 = arith.constant 0 : index
    %3 = vector.load %arg5[%c0_5, %c0_6] : memref<1x16xf32, #tpu.memory_space<vmem>>, vector<1x16xf32>
    %c0_7 = arith.constant 0 : index
    %c0_8 = arith.constant 0 : index
    %4 = vector.load %arg6[%c0_7, %c0_8] : memref<16x1024xbf16, #tpu.memory_space<vmem>>, vector<16x1024xbf16>
    %c0_9 = arith.constant 0 : index
    %c0_10 = arith.constant 0 : index
    %5 = vector.load %arg7[%c0_9, %c0_10] : memref<64x1024xbf16, #tpu.memory_space<vmem>>, vector<64x1024xbf16>
    %c0_11 = arith.constant 0 : index
    %c0_12 = arith.constant 0 : index
    %6 = vector.load %arg8[%c0_11, %c0_12] : memref<1x1024xf32, #tpu.memory_space<vmem>>, vector<1x1024xf32>
    %c0_13 = arith.constant 0 : index
    %c0_14 = arith.constant 0 : index
    %c0_15 = arith.constant 0 : index
    %7 = vector.load %arg1[%c0_13, %c0_14, %c0_15] : memref<2x64x16xf32, #tpu.memory_space<vmem>>, vector<1x64x16xf32>
    %8 = vector.shape_cast %7 : vector<1x64x16xf32> to vector<64x16xf32>
    %cst = arith.constant dense<0.000000e+00> : vector<16xf32>
    %9 = vector.multi_reduction <add>, %8, %cst [0] : vector<64x16xf32> to vector<16xf32>
    %10 = vector.shape_cast %9 : vector<16xf32> to vector<1x16xf32>
    %cst_16 = arith.constant 1.562500e-02 : f32
    %11 = vector.broadcast %cst_16 : f32 to vector<1x16xf32>
    %12 = arith.mulf %10, %11 : vector<1x16xf32>
    %13 = arith.truncf %12 : vector<1x16xf32> to vector<1x16xbf16>
    %cst_17 = arith.constant dense<0.000000e+00> : vector<1x16xf32>
    %14 = tpu.matmul %13, %0, %cst_17 {dimension_numbers = #tpu.dot_dimension_numbers<[1], [0], [0], [1], [0, 0, 1, 1], [], []>} : vector<1x16xbf16>, vector<16x16xbf16>, vector<1x16xf32> -> vector<1x16xf32>
    %15 = arith.addf %14, %2 : vector<1x16xf32>
    %cst_18 = arith.constant dense<0.000000e+00> : vector<1x16xf32>
    %16 = tpu.matmul %13, %1, %cst_18 {dimension_numbers = #tpu.dot_dimension_numbers<[1], [0], [0], [1], [0, 0, 1, 1], [], []>} : vector<1x16xbf16>, vector<16x16xbf16>, vector<1x16xf32> -> vector<1x16xf32>
    %17 = arith.addf %16, %3 : vector<1x16xf32>
    %18 = arith.truncf %15 : vector<1x16xf32> to vector<1x16xbf16>
    %19 = arith.truncf %17 : vector<1x16xf32> to vector<1x16xbf16>
    %cst_19 = arith.constant dense<0.000000e+00> : vector<16x16xf32>
    %20 = tpu.matmul %18, %19, %cst_19 {dimension_numbers = #tpu.dot_dimension_numbers<[0], [0], [1], [1], [0, 1, 1, 1], [], []>} : vector<1x16xbf16>, vector<1x16xbf16>, vector<16x16xf32> -> vector<16x16xf32>
    %cst_20 = arith.constant dense<0xFF800000> : vector<16xf32>
    %21 = vector.multi_reduction <maximumf>, %20, %cst_20 [0] : vector<16x16xf32> to vector<16xf32>
    %22 = vector.shape_cast %21 : vector<16xf32> to vector<1x16xf32>
    %23 = vector.broadcast %22 : vector<1x16xf32> to vector<16x16xf32>
    %24 = arith.subf %20, %23 : vector<16x16xf32>
    %25 = math.exp %24 : vector<16x16xf32>
    %cst_21 = arith.constant dense<0.000000e+00> : vector<16xf32>
    %26 = vector.multi_reduction <add>, %25, %cst_21 [0] : vector<16x16xf32> to vector<16xf32>
    %27 = vector.shape_cast %26 : vector<16xf32> to vector<1x16xf32>
    %28 = vector.broadcast %27 : vector<1x16xf32> to vector<16x16xf32>
    %29 = arith.divf %25, %28 : vector<16x16xf32>
    %30 = arith.truncf %29 : vector<16x16xf32> to vector<16x16xbf16>
    %31 = arith.truncf %8 : vector<64x16xf32> to vector<64x16xbf16>
    %cst_22 = arith.constant dense<0.000000e+00> : vector<64x16xf32>
    %32 = tpu.matmul %31, %30, %cst_22 {dimension_numbers = #tpu.dot_dimension_numbers<[1], [1], [0], [0], [0, 0, 1, 0], [], []>} : vector<64x16xbf16>, vector<16x16xbf16>, vector<64x16xf32> -> vector<64x16xf32>
    %33 = arith.truncf %32 : vector<64x16xf32> to vector<64x16xbf16>
    %cst_23 = arith.constant dense<0.000000e+00> : vector<64x16xf32>
    %34 = tpu.matmul %33, %0, %cst_23 {dimension_numbers = #tpu.dot_dimension_numbers<[1], [0], [0], [1], [0, 0, 1, 1], [], []>} : vector<64x16xbf16>, vector<16x16xbf16>, vector<64x16xf32> -> vector<64x16xf32>
    %35 = vector.broadcast %2 : vector<1x16xf32> to vector<64x16xf32>
    %36 = arith.addf %34, %35 : vector<64x16xf32>
    %37 = arith.truncf %36 : vector<64x16xf32> to vector<64x16xbf16>
    %cst_24 = arith.constant dense<0.000000e+00> : vector<64x16xf32>
    %38 = tpu.matmul %33, %1, %cst_24 {dimension_numbers = #tpu.dot_dimension_numbers<[1], [0], [0], [1], [0, 0, 1, 1], [], []>} : vector<64x16xbf16>, vector<16x16xbf16>, vector<64x16xf32> -> vector<64x16xf32>
    %39 = vector.broadcast %3 : vector<1x16xf32> to vector<64x16xf32>
    %40 = arith.addf %38, %39 : vector<64x16xf32>
    %41 = arith.truncf %40 : vector<64x16xf32> to vector<64x16xbf16>
    %cst_25 = arith.constant dense<0.000000e+00> : vector<16x1024xf32>
    %42 = tpu.matmul %37, %5, %cst_25 {dimension_numbers = #tpu.dot_dimension_numbers<[0], [0], [1], [1], [0, 1, 1, 1], [], []>} : vector<64x16xbf16>, vector<64x1024xbf16>, vector<16x1024xf32> -> vector<16x1024xf32>
    %cst_26 = arith.constant dense<0.000000e+00> : vector<64x1024xf32>
    %43 = tpu.matmul %33, %4, %cst_26 {dimension_numbers = #tpu.dot_dimension_numbers<[1], [0], [0], [1], [0, 0, 1, 1], [], []>} : vector<64x16xbf16>, vector<16x1024xbf16>, vector<64x1024xf32> -> vector<64x1024xf32>
    %44 = arith.truncf %42 : vector<16x1024xf32> to vector<16x1024xbf16>
    %cst_27 = arith.constant dense<0.000000e+00> : vector<64x1024xf32>
    %45 = tpu.matmul %41, %44, %cst_27 {dimension_numbers = #tpu.dot_dimension_numbers<[1], [0], [0], [1], [0, 0, 1, 1], [], []>} : vector<64x16xbf16>, vector<16x1024xbf16>, vector<64x1024xf32> -> vector<64x1024xf32>
    %46 = arith.addf %43, %45 : vector<64x1024xf32>
    %47 = vector.broadcast %6 : vector<1x1024xf32> to vector<64x1024xf32>
    %48 = arith.addf %46, %47 : vector<64x1024xf32>
    %c0_28 = arith.constant 0 : index
    %c0_29 = arith.constant 0 : index
    %c0_30 = arith.constant 0 : index
    %49 = vector.load %arg9[%c0_28, %c0_29, %c0_30] : memref<2x64x1024xf32, #tpu.memory_space<vmem>>, vector<1x64x1024xf32>
    %50 = vector.shape_cast %49 : vector<1x64x1024xf32> to vector<64x1024xf32>
    %51 = arith.addf %48, %50 : vector<64x1024xf32>
    %c0_31 = arith.constant 0 : index
    %c0_32 = arith.constant 0 : index
    %c0_33 = arith.constant 0 : index
    %52 = vector.load %arg10[%c0_31, %c0_32, %c0_33] : memref<2x64x1024xf32, #tpu.memory_space<vmem>>, vector<1x64x1024xf32>
    %53 = vector.shape_cast %52 : vector<1x64x1024xf32> to vector<64x1024xf32>
    %54 = vector.shape_cast %51 : vector<64x1024xf32> to vector<1x64x1024xf32>
    tpu.vector_store %arg10[%c0_31, %c0_32, %c0_33], %54 {strides = array<i32>} : memref<2x64x1024xf32, #tpu.memory_space<vmem>>, vector<1x64x1024xf32>,
    %c1 = arith.constant 1 : index
    %c0_34 = arith.constant 0 : index
    %c0_35 = arith.constant 0 : index
    %55 = vector.load %arg1[%c1, %c0_34, %c0_35] : memref<2x64x16xf32, #tpu.memory_space<vmem>>, vector<1x64x16xf32>
    %56 = vector.shape_cast %55 : vector<1x64x16xf32> to vector<64x16xf32>
    %cst_36 = arith.constant dense<0.000000e+00> : vector<16xf32>
    %57 = vector.multi_reduction <add>, %56, %cst_36 [0] : vector<64x16xf32> to vector<16xf32>
    %58 = vector.shape_cast %57 : vector<16xf32> to vector<1x16xf32>
    %cst_37 = arith.constant 1.562500e-02 : f32
    %59 = vector.broadcast %cst_37 : f32 to vector<1x16xf32>
    %60 = arith.mulf %58, %59 : vector<1x16xf32>
    %61 = arith.truncf %60 : vector<1x16xf32> to vector<1x16xbf16>
    %cst_38 = arith.constant dense<0.000000e+00> : vector<1x16xf32>
    %62 = tpu.matmul %61, %0, %cst_38 {dimension_numbers = #tpu.dot_dimension_numbers<[1], [0], [0], [1], [0, 0, 1, 1], [], []>} : vector<1x16xbf16>, vector<16x16xbf16>, vector<1x16xf32> -> vector<1x16xf32>
    %63 = arith.addf %62, %2 : vector<1x16xf32>
    %cst_39 = arith.constant dense<0.000000e+00> : vector<1x16xf32>
    %64 = tpu.matmul %61, %1, %cst_39 {dimension_numbers = #tpu.dot_dimension_numbers<[1], [0], [0], [1], [0, 0, 1, 1], [], []>} : vector<1x16xbf16>, vector<16x16xbf16>, vector<1x16xf32> -> vector<1x16xf32>
    %65 = arith.addf %64, %3 : vector<1x16xf32>
    %66 = arith.truncf %63 : vector<1x16xf32> to vector<1x16xbf16>
    %67 = arith.truncf %65 : vector<1x16xf32> to vector<1x16xbf16>
    %cst_40 = arith.constant dense<0.000000e+00> : vector<16x16xf32>
    %68 = tpu.matmul %66, %67, %cst_40 {dimension_numbers = #tpu.dot_dimension_numbers<[0], [0], [1], [1], [0, 1, 1, 1], [], []>} : vector<1x16xbf16>, vector<1x16xbf16>, vector<16x16xf32> -> vector<16x16xf32>
    %cst_41 = arith.constant dense<0xFF800000> : vector<16xf32>
    %69 = vector.multi_reduction <maximumf>, %68, %cst_41 [0] : vector<16x16xf32> to vector<16xf32>
    %70 = vector.shape_cast %69 : vector<16xf32> to vector<1x16xf32>
    %71 = vector.broadcast %70 : vector<1x16xf32> to vector<16x16xf32>
    %72 = arith.subf %68, %71 : vector<16x16xf32>
    %73 = math.exp %72 : vector<16x16xf32>
    %cst_42 = arith.constant dense<0.000000e+00> : vector<16xf32>
    %74 = vector.multi_reduction <add>, %73, %cst_42 [0] : vector<16x16xf32> to vector<16xf32>
    %75 = vector.shape_cast %74 : vector<16xf32> to vector<1x16xf32>
    %76 = vector.broadcast %75 : vector<1x16xf32> to vector<16x16xf32>
    %77 = arith.divf %73, %76 : vector<16x16xf32>
    %78 = arith.truncf %77 : vector<16x16xf32> to vector<16x16xbf16>
    %79 = arith.truncf %56 : vector<64x16xf32> to vector<64x16xbf16>
    %cst_43 = arith.constant dense<0.000000e+00> : vector<64x16xf32>
    %80 = tpu.matmul %79, %78, %cst_43 {dimension_numbers = #tpu.dot_dimension_numbers<[1], [1], [0], [0], [0, 0, 1, 0], [], []>} : vector<64x16xbf16>, vector<16x16xbf16>, vector<64x16xf32> -> vector<64x16xf32>
    %81 = arith.truncf %80 : vector<64x16xf32> to vector<64x16xbf16>
    %cst_44 = arith.constant dense<0.000000e+00> : vector<64x16xf32>
    %82 = tpu.matmul %81, %0, %cst_44 {dimension_numbers = #tpu.dot_dimension_numbers<[1], [0], [0], [1], [0, 0, 1, 1], [], []>} : vector<64x16xbf16>, vector<16x16xbf16>, vector<64x16xf32> -> vector<64x16xf32>
    %83 = vector.broadcast %2 : vector<1x16xf32> to vector<64x16xf32>
    %84 = arith.addf %82, %83 : vector<64x16xf32>
    %85 = arith.truncf %84 : vector<64x16xf32> to vector<64x16xbf16>
    %cst_45 = arith.constant dense<0.000000e+00> : vector<64x16xf32>
    %86 = tpu.matmul %81, %1, %cst_45 {dimension_numbers = #tpu.dot_dimension_numbers<[1], [0], [0], [1], [0, 0, 1, 1], [], []>} : vector<64x16xbf16>, vector<16x16xbf16>, vector<64x16xf32> -> vector<64x16xf32>
    %87 = vector.broadcast %3 : vector<1x16xf32> to vector<64x16xf32>
    %88 = arith.addf %86, %87 : vector<64x16xf32>
    %89 = arith.truncf %88 : vector<64x16xf32> to vector<64x16xbf16>
    %cst_46 = arith.constant dense<0.000000e+00> : vector<16x1024xf32>
    %90 = tpu.matmul %85, %5, %cst_46 {dimension_numbers = #tpu.dot_dimension_numbers<[0], [0], [1], [1], [0, 1, 1, 1], [], []>} : vector<64x16xbf16>, vector<64x1024xbf16>, vector<16x1024xf32> -> vector<16x1024xf32>
    %cst_47 = arith.constant dense<0.000000e+00> : vector<64x1024xf32>
    %91 = tpu.matmul %81, %4, %cst_47 {dimension_numbers = #tpu.dot_dimension_numbers<[1], [0], [0], [1], [0, 0, 1, 1], [], []>} : vector<64x16xbf16>, vector<16x1024xbf16>, vector<64x1024xf32> -> vector<64x1024xf32>
    %92 = arith.truncf %90 : vector<16x1024xf32> to vector<16x1024xbf16>
    %cst_48 = arith.constant dense<0.000000e+00> : vector<64x1024xf32>
    %93 = tpu.matmul %89, %92, %cst_48 {dimension_numbers = #tpu.dot_dimension_numbers<[1], [0], [0], [1], [0, 0, 1, 1], [], []>} : vector<64x16xbf16>, vector<16x1024xbf16>, vector<64x1024xf32> -> vector<64x1024xf32>
    %94 = arith.addf %91, %93 : vector<64x1024xf32>
    %95 = vector.broadcast %6 : vector<1x1024xf32> to vector<64x1024xf32>
    %96 = arith.addf %94, %95 : vector<64x1024xf32>
    %c1_49 = arith.constant 1 : index
    %c0_50 = arith.constant 0 : index
    %c0_51 = arith.constant 0 : index
    %97 = vector.load %arg9[%c1_49, %c0_50, %c0_51] : memref<2x64x1024xf32, #tpu.memory_space<vmem>>, vector<1x64x1024xf32>
    %98 = vector.shape_cast %97 : vector<1x64x1024xf32> to vector<64x1024xf32>
    %99 = arith.addf %96, %98 : vector<64x1024xf32>
    %c1_52 = arith.constant 1 : index
    %c0_53 = arith.constant 0 : index
    %c0_54 = arith.constant 0 : index
    %100 = vector.load %arg10[%c1_52, %c0_53, %c0_54] : memref<2x64x1024xf32, #tpu.memory_space<vmem>>, vector<1x64x1024xf32>
    %101 = vector.shape_cast %100 : vector<1x64x1024xf32> to vector<64x1024xf32>
    %102 = vector.shape_cast %99 : vector<64x1024xf32> to vector<1x64x1024xf32>
    tpu.vector_store %arg10[%c1_52, %c0_53, %c0_54], %102 {strides = array<i32>} : memref<2x64x1024xf32, #tpu.memory_space<vmem>>, vector<1x64x1024xf32>,
    return
  }
  func.func @transform_0(%arg0: i32) -> (i32, i32, i32) {
    %c0_i32 = arith.constant 0 : i32
    %c0_i32_0 = arith.constant 0 : i32
    %c0_i32_1 = arith.constant 0 : i32
    %c0_i32_2 = arith.constant 0 : i32
    return %c0_i32, %c0_i32_0, %c0_i32_1 : i32, i32, i32
  }
  func.func @transform_1(%arg0: i32) -> (i32, i32) {
    %c0_i32 = arith.constant 0 : i32
    %c0_i32_0 = arith.constant 0 : i32
    %c0_i32_1 = arith.constant 0 : i32
    return %c0_i32, %c0_i32_0 : i32, i32
  }
  func.func @transform_2(%arg0: i32) -> (i32, i32) {
    %c0_i32 = arith.constant 0 : i32
    %c0_i32_0 = arith.constant 0 : i32
    %c0_i32_1 = arith.constant 0 : i32
    return %c0_i32, %c0_i32_0 : i32, i32
  }
  func.func @transform_3(%arg0: i32) -> (i32, i32) {
    %c0_i32 = arith.constant 0 : i32
    %c0_i32_0 = arith.constant 0 : i32
    %c0_i32_1 = arith.constant 0 : i32
    return %c0_i32, %c0_i32_0 : i32, i32
  }
  func.func @transform_4(%arg0: i32) -> (i32, i32) {
    %c0_i32 = arith.constant 0 : i32
    %c0_i32_0 = arith.constant 0 : i32
    %c0_i32_1 = arith.constant 0 : i32
    return %c0_i32, %c0_i32_0 : i32, i32
  }
  func.func @transform_5(%arg0: i32) -> (i32, i32) {
    %c0_i32 = arith.constant 0 : i32
    %c0_i32_0 = arith.constant 0 : i32
    %c0_i32_1 = arith.constant 0 : i32
    return %c0_i32, %c0_i32_0 : i32, i32
  }
  func.func @transform_6(%arg0: i32) -> (i32, i32) {
    %c0_i32 = arith.constant 0 : i32
    %c0_i32_0 = arith.constant 0 : i32
    %c0_i32_1 = arith.constant 0 : i32
    return %c0_i32, %c0_i32_0 : i32, i32
  }
  func.func @transform_7(%arg0: i32) -> (i32, i32) {
    %c0_i32 = arith.constant 0 : i32
    %c0_i32_0 = arith.constant 0 : i32
    %c0_i32_1 = arith.constant 0 : i32
    return %c0_i32, %c0_i32_0 : i32, i32
  }
  func.func @transform_8(%arg0: i32) -> (i32, i32, i32) {
    %c0_i32 = arith.constant 0 : i32
    %c0_i32_0 = arith.constant 0 : i32
    %c0_i32_1 = arith.constant 0 : i32
    %c0_i32_2 = arith.constant 0 : i32
    return %c0_i32, %c0_i32_0, %c0_i32_1 : i32, i32, i32
  }
  func.func @transform_9(%arg0: i32) -> (i32, i32, i32) {
    %c0_i32 = arith.constant 0 : i32
    %c0_i32_0 = arith.constant 0 : i32
    %c0_i32_1 = arith.constant 0 : i32
    %c0_i32_2 = arith.constant 0 : i32
    return %c0_i32, %c0_i32_0, %c0_i32_1 : i32, i32, i32
  }
}

</mosaic_0001>

<bundles_post_ra>
// kernel: rafcn_forward.3
= control target key start
LH: loop header
LB: loop body
LE: loop exit
PB: predicated region body
PF: predicated region fallthrough
CT: control target
= control target key end

     0   :  { %13 = vsyncpa [#allocation3], 0  ;;  %s1764_s0 = inlined_call_operand.hbm [shape: f32[2,4,32], index: 0, kind: input, shape index: {}]   ;;  %s1765_s1 = inlined_call_operand.vmem [shape: bf16[32,32], index: 1, kind: input, shape index: {}]   ;;  %s1766_s2 = inlined_call_operand.hbm [shape: f32[1,32], index: 2, kind: input, shape index: {}]   ;;  %s1767_s3 = inlined_call_operand.vmem [shape: bf16[32,32], index: 3, kind: input, shape index: {}]   ;;  %s1768_s4 = inlined_call_operand.hbm [shape: f32[1,32], index: 4, kind: input, shape index: {}]   ;;  %s1769_s5 = inlined_call_operand.vmem [shape: bf16[32,128], index: 5, kind: input, shape index: {}]   ;;  %s1770_s6 = inlined_call_operand.vmem [shape: bf16[4,128], index: 6, kind: input, shape index: {}]   ;;  %s1771_s7 = inlined_call_operand.vmem [shape: f32[1,128], index: 7, kind: input, shape index: {}]   ;;  %s1772_s8 = inlined_call_operand.vmem [shape: f32[2,4,128], index: 8, kind: output, shape index: {}]  }
   0x1   :  { %14 = vsyncpa [#allocation5], 0  ;;  %s1492_s27 = smov [#allocation4]   ;;  %s1493_s29 = smov [#allocation2]  }
   0x2   :  { %s35_s28 = sshll.u32 %s1492_s27, 4  ;;  %s20_s30 = sshll.u32 %s1493_s29, 4  ;;  %s36_s28 = int_to_ptr.vmem [resolvable:$true] %s35_s28  ;;  %s21_s30 = int_to_ptr.vmem [resolvable:$true] %s20_s30 }
   0x3   :  { %s1436_s9 = scalar_lea.vmem %s36_s28, 16  ;;  %s1440_s10 = scalar_lea.vmem %s36_s28, 32 }
   0x4   :  { %p1437_p0 = scmp.ne.s32.totalorder %s36_s28, %s1436_s9  ;;  %p1441_p1 = scmp.lt.s32.totalorder %s36_s28, %s36_s28 }
   0x5   :  { %p1442_p2 = scmp.lt.s32.totalorder %s1440_s10, %s1436_s9 }
   0x7   :  { %p1443_p3 = por %p1442_p2, %p1441_p1 }
   0x9   :  { %p1444_p4 = pnand %p1443_p3, %p1437_p0 }
   0xb   :  { %1447 = shalt.err (!%p1444_p4)
}
   0xc   :  { %38 = dma.hbm_to_vmem [thread:$0]  %s1766_s2, 16, %s36_s28, [#allocation5]  }
   0xd   :  { %s1456_s13 = scalar_lea.vmem %s21_s30, 128  ;;  %p1461_p6 = scmp.lt.s32.totalorder %s21_s30, %s21_s30 }
   0xe   :  { %p1457_p5 = scmp.ne.s32.totalorder %s21_s30, %s1456_s13  ;;  %p1462_p7 = scmp.lt.s32.totalorder %s1456_s13, %s1456_s13 }
  0x10   :  { %p1463_p8 = por %p1462_p7, %p1461_p6 }
  0x12   :  { %p1464_p9 = pnand %p1463_p8, %p1457_p5 }
  0x14   :  { %1467 = shalt.err (!%p1464_p9)
}
  0x15   :  { %s1494_s14 = smov 64   ;;  %s1495_s15 = smov 4  }
  0x16   :  { %26 = dma.hbm_to_vmem [thread:$0]  %s1764_s0, 128, %s21_s30, [#allocation3], %s1494_s14, %s1494_s14, %s1495_s15  }
  0x17   :  { %s1496_s18 = smov [#allocation6]  }
  0x18   :  { %s47_s19 = sshll.u32 %s1496_s18, 4  ;;  %s48_s19 = int_to_ptr.vmem [resolvable:$true] %s47_s19 }
  0x19   :  { %s1476_s20 = scalar_lea.vmem %s48_s19, 16  ;;  %s1480_s21 = scalar_lea.vmem %s48_s19, 32 }
  0x1a   :  { %p1477_p10 = scmp.ne.s32.totalorder %s48_s19, %s1476_s20  ;;  %p1481_p11 = scmp.lt.s32.totalorder %s48_s19, %s48_s19 }
  0x1b   :  { %p1482_p12 = scmp.lt.s32.totalorder %s1480_s21, %s1476_s20 }
  0x1d   :  { %p1483_p13 = por %p1482_p12, %p1481_p11 }
  0x1f   :  { %p1484_p0 = pnand %p1483_p13, %p1477_p10 }
  0x21   :  { %1487 = shalt.err (!%p1484_p0)
}
  0x22   :  { %50 = dma.hbm_to_vmem [thread:$0]  %s1768_s4, 16, %s48_s19, [#allocation5]  }
  0x23   :  { %1488 = dma.done.wait [#allocation3], 128  }
  0x24   :  { %1489 = vsyncadd [#allocation3], 4294967168 }
  0x25   :  { %1490 = dma.done.wait [#allocation5], 32  }
  0x26   :  { %1491 = vsyncadd [#allocation5], 4294967264  ;;  %v1497_v0 = vmov 0.0   ;;  %vm1498_vm0 = vmmov 0   ;;  %v1563_v1 = vld [vmem:[%s1765_s1 + $0x8] sm:$0xff]   ;;  %vm84_vm1 = vcmask 257024  }
  0x27   :  { %1256 = vmatprep.subr.bf16.mxu0 %v1497_v0  ;;  %1260 = vmatprep.mubr.msk.bf16.mxu0 %vm1498_vm0, %v1497_v0  ;;  %v1569_v2 = vld [vmem:[%s1765_s1] sm:$0xff]   ;;  %v1579_v5 = vld [vmem:[%s1767_s3 + $0x8] sm:$0xff]   ;;  %vm106_vm2 = vcmask 261120   ;;  %vm227_vm3 = vcmask 1040384   ;;  %v1499_v22 = vmov 0   ;;  %vm220_vm4 = vcmask 7168  }
  0x28   :  { %1264 = vmatprep.subr.bf16.mxu1 %v1497_v0  ;;  %1268 = vmatprep.mubr.msk.bf16.mxu1 %vm1498_vm0, %v1497_v0  ;;  %v1571_v3 = vld [vmem:[#allocation2] sm:$0xf]  ;;  %v1595_v15 = vld [vmem:[#allocation4] sm:$0x1]  ;;  %v1597_v16 = vld [vmem:[#allocation6] sm:$0x1] }
  0x29   :  { %1257 = vmatpush3.bf16.msra.mxu0 %v1563_v1  ;;  %v85_v4 = vsel %vm84_vm1, %v1571_v3, 0.0  ;;  %v1584_v7 = vld [vmem:[%s1767_s3] sm:$0xff]   ;;  %1265 = vmatpush3.bf16.msra.mxu1 %v1579_v5  ;;  %v1601_v23 = vsel %vm227_vm3, 65535, %v1499_v22  ;;  %vm498_vm5 = vcmask 1041408   ;;  %vm491_vm6 = vcmask 31744  }
  0x2a   :  { %1258 = vmatprep.subr.bf16.mxu0 %v1497_v0  ;;  %v86_v6 = vrot.slane %v85_v4, 4  ;;  %1266 = vmatprep.subr.bf16.mxu1 %v1497_v0 }
  0x2c   :  { %v87_v8 = vadd.f32 %v86_v6, %v85_v4 }
  0x2d   :  { %1259 = vmatpush3.bf16.msra.mxu0 %v1569_v2  ;;  %1267 = vmatpush3.bf16.msra.mxu1 %v1584_v7 }
  0x2e   :  { %v88_v9 = vrot.slane %v87_v8, 2  ;;  %1278 = vmatprep.subr.bf16.mxu1 %v1497_v0 }
  0x30   :  { %v89_v10 = vadd.f32 %v88_v9, %v87_v8 }
  0x32   :  { %v90_v11 = vrot.slane %v89_v10, 1 }
  0x34   :  { %v91_v12 = vadd.f32 %v90_v11, %v89_v10 }
  0x36   :  { %v92_v13 = vmul.f32 0.25, %v91_v12 }
  0x38   :  { %v93_v14 = vpack.c.bf16 %v92_v13, %v92_v13 }
  0x3a   :  { %1261 = vmatmul.mubr.msk.bf16.vlgmr.msra.gmra.mxu0 %vm106_vm2, %v93_v14  ;;  %1269 = vmatmul.mubr.msk.bf16.vlgmr.msra.gmra.mxu1 %vm106_vm2, %v93_v14 }
  0x3b   :  { %1282 = vmatprep.mubr.msk.bf16.mxu1 %vm1498_vm0, %v1497_v0 }
  0xfa   :  { %v144_v17 = vpop.f32.mrf.mxu0  ;;  %v196_v18 = vpop.f32.mrf.mxu1 }
  0xfb   :  { %v145_v19 = vadd.f32 %v144_v17, %v1595_v15  ;;  %v197_v20 = vadd.f32 %v196_v18, %v1597_v16 }
  0xfc   :  { %v1262_v21 = vpop.f32.mrf.mxu0  ;;  %v1270_v24 = vpop.f32.mrf.mxu1 }
  0xfd   :  { %v202_v25 = vpack.c.bf16 %v145_v19, %v145_v19  ;;  %v203_v26 = vpack.c.bf16 %v197_v20, %v197_v20 }
  0xfe   :  { %v147_v27 = vpop.f32.mrf.mxu0  ;;  %v199_v28 = vpop.f32.mrf.mxu1 }
  0xff   :  { %204 = vxpose.xlu0.c.b16.start.end [1/1] (short) (narrow) %v202_v25, 32  ;;  %v231_v29 = vand.u32 %v1601_v23, %v203_v26 }
 0x100   :  { %v1263_v30 = vpop.f32.mrf.mxu0  ;;  %v1271_v31 = vpop.f32.mrf.mxu1 }
 0x101   :  { %1272 = vmatprep.subr.bf16.mxu0 %v231_v29  ;;  %v327_v30 = vpack.c.bf16 %v1571_v3, %v1571_v3  ;;  %v1640_v3 = vld [vmem:[%s1770_s6] sm:$0x3] }
 0x102   :  { %1273 = vmatpush3.bf16.msra.mxu0 %v231_v29 }
 0x103   :  { %1286 = vmatprep.subr.bf16.mxu0 %v1497_v0 }
 0x161   :  { %v212_v32 = vpop.trf.xlu0 }
 0x162   :  { %1274 = vmatprep.mubr.msk.bf16.mxu0 %vm220_vm4, %v212_v32 }
 0x165   :  { %v213_v33 = vpop.trf.xlu0 }
 0x166   :  { %1275 = vmatmul.mubr.msk.bf16.vlgmr.msra.gmra.mxu0 %vm220_vm4, %v213_v33 }
 0x167   :  { %1287 = vmatpush3.bf16.msra.mxu0 %v1563_v1  ;;  %1290 = vmatprep.mubr.msk.bf16.mxu0 %vm1498_vm0, %v1497_v0 }
 0x168   :  { %1288 = vmatprep.subr.bf16.mxu0 %v1497_v0 }
 0x16b   :  { %1289 = vmatpush3.bf16.msra.mxu0 %v1569_v2 }
 0x16c   :  { %1294 = vmatprep.subr.bf16.mxu0 %v1497_v0 }
 0x226   :  { %v1276_v34 = vpop.f32.mrf.mxu0 }
 0x227   :  { %v284_v39 = vsel %vm106_vm2, %v1276_v34, -inf }
 0x228   :  { %v267_v35 = vpop.f32.mrf.mxu0 }
 0x229   :  { %v282_v40 = vsel %vm106_vm2, %v267_v35, -inf }
 0x22a   :  { %v1277_v36 = vpop.f32.mrf.mxu0 }
 0x22b   :  { %v285_v37 = vsel %vm106_vm2, %v1277_v36, -inf }
 0x22c   :  { %v270_v38 = vpop.f32.mrf.mxu0  ;;  %v287_v42 = vmax.f32 %v284_v39, %v285_v37  ;;  %v379_v37 = vlaneseq }
 0x22d   :  { %v283_v41 = vsel %vm106_vm2, %v270_v38, -inf }
 0x22e   :  { %v286_v43 = vmax.f32 %v282_v40, %v283_v41 }
 0x230   :  { %v288_v44 = vmax.f32 %v286_v43, %v287_v42 }
 0x232   :  { %v289_v45 = vrot.slane %v288_v44, 4 }
 0x234   :  { %v290_v46 = vmax.f32 %v288_v44, %v289_v45 }
 0x236   :  { %v291_v47 = vrot.slane %v290_v46, 2 }
 0x238   :  { %v292_v48 = vmax.f32 %v290_v46, %v291_v47 }
 0x23a   :  { %v293_v49 = vrot.slane %v292_v48, 1 }
 0x23c   :  { %v294_v50 = vmax.f32 %v292_v48, %v293_v49 }
 0x23e   :  { %v295_v51 = vsub.f32 %v267_v35, %v294_v50  ;;  %v296_v52 = vsub.f32 %v270_v38, %v294_v50  ;;  %v297_v53 = vsub.f32 %v1276_v34, %v294_v50  ;;  %v298_v54 = vsub.f32 %v1277_v36, %v294_v50 }
 0x23f   :  { %v1646_v36 = vsel %vm498_vm5, %v1640_v3, 0  ;;  %v380_v38 = vshrl.u32 %v379_v37, 7 }
 0x240   :  { %v299_v55 = vmul.f32 1.442695, %v295_v51  ;;  %v301_v56 = vmul.f32 1.442695, %v296_v52  ;;  %v303_v57 = vmul.f32 1.442695, %v297_v53 }
 0x241   :  { %v305_v58 = vmul.f32 1.442695, %v298_v54  ;;  %v381_v39 = vsub.s32 0, %v380_v38  ;;  %v1658_v52 = vld [vmem:[%s1769_s5 + $0x8] sm:$0xff]   ;;  %v1665_v54 = vld [vmem:[%s1769_s5] sm:$0xff]  }
 0x242   :  { %1408 = vpow2.f32 %v299_v55  ;;  %v1679_v55 = vld [vmem:[#allocation2 + $0x4] sm:$0xf] }
 0x243   :  { %1410 = vpow2.f32 %v301_v56  ;;  %v1651_v40 = vrot.slane %v1595_v15, %v381_v39  ;;  %v658_v56 = vsel %vm84_vm1, %v1679_v55, 0.0 }
 0x244   :  { %1412 = vpow2.f32 %v303_v57  ;;  %v659_v57 = vrot.slane %v658_v56, 4 }
 0x245   :  { %1414 = vpow2.f32 %v305_v58 }
 0x246   :  { %v660_v58 = vadd.f32 %v659_v57, %v658_v56 }
 0x24f   :  { %v1409_v59 = vpop.eup %1408 }
 0x250   :  { %v1411_v60 = vpop.eup %1410  ;;  %v307_v61 = vsel %vm106_vm2, %v1409_v59, 0.0 }
 0x251   :  { %v1413_v62 = vpop.eup %1412  ;;  %v308_v63 = vsel %vm106_vm2, %v1411_v60, 0.0 }
 0x252   :  { %v1415_v4 = vpop.eup %1414  ;;  %v309_v6 = vadd.f32 %v308_v63, %v307_v61  ;;  %v310_v8 = vsel %vm106_vm2, %v1413_v62, 0.0 }
 0x253   :  { %v312_v10 = vsel %vm106_vm2, %v1415_v4, 0.0 }
 0x254   :  { %v311_v9 = vadd.f32 %v310_v8, %v309_v6 }
 0x256   :  { %v313_v11 = vadd.f32 %v312_v10, %v311_v9  ;;  %v1687_v9 = vrot.slane %v1597_v16, %v381_v39 }
 0x258   :  { %v314_v12 = vrot.slane %v313_v11, 4 }
 0x25a   :  { %v315_v13 = vadd.f32 %v314_v12, %v313_v11 }
 0x25c   :  { %v316_v14 = vrot.slane %v315_v13, 2 }
 0x25e   :  { %v317_v17 = vadd.f32 %v316_v14, %v315_v13 }
 0x260   :  { %v318_v18 = vrot.slane %v317_v17, 1 }
 0x262   :  { %v319_v19 = vadd.f32 %v318_v18, %v317_v17 }
 0x264   :  { %1416 = vrcp.f32 %v319_v19 }
 0x271   :  { %v1417_v20 = vpop.eup %1416 }
 0x272   :  { %v323_v21 = vmul.f32 %v1417_v20, %v1413_v62  ;;  %v324_v22 = vmul.f32 %v1417_v20, %v1415_v4  ;;  %v321_v26 = vmul.f32 %v1417_v20, %v1409_v59  ;;  %v322_v27 = vmul.f32 %v1417_v20, %v1411_v60 }
 0x273   :  { %v661_v59 = vrot.slane %v660_v58, 2 }
 0x274   :  { %v326_v24 = vpack.c.bf16 %v324_v22, %v323_v21  ;;  %v325_v28 = vpack.c.bf16 %v322_v27, %v321_v26 }
 0x275   :  { %v662_v60 = vadd.f32 %v661_v59, %v660_v58 }
 0x276   :  { %v335_v25 = vsel %vm106_vm2, %v326_v24, 0  ;;  %v332_v29 = vsel %vm106_vm2, %v325_v28, 0 }
 0x277   :  { %1279 = vmatpush3.bf16.xpose.msra.mxu1 %v335_v25  ;;  %v663_v61 = vrot.slane %v662_v60, 1 }
 0x278   :  { %1280 = vmatprep.subr.bf16.mxu1 %v1497_v0 }
 0x279   :  { %v664_v62 = vadd.f32 %v663_v61, %v662_v60 }
 0x27b   :  { %v665_v63 = vmul.f32 0.25, %v664_v62 }
 0x27d   :  { %v666_v4 = vpack.c.bf16 %v665_v63, %v665_v63 }
 0x27f   :  { %1281 = vmatpush3.bf16.xpose.msra.mxu1 %v332_v29 }
 0x280   :  { %1392 = vmatprep.subr.msk.bf16.mxu1 %vm498_vm5, %v1640_v3 }
 0x286   :  { %1283 = vmatmul.mubr.msk.bf16.vlgmr.msra.gmra.mxu1 %vm106_vm2, %v327_v30  ;;  %v1705_v30 = vld [vmem:[%s1771_s7] ss:$0 sm:$0xff] }
 0x287   :  { %1303 = vmatpush3.bf16.msra.mxu1 %v1646_v36 }
 0x288   :  { %1316 = vmatprep.subr.bf16.mxu1 %v1497_v0 }
 0x346   :  { %v371_v31 = vpop.f32.mrf.mxu1 }
 0x347   :  { %v377_v32 = vpack.c.bf16 %v371_v31, %v371_v31 }
 0x348   :  { %v1284_v33 = vpop.f32.mrf.mxu1 }
 0x349   :  { %1291 = vmatmul.mubr.msk.bf16.vlgmr.msra.gmra.mxu0 %vm106_vm2, %v377_v32 }
 0x34a   :  { %v374_v34 = vpop.f32.mrf.mxu1  ;;  %1295 = vmatpush3.bf16.msra.mxu0 %v1579_v5  ;;  %1298 = vmatprep.mubr.msk.bf16.mxu0 %vm1498_vm0, %v1497_v0 }
 0x34b   :  { %1296 = vmatprep.subr.bf16.mxu0 %v1497_v0 }
 0x34c   :  { %v1285_v35 = vpop.f32.mrf.mxu1 }
 0x34e   :  { %1297 = vmatpush3.bf16.msra.mxu0 %v1584_v7 }
 0x34f   :  { %1308 = vmatprep.subr.bf16.mxu0 %v1497_v0 }
 0x351   :  { %1299 = vmatmul.mubr.msk.bf16.vlgmr.msra.gmra.mxu0 %vm106_vm2, %v377_v32 }
 0x352   :  { %1312 = vmatprep.mubr.msk.bf16.mxu0 %vm1498_vm0, %v1497_v0 }
 0x409   :  { %v421_v41 = vpop.f32.mrf.mxu0 }
 0x40a   :  { %v422_v42 = vadd.f32 %v421_v41, %v1651_v40 }
 0x40b   :  { %v1292_v43 = vpop.f32.mrf.mxu0 }
 0x40c   :  { %v427_v44 = vpack.c.bf16 %v422_v42, %v422_v42 }
 0x40d   :  { %v424_v45 = vpop.f32.mrf.mxu0 }
 0x40e   :  { %475 = vxpose.xlu0.c.b16.start.end [1/1] (short) (narrow) %v427_v44, 32 }
 0x40f   :  { %v1293_v46 = vpop.f32.mrf.mxu0 }
 0x411   :  { %v468_v47 = vpop.f32.mrf.mxu0 }
 0x412   :  { %v469_v13 = vadd.f32 %v468_v47, %v1687_v9 }
 0x413   :  { %v1300_v48 = vpop.f32.mrf.mxu0 }
 0x414   :  { %v474_v19 = vpack.c.bf16 %v469_v13, %v469_v13 }
 0x415   :  { %v471_v49 = vpop.f32.mrf.mxu0 }
 0x417   :  { %v1301_v50 = vpop.f32.mrf.mxu0 }
 0x470   :  { %v483_v51 = vpop.trf.xlu0 }
 0x471   :  { %1304 = vmatprep.mubr.msk.bf16.mxu1 %vm491_vm6, %v483_v51 }
 0x474   :  { %v484_v53 = vpop.trf.xlu0 }
 0x475   :  { %1305 = vmatmul.mubr.msk.bf16.vlgmr.msra.gmra.mxu1 %vm491_vm6, %v484_v53 }
 0x476   :  { %1317 = vmatpush3.bf16.msra.mxu1 %v1658_v52  ;;  %1320 = vmatprep.mubr.msk.bf16.mxu1 %vm1498_vm0, %v1497_v0 }
 0x477   :  { %1318 = vmatprep.subr.bf16.mxu1 %v1497_v0 }
 0x47a   :  { %1319 = vmatpush3.bf16.msra.mxu1 %v1665_v54 }
 0x47b   :  { %1332 = vmatprep.subr.bf16.mxu1 %v1497_v0 }
 0x47d   :  { %1321 = vmatmul.mubr.msk.bf16.vlgmr.msra.gmra.mxu1 %vm106_vm2, %v377_v32 }
 0x47e   :  { %1333 = vmatpush3.bf16.msra.mxu1 %v1579_v5  ;;  %1336 = vmatprep.mubr.msk.bf16.mxu1 %vm1498_vm0, %v1497_v0 }
 0x47f   :  { %1334 = vmatprep.subr.bf16.mxu1 %v1497_v0 }
 0x482   :  { %1335 = vmatpush3.bf16.msra.mxu1 %v1584_v7 }
 0x483   :  { %1346 = vmatprep.subr.bf16.mxu1 %v1497_v0 }
 0x485   :  { %1337 = vmatmul.mubr.msk.bf16.vlgmr.msra.gmra.mxu1 %vm106_vm2, %v666_v4 }
 0x486   :  { %1350 = vmatprep.mubr.msk.bf16.mxu1 %vm1498_vm0, %v1497_v0 }
 0x535   :  { %v1306_v6 = vpop.f32.mrf.mxu1 }
 0x537   :  { %v536_v8 = vpop.f32.mrf.mxu1 }
 0x539   :  { %v1307_v10 = vpop.f32.mrf.mxu1 }
 0x53a   :  { %v552_v11 = vpack.c.bf16 %v1307_v10, %v1306_v6 }
 0x53b   :  { %v539_v12 = vpop.f32.mrf.mxu1 }
 0x53c   :  { %1309 = vmatpush3.bf16.msra.mxu0 %v552_v11  ;;  %v551_v17 = vpack.c.bf16 %v539_v12, %v536_v8 }
 0x53d   :  { %v642_v14 = vpop.f32.mrf.mxu1  ;;  %1310 = vmatprep.subr.bf16.mxu0 %v1497_v0 }
 0x53f   :  { %v1322_v18 = vpop.f32.mrf.mxu1 }
 0x540   :  { %1311 = vmatpush3.bf16.msra.mxu0 %v551_v17 }
 0x541   :  { %v645_v20 = vpop.f32.mrf.mxu1  ;;  %1324 = vmatprep.subr.bf16.mxu0 %v1497_v0 }
 0x543   :  { %1313 = vmatmul.mubr.msk.bf16.vlgmr.msra.gmra.mxu0 %vm106_vm2, %v474_v19  ;;  %v1323_v21 = vpop.f32.mrf.mxu1 }
 0x544   :  { %1325 = vmatpush3.bf16.msra.mxu0 %v1563_v1  ;;  %1328 = vmatprep.mubr.msk.bf16.mxu0 %vm1498_vm0, %v1497_v0 }
 0x545   :  { %1326 = vmatprep.subr.bf16.mxu0 %v1497_v0  ;;  %v744_v22 = vpop.f32.mrf.mxu1 }
 0x546   :  { %v745_v24 = vadd.f32 %v744_v22, %v1597_v16 }
 0x547   :  { %v1338_v25 = vpop.f32.mrf.mxu1 }
 0x548   :  { %1327 = vmatpush3.bf16.msra.mxu0 %v1569_v2  ;;  %v751_v26 = vpack.c.bf16 %v745_v24, %v745_v24 }
 0x549   :  { %v747_v27 = vpop.f32.mrf.mxu1 }
 0x54a   :  { %v775_v28 = vand.u32 %v751_v26, %v1601_v23 }
 0x54b   :  { %1329 = vmatmul.mubr.msk.bf16.vlgmr.msra.gmra.mxu0 %vm106_vm2, %v666_v4  ;;  %v1339_v29 = vpop.f32.mrf.mxu1 }
 0x54c   :  { %1340 = vmatprep.subr.bf16.mxu0 %v775_v28 }
 0x54d   :  { %1341 = vmatpush3.bf16.msra.mxu0 %v775_v28 }
 0x54e   :  { %1354 = vmatprep.subr.bf16.mxu0 %v1497_v0 }
 0x603   :  { %v590_v31 = vpop.f32.mrf.mxu0 }
 0x604   :  { %v643_v32 = vadd.f32 %v642_v14, %v590_v31 }
 0x605   :  { %v1314_v33 = vpop.f32.mrf.mxu0 }
 0x606   :  { %v654_v16 = vadd.f32 %v1705_v30, %v643_v32 }
 0x607   :  { %v593_v34 = vpop.f32.mrf.mxu0 }
 0x608   :  { %655 = vst [vmem:[%s1772_s8] sm:$0xf] %v654_v16 }
 0x609   :  { %v1315_v23 = vpop.f32.mrf.mxu0 }
 0x60b   :  { %v704_v35 = vpop.f32.mrf.mxu0 }
 0x60c   :  { %v705_v37 = vadd.f32 %v704_v35, %v1595_v15 }
 0x60d   :  { %v1330_v38 = vpop.f32.mrf.mxu0 }
 0x60e   :  { %v750_v39 = vpack.c.bf16 %v705_v37, %v705_v37 }
 0x60f   :  { %v707_v41 = vpop.f32.mrf.mxu0 }
 0x610   :  { %752 = vxpose.xlu1.c.b16.start.end [1/1] (short) (narrow) %v750_v39, 32 }
 0x611   :  { %v1331_v42 = vpop.f32.mrf.mxu0 }
 0x672   :  { %v760_v43 = vpop.trf.xlu1 }
 0x673   :  { %1342 = vmatprep.mubr.msk.bf16.mxu0 %vm220_vm4, %v760_v43  ;;  %v871_v43 = vpack.c.bf16 %v1679_v55, %v1679_v55 }
 0x676   :  { %v761_v44 = vpop.trf.xlu1 }
 0x677   :  { %1343 = vmatmul.mubr.msk.bf16.vlgmr.msra.gmra.mxu0 %vm220_vm4, %v761_v44 }
 0x678   :  { %1355 = vmatpush3.bf16.msra.mxu0 %v1563_v1  ;;  %1358 = vmatprep.mubr.msk.bf16.mxu0 %vm1498_vm0, %v1497_v0 }
 0x679   :  { %1356 = vmatprep.subr.bf16.mxu0 %v1497_v0 }
 0x67c   :  { %1357 = vmatpush3.bf16.msra.mxu0 %v1569_v2 }
 0x67d   :  { %1362 = vmatprep.subr.bf16.mxu0 %v1497_v0 }
 0x737   :  { %v1344_v15 = vpop.f32.mrf.mxu0 }
 0x738   :  { %v828_v49 = vsel %vm106_vm2, %v1344_v15, -inf }
 0x739   :  { %v811_v45 = vpop.f32.mrf.mxu0 }
 0x73a   :  { %v826_v50 = vsel %vm106_vm2, %v811_v45, -inf }
 0x73b   :  { %v1345_v46 = vpop.f32.mrf.mxu0 }
 0x73c   :  { %v829_v47 = vsel %vm106_vm2, %v1345_v46, -inf }
 0x73d   :  { %v814_v48 = vpop.f32.mrf.mxu0  ;;  %v831_v51 = vmax.f32 %v828_v49, %v829_v47 }
 0x73e   :  { %v827_v1 = vsel %vm106_vm2, %v814_v48, -inf }
 0x73f   :  { %v830_v53 = vmax.f32 %v826_v50, %v827_v1 }
 0x741   :  { %v832_v56 = vmax.f32 %v830_v53, %v831_v51 }
 0x743   :  { %v833_v57 = vrot.slane %v832_v56, 4 }
 0x745   :  { %v834_v58 = vmax.f32 %v832_v56, %v833_v57 }
 0x747   :  { %v835_v2 = vrot.slane %v834_v58, 2 }
 0x749   :  { %v836_v59 = vmax.f32 %v834_v58, %v835_v2 }
 0x74b   :  { %v837_v60 = vrot.slane %v836_v59, 1 }
 0x74d   :  { %v838_v61 = vmax.f32 %v836_v59, %v837_v60 }
 0x74f   :  { %v839_v62 = vsub.f32 %v811_v45, %v838_v61  ;;  %v840_v63 = vsub.f32 %v814_v48, %v838_v61  ;;  %v841_v4 = vsub.f32 %v1344_v15, %v838_v61  ;;  %v842_v6 = vsub.f32 %v1345_v46, %v838_v61 }
 0x751   :  { %v843_v8 = vmul.f32 1.442695, %v839_v62  ;;  %v845_v10 = vmul.f32 1.442695, %v840_v63  ;;  %v847_v11 = vmul.f32 1.442695, %v841_v4 }
 0x752   :  { %v849_v12 = vmul.f32 1.442695, %v842_v6 }
 0x753   :  { %1418 = vpow2.f32 %v843_v8 }
 0x754   :  { %1420 = vpow2.f32 %v845_v10 }
 0x755   :  { %1422 = vpow2.f32 %v847_v11 }
 0x756   :  { %1424 = vpow2.f32 %v849_v12 }
 0x760   :  { %v1419_v13 = vpop.eup %1418 }
 0x761   :  { %v1421_v14 = vpop.eup %1420  ;;  %v851_v17 = vsel %vm106_vm2, %v1419_v13, 0.0 }
 0x762   :  { %v1423_v18 = vpop.eup %1422  ;;  %v852_v19 = vsel %vm106_vm2, %v1421_v14, 0.0 }
 0x763   :  { %v1425_v20 = vpop.eup %1424  ;;  %v853_v21 = vadd.f32 %v852_v19, %v851_v17  ;;  %v854_v22 = vsel %vm106_vm2, %v1423_v18, 0.0 }
 0x764   :  { %v856_v25 = vsel %vm106_vm2, %v1425_v20, 0.0 }
 0x765   :  { %v855_v24 = vadd.f32 %v854_v22, %v853_v21 }
 0x767   :  { %v857_v26 = vadd.f32 %v856_v25, %v855_v24 }
 0x769   :  { %v858_v27 = vrot.slane %v857_v26, 4 }
 0x76b   :  { %v859_v28 = vadd.f32 %v858_v27, %v857_v26 }
 0x76d   :  { %v860_v29 = vrot.slane %v859_v28, 2 }
 0x76f   :  { %v861_v31 = vadd.f32 %v860_v29, %v859_v28 }
 0x771   :  { %v862_v32 = vrot.slane %v861_v31, 1 }
 0x773   :  { %v863_v33 = vadd.f32 %v862_v32, %v861_v31 }
 0x775   :  { %1426 = vrcp.f32 %v863_v33 }
 0x782   :  { %v1427_v16 = vpop.eup %1426 }
 0x783   :  { %v867_v34 = vmul.f32 %v1427_v16, %v1423_v18  ;;  %v868_v23 = vmul.f32 %v1427_v16, %v1425_v20  ;;  %v865_v38 = vmul.f32 %v1427_v16, %v1419_v13  ;;  %v866_v39 = vmul.f32 %v1427_v16, %v1421_v14 }
 0x785   :  { %v870_v35 = vpack.c.bf16 %v868_v23, %v867_v34  ;;  %v869_v41 = vpack.c.bf16 %v866_v39, %v865_v38 }
 0x787   :  { %v879_v37 = vsel %vm106_vm2, %v870_v35, 0  ;;  %v876_v42 = vsel %vm106_vm2, %v869_v41, 0 }
 0x788   :  { %1347 = vmatpush3.bf16.xpose.msra.mxu1 %v879_v37 }
 0x789   :  { %1348 = vmatprep.subr.bf16.mxu1 %v1497_v0 }
 0x790   :  { %1349 = vmatpush3.bf16.xpose.msra.mxu1 %v876_v42 }
 0x791   :  { %1393 = vmatprep.subr.msk.bf16.mxu1 %vm498_vm5, %v1640_v3 }
 0x797   :  { %1351 = vmatmul.mubr.msk.bf16.vlgmr.msra.gmra.mxu1 %vm106_vm2, %v871_v43 }
 0x798   :  { %1371 = vmatpush3.bf16.msra.mxu1 %v1646_v36 }
 0x799   :  { %1384 = vmatprep.subr.bf16.mxu1 %v1497_v0 }
 0x857   :  { %v915_v44 = vpop.f32.mrf.mxu1 }
 0x858   :  { %v921_v15 = vpack.c.bf16 %v915_v44, %v915_v44 }
 0x859   :  { %v1352_v45 = vpop.f32.mrf.mxu1 }
 0x85a   :  { %1359 = vmatmul.mubr.msk.bf16.vlgmr.msra.gmra.mxu0 %vm106_vm2, %v921_v15 }
 0x85b   :  { %v918_v46 = vpop.f32.mrf.mxu1  ;;  %1363 = vmatpush3.bf16.msra.mxu0 %v1579_v5  ;;  %1366 = vmatprep.mubr.msk.bf16.mxu0 %vm1498_vm0, %v1497_v0 }
 0x85c   :  { %1364 = vmatprep.subr.bf16.mxu0 %v1497_v0 }
 0x85d   :  { %v1353_v3 = vpop.f32.mrf.mxu1 }
 0x85f   :  { %1365 = vmatpush3.bf16.msra.mxu0 %v1584_v7 }
 0x860   :  { %1376 = vmatprep.subr.bf16.mxu0 %v1497_v0 }
 0x862   :  { %1367 = vmatmul.mubr.msk.bf16.vlgmr.msra.gmra.mxu0 %vm106_vm2, %v921_v15 }
 0x863   :  { %1380 = vmatprep.mubr.msk.bf16.mxu0 %vm1498_vm0, %v1497_v0 }
 0x91a   :  { %v959_v36 = vpop.f32.mrf.mxu0 }
 0x91b   :  { %v960_v55 = vadd.f32 %v959_v36, %v1651_v40 }
 0x91c   :  { %v1360_v47 = vpop.f32.mrf.mxu0 }
 0x91d   :  { %v965_v5 = vpack.c.bf16 %v960_v55, %v960_v55 }
 0x91e   :  { %v962_v48 = vpop.f32.mrf.mxu0 }
 0x91f   :  { %1007 = vxpose.xlu1.c.b16.start.end [1/1] (short) (narrow) %v965_v5, 32 }
 0x920   :  { %v1361_v49 = vpop.f32.mrf.mxu0 }
 0x922   :  { %v1000_v50 = vpop.f32.mrf.mxu0 }
 0x923   :  { %v1001_v60 = vadd.f32 %v1000_v50, %v1687_v9 }
 0x924   :  { %v1368_v1 = vpop.f32.mrf.mxu0 }
 0x925   :  { %v1006_v63 = vpack.c.bf16 %v1001_v60, %v1001_v60 }
 0x926   :  { %v1003_v51 = vpop.f32.mrf.mxu0 }
 0x928   :  { %v1369_v53 = vpop.f32.mrf.mxu0 }
 0x981   :  { %v1015_v7 = vpop.trf.xlu1 }
 0x982   :  { %1372 = vmatprep.mubr.msk.bf16.mxu1 %vm491_vm6, %v1015_v7 }
 0x985   :  { %v1016_v56 = vpop.trf.xlu1 }
 0x986   :  { %1373 = vmatmul.mubr.msk.bf16.vlgmr.msra.gmra.mxu1 %vm491_vm6, %v1016_v56 }
 0x987   :  { %1385 = vmatpush3.bf16.msra.mxu1 %v1658_v52  ;;  %1388 = vmatprep.mubr.msk.bf16.mxu1 %vm1498_vm0, %v1497_v0 }
 0x988   :  { %1386 = vmatprep.subr.bf16.mxu1 %v1497_v0 }
 0x98b   :  { %1387 = vmatpush3.bf16.msra.mxu1 %v1665_v54 }
 0x98e   :  { %1389 = vmatmul.mubr.msk.bf16.vlgmr.msra.gmra.mxu1 %vm106_vm2, %v921_v15 }
 0xa46   :  { %v1374_v40 = vpop.f32.mrf.mxu1 }
 0xa48   :  { %v1063_v57 = vpop.f32.mrf.mxu1 }
 0xa4a   :  { %v1375_v58 = vpop.f32.mrf.mxu1 }
 0xa4b   :  { %v1079_v2 = vpack.c.bf16 %v1375_v58, %v1374_v40 }
 0xa4c   :  { %v1066_v59 = vpop.f32.mrf.mxu1 }
 0xa4d   :  { %1377 = vmatpush3.bf16.msra.mxu0 %v1079_v2  ;;  %v1078_v52 = vpack.c.bf16 %v1066_v59, %v1063_v57 }
 0xa4e   :  { %v1157_v61 = vpop.f32.mrf.mxu1  ;;  %1378 = vmatprep.subr.bf16.mxu0 %v1497_v0 }
 0xa50   :  { %v1390_v62 = vpop.f32.mrf.mxu1 }
 0xa51   :  { %1379 = vmatpush3.bf16.msra.mxu0 %v1078_v52 }
 0xa52   :  { %v1160_v4 = vpop.f32.mrf.mxu1 }
 0xa54   :  { %1381 = vmatmul.mubr.msk.bf16.vlgmr.msra.gmra.mxu0 %vm106_vm2, %v1006_v63  ;;  %v1391_v54 = vpop.f32.mrf.mxu1 }
 0xb14   :  { %v1117_v6 = vpop.f32.mrf.mxu0 }
 0xb15   :  { %v1158_v8 = vadd.f32 %v1157_v61, %v1117_v6 }
 0xb16   :  { %v1382_v10 = vpop.f32.mrf.mxu0 }
 0xb17   :  { %v1163_v11 = vadd.f32 %v1705_v30, %v1158_v8 }
 0xb18   :  { %v1120_v12 = vpop.f32.mrf.mxu0 }
 0xb19   :  { %1201 = vst [vmem:[%s1772_s8 + $0x4] sm:$0xf] %v1163_v11 }
 0xb1a   :  { %v1383_v9 = vpop.f32.mrf.mxu0 }
 0xb1b   :  { %1170 = vsyncpa [#allocation3], 1 }
 0xb1c   :  { %1171 = vsyncpa [#allocation5], 1 }

// kernel: rafcn_forward.4
= control target key start
LH: loop header
LB: loop body
LE: loop exit
PB: predicated region body
PF: predicated region fallthrough
CT: control target
= control target key end

     0   :  { %14 = vsyncpa [#allocation3], 0  ;;  %s1813_s0 = inlined_call_operand.hbm [shape: f32[2,16,24], index: 0, kind: input, shape index: {}]   ;;  %s1814_s1 = inlined_call_operand.vmem [shape: bf16[24,24], index: 1, kind: input, shape index: {}]   ;;  %s1815_s2 = inlined_call_operand.hbm [shape: f32[1,24], index: 2, kind: input, shape index: {}]   ;;  %s1816_s3 = inlined_call_operand.vmem [shape: bf16[24,24], index: 3, kind: input, shape index: {}]   ;;  %s1817_s4 = inlined_call_operand.hbm [shape: f32[1,24], index: 4, kind: input, shape index: {}]   ;;  %s1818_s5 = inlined_call_operand.vmem [shape: bf16[24,128], index: 5, kind: input, shape index: {}]   ;;  %s1819_s6 = inlined_call_operand.vmem [shape: bf16[16,128], index: 6, kind: input, shape index: {}]   ;;  %s1820_s7 = inlined_call_operand.vmem [shape: f32[1,128], index: 7, kind: input, shape index: {}]   ;;  %s1821_s8 = inlined_call_operand.vmem [shape: f32[2,16,128], index: 8, kind: input, shape index: {}]   ;;  %s1822_s9 = inlined_call_operand.vmem [shape: f32[2,16,128], index: 9, kind: output, shape index: {}]  }
   0x1   :  { %15 = vsyncpa [#allocation5], 0  ;;  %s1509_s30 = smov [#allocation4]   ;;  %s1510_s11 = smov [#allocation2]  }
   0x2   :  { %s36_s10 = sshll.u32 %s1509_s30, 4  ;;  %s21_s12 = sshll.u32 %s1510_s11, 4  ;;  %s37_s10 = int_to_ptr.vmem [resolvable:$true] %s36_s10  ;;  %s22_s12 = int_to_ptr.vmem [resolvable:$true] %s21_s12 }
   0x3   :  { %s1453_s13 = scalar_lea.vmem %s37_s10, 16  ;;  %s1457_s14 = scalar_lea.vmem %s37_s10, 32 }
   0x4   :  { %p1454_p0 = scmp.ne.s32.totalorder %s37_s10, %s1453_s13  ;;  %p1458_p1 = scmp.lt.s32.totalorder %s37_s10, %s37_s10 }
   0x5   :  { %p1459_p2 = scmp.lt.s32.totalorder %s1457_s14, %s1453_s13 }
   0x7   :  { %p1460_p3 = por %p1459_p2, %p1458_p1 }
   0x9   :  { %p1461_p4 = pnand %p1460_p3, %p1454_p0 }
   0xb   :  { %1464 = shalt.err (!%p1461_p4)
}
   0xc   :  { %39 = dma.hbm_to_vmem [thread:$0]  %s1815_s2, 16, %s37_s10, [#allocation5]  }
   0xd   :  { %s1473_s17 = scalar_lea.vmem %s22_s12, 512  ;;  %p1478_p6 = scmp.lt.s32.totalorder %s22_s12, %s22_s12 }
   0xe   :  { %p1474_p5 = scmp.ne.s32.totalorder %s22_s12, %s1473_s17  ;;  %p1479_p7 = scmp.lt.s32.totalorder %s1473_s17, %s1473_s17 }
  0x10   :  { %p1480_p8 = por %p1479_p7, %p1478_p6 }
  0x12   :  { %p1481_p9 = pnand %p1480_p8, %p1474_p5 }
  0x14   :  { %1484 = shalt.err (!%p1481_p9)
}
  0x15   :  { %s1511_s18 = smov 128   ;;  %s1512_s19 = smov 8  }
  0x16   :  { %27 = dma.hbm_to_vmem [thread:$0]  %s1813_s0, 512, %s22_s12, [#allocation3], %s1511_s18, %s1511_s18, %s1512_s19  }
  0x17   :  { %s1513_s22 = smov [#allocation6]  }
  0x18   :  { %s48_s23 = sshll.u32 %s1513_s22, 4  ;;  %s49_s23 = int_to_ptr.vmem [resolvable:$true] %s48_s23 }
  0x19   :  { %s1493_s24 = scalar_lea.vmem %s49_s23, 16  ;;  %s1497_s25 = scalar_lea.vmem %s49_s23, 32 }
  0x1a   :  { %p1494_p10 = scmp.ne.s32.totalorder %s49_s23, %s1493_s24  ;;  %p1498_p11 = scmp.lt.s32.totalorder %s49_s23, %s49_s23 }
  0x1b   :  { %p1499_p12 = scmp.lt.s32.totalorder %s1497_s25, %s1493_s24 }
  0x1d   :  { %p1500_p13 = por %p1499_p12, %p1498_p11 }
  0x1f   :  { %p1501_p0 = pnand %p1500_p13, %p1494_p10 }
  0x21   :  { %1504 = shalt.err (!%p1501_p0)
}
  0x22   :  { %51 = dma.hbm_to_vmem [thread:$0]  %s1817_s4, 16, %s49_s23, [#allocation5]  }
  0x23   :  { %1505 = dma.done.wait [#allocation3], 512  }
  0x24   :  { %1506 = vsyncadd [#allocation3], 4294966784 }
  0x25   :  { %1507 = dma.done.wait [#allocation5], 32  }
  0x26   :  { %1508 = vsyncadd [#allocation5], 4294967264  ;;  %v1514_v0 = vmov 0.0   ;;  %vm1515_vm0 = vmmov 0   ;;  %vm110_vm1 = vcmask 1043456   ;;  %vm86_vm2 = vcmask 195584  }
  0x27   :  { %1278 = vmatprep.subr.bf16.mxu0 %v1514_v0  ;;  %1282 = vmatprep.mubr.msk.bf16.mxu0 %vm1515_vm0, %v1514_v0  ;;  %v1422_v1 = vld [vmem:[%s1814_s1 + $0x8] ss:$0 sps:$4 sm:$0xff]   ;;  %v1585_v2 = vld [vmem:[#allocation2] sm:$0xff]  ;;  %vm231_vm3 = vcmask 1040384   ;;  %v1516_v27 = vmov 0   ;;  %vm224_vm4 = vcmask 7168  }
  0x28   :  { %1286 = vmatprep.subr.bf16.mxu1 %v1514_v0  ;;  %1290 = vmatprep.mubr.msk.bf16.mxu1 %vm1515_vm0, %v1514_v0  ;;  %v1588_v3 = vsel %vm110_vm1, %v1422_v1, 0  ;;  %v1590_v4 = vld [vmem:[#allocation2 + $0x8] sm:$0xff]  ;;  %v87_v5 = vsel %vm86_vm2, %v1585_v2, 0.0  ;;  %v1598_v6 = vld [vmem:[%s1814_s1] sm:$0xff]   ;;  %v1629_v28 = vsel %vm231_vm3, 65535, %v1516_v27  ;;  %vm495_vm5 = vcmask 130048  }
  0x29   :  { %1279 = vmatpush3.bf16.msra.mxu0 %v1588_v3  ;;  %v88_v7 = vsel %vm86_vm2, %v1590_v4, 0.0  ;;  %v1424_v8 = vld [vmem:[%s1816_s3 + $0x8] ss:$0 sps:$4 sm:$0xff]   ;;  %v1613_v12 = vld [vmem:[%s1816_s3] sm:$0xff]   ;;  %v322_v27 = vpack.c.bf16 %v1590_v4, %v1585_v2  ;;  %v375_v4 = vlaneseq }
  0x2a   :  { %1280 = vmatprep.subr.bf16.mxu0 %v1514_v0  ;;  %v89_v9 = vadd.f32 %v88_v7, %v87_v5  ;;  %v1607_v10 = vsel %vm110_vm1, %v1424_v8, 0  ;;  %v1623_v20 = vld [vmem:[#allocation4] sm:$0x1]  ;;  %v1625_v21 = vld [vmem:[#allocation6] sm:$0x1] }
  0x2b   :  { %1287 = vmatpush3.bf16.msra.mxu1 %v1607_v10  ;;  %v1666_v2 = vld [vmem:[%s1819_s6] sm:$0xff]  }
  0x2c   :  { %v90_v11 = vrot.slane %v89_v9, 4  ;;  %1288 = vmatprep.subr.bf16.mxu1 %v1514_v0 }
  0x2d   :  { %1281 = vmatpush3.bf16.msra.mxu0 %v1598_v6 }
  0x2e   :  { %v91_v13 = vadd.f32 %v90_v11, %v89_v9 }
  0x2f   :  { %1289 = vmatpush3.bf16.msra.mxu1 %v1613_v12 }
  0x30   :  { %v92_v14 = vrot.slane %v91_v13, 2  ;;  %1300 = vmatprep.subr.bf16.mxu1 %v1514_v0 }
  0x32   :  { %v93_v15 = vadd.f32 %v92_v14, %v91_v13 }
  0x34   :  { %v94_v16 = vrot.slane %v93_v15, 1 }
  0x36   :  { %v95_v17 = vadd.f32 %v94_v16, %v93_v15 }
  0x38   :  { %v96_v18 = vmul.f32 0.0625, %v95_v17 }
  0x3a   :  { %v97_v19 = vpack.c.bf16 %v96_v18, %v96_v18 }
  0x3c   :  { %1283 = vmatmul.mubr.msk.bf16.vlgmr.msra.gmra.mxu0 %vm86_vm2, %v97_v19  ;;  %1291 = vmatmul.mubr.msk.bf16.vlgmr.msra.gmra.mxu1 %vm86_vm2, %v97_v19 }
  0x3d   :  { %1304 = vmatprep.mubr.msk.bf16.mxu1 %vm1515_vm0, %v1514_v0 }
  0xfc   :  { %v148_v22 = vpop.f32.mrf.mxu0  ;;  %v200_v23 = vpop.f32.mrf.mxu1 }
  0xfd   :  { %v149_v24 = vadd.f32 %v148_v22, %v1623_v20  ;;  %v201_v25 = vadd.f32 %v200_v23, %v1625_v21 }
  0xfe   :  { %v1284_v26 = vpop.f32.mrf.mxu0  ;;  %v1292_v29 = vpop.f32.mrf.mxu1 }
  0xff   :  { %v206_v30 = vpack.c.bf16 %v149_v24, %v149_v24  ;;  %v207_v31 = vpack.c.bf16 %v201_v25, %v201_v25 }
 0x100   :  { %v151_v32 = vpop.f32.mrf.mxu0  ;;  %v203_v33 = vpop.f32.mrf.mxu1 }
 0x101   :  { %208 = vxpose.xlu0.c.b16.start.end [1/1] (short) (narrow) %v206_v30, 32  ;;  %v235_v34 = vand.u32 %v1629_v28, %v207_v31 }
 0x102   :  { %v1285_v35 = vpop.f32.mrf.mxu0  ;;  %v1293_v36 = vpop.f32.mrf.mxu1 }
 0x103   :  { %1294 = vmatprep.subr.bf16.mxu0 %v235_v34 }
 0x104   :  { %1295 = vmatpush3.bf16.msra.mxu0 %v235_v34  ;;  %v376_v34 = vshrl.u32 %v375_v4, 7  ;;  %v1734_v4 = vld [vmem:[%s1820_s7] ss:$0 sm:$0xff] }
 0x105   :  { %1308 = vmatprep.subr.bf16.mxu0 %v1514_v0 }
 0x106   :  { %v377_v35 = vsub.s32 0, %v376_v34 }
 0x163   :  { %v216_v37 = vpop.trf.xlu0 }
 0x164   :  { %1296 = vmatprep.mubr.msk.bf16.mxu0 %vm224_vm4, %v216_v37  ;;  %v1672_v37 = vrot.slane %v1623_v20, %v377_v35 }
 0x167   :  { %v217_v38 = vpop.trf.xlu0 }
 0x168   :  { %1297 = vmatmul.mubr.msk.bf16.vlgmr.msra.gmra.mxu0 %vm224_vm4, %v217_v38 }
 0x169   :  { %1309 = vmatpush3.bf16.msra.mxu0 %v1588_v3  ;;  %1312 = vmatprep.mubr.msk.bf16.mxu0 %vm1515_vm0, %v1514_v0 }
 0x16a   :  { %1310 = vmatprep.subr.bf16.mxu0 %v1514_v0 }
 0x16d   :  { %1311 = vmatpush3.bf16.msra.mxu0 %v1598_v6 }
 0x16e   :  { %1316 = vmatprep.subr.bf16.mxu0 %v1514_v0 }
 0x228   :  { %v1298_v39 = vpop.f32.mrf.mxu0 }
 0x229   :  { %v287_v46 = vsel %vm86_vm2, %v1298_v39, -inf }
 0x22a   :  { %v271_v40 = vpop.f32.mrf.mxu0 }
 0x22b   :  { %v285_v43 = vsel %vm86_vm2, %v271_v40, -inf }
 0x22c   :  { %v1299_v41 = vpop.f32.mrf.mxu0 }
 0x22e   :  { %v274_v42 = vpop.f32.mrf.mxu0 }
 0x22f   :  { %v286_v44 = vsel %vm86_vm2, %v274_v42, -inf }
 0x230   :  { %v288_v45 = vmax.f32 %v285_v43, %v286_v44 }
 0x232   :  { %v289_v47 = vmax.f32 %v288_v45, %v287_v46  ;;  %v1677_v45 = vrot.slane %v1625_v21, %v377_v35 }
 0x234   :  { %v290_v48 = vrot.slane %v289_v47, 4 }
 0x236   :  { %v291_v49 = vmax.f32 %v289_v47, %v290_v48 }
 0x238   :  { %v292_v50 = vrot.slane %v291_v49, 2 }
 0x23a   :  { %v293_v51 = vmax.f32 %v291_v49, %v292_v50 }
 0x23c   :  { %v294_v52 = vrot.slane %v293_v51, 1 }
 0x23e   :  { %v295_v53 = vmax.f32 %v293_v51, %v294_v52  ;;  %v1427_v52 = vld [vmem:[%s1818_s5 + $0x8] ss:$0 sps:$4 sm:$0xff]  }
 0x240   :  { %v296_v54 = vsub.f32 %v271_v40, %v295_v53  ;;  %v297_v55 = vsub.f32 %v274_v42, %v295_v53  ;;  %v298_v56 = vsub.f32 %v1298_v39, %v295_v53 }
 0x242   :  { %v299_v57 = vmul.f32 1.442695, %v296_v54  ;;  %v301_v58 = vmul.f32 1.442695, %v297_v55  ;;  %v303_v59 = vmul.f32 1.442695, %v298_v56 }
 0x243   :  { %v1686_v54 = vsel %vm110_vm1, %v1427_v52, 0  ;;  %v1693_v56 = vld [vmem:[%s1818_s5] sm:$0xff]  }
 0x244   :  { %1429 = vpow2.f32 %v299_v57  ;;  %v1707_v57 = vld [vmem:[#allocation2 + $0x10] sm:$0xff] }
 0x245   :  { %1431 = vpow2.f32 %v301_v58  ;;  %v1709_v58 = vld [vmem:[#allocation2 + $0x18] sm:$0xff] }
 0x246   :  { %1433 = vpow2.f32 %v303_v59  ;;  %v669_v59 = vsel %vm86_vm2, %v1707_v57, 0.0 }
 0x251   :  { %v1430_v60 = vpop.eup %1429 }
 0x252   :  { %v1432_v61 = vpop.eup %1431  ;;  %v305_v62 = vsel %vm86_vm2, %v1430_v60, 0.0 }
 0x253   :  { %v1434_v63 = vpop.eup %1433  ;;  %v306_v1 = vsel %vm86_vm2, %v1432_v61, 0.0 }
 0x254   :  { %v307_v5 = vadd.f32 %v306_v1, %v305_v62  ;;  %v308_v7 = vsel %vm86_vm2, %v1434_v63, 0.0 }
 0x256   :  { %v309_v8 = vadd.f32 %v308_v7, %v307_v5 }
 0x258   :  { %v310_v9 = vrot.slane %v309_v8, 4 }
 0x25a   :  { %v311_v11 = vadd.f32 %v310_v9, %v309_v8 }
 0x25c   :  { %v312_v13 = vrot.slane %v311_v11, 2 }
 0x25e   :  { %v313_v14 = vadd.f32 %v312_v13, %v311_v11 }
 0x260   :  { %v314_v15 = vrot.slane %v313_v14, 1 }
 0x262   :  { %v315_v16 = vadd.f32 %v314_v15, %v313_v14 }
 0x264   :  { %1435 = vrcp.f32 %v315_v16 }
 0x271   :  { %v1436_v17 = vpop.eup %1435 }
 0x272   :  { %v319_v18 = vmul.f32 %v1436_v17, %v1434_v63  ;;  %v317_v23 = vmul.f32 %v1436_v17, %v1430_v60  ;;  %v318_v24 = vmul.f32 %v1436_v17, %v1432_v61  ;;  %v670_v60 = vsel %vm86_vm2, %v1709_v58, 0.0 }
 0x273   :  { %v671_v61 = vadd.f32 %v670_v60, %v669_v59 }
 0x274   :  { %v321_v19 = vpack.c.bf16 %v319_v18, %v319_v18  ;;  %v320_v25 = vpack.c.bf16 %v318_v24, %v317_v23 }
 0x275   :  { %v672_v62 = vrot.slane %v671_v61, 4 }
 0x276   :  { %v330_v22 = vsel %vm86_vm2, %v321_v19, 0  ;;  %v327_v26 = vsel %vm86_vm2, %v320_v25, 0 }
 0x277   :  { %1301 = vmatpush3.bf16.xpose.msra.mxu1 %v330_v22  ;;  %v673_v63 = vadd.f32 %v672_v62, %v671_v61 }
 0x278   :  { %1302 = vmatprep.subr.bf16.mxu1 %v1514_v0 }
 0x279   :  { %v674_v1 = vrot.slane %v673_v63, 2 }
 0x27b   :  { %v675_v5 = vadd.f32 %v674_v1, %v673_v63 }
 0x27d   :  { %v676_v7 = vrot.slane %v675_v5, 1 }
 0x27f   :  { %1303 = vmatpush3.bf16.xpose.msra.mxu1 %v327_v26  ;;  %v677_v8 = vadd.f32 %v676_v7, %v675_v5 }
 0x280   :  { %1324 = vmatprep.subr.bf16.mxu1 %v1666_v2 }
 0x281   :  { %v678_v9 = vmul.f32 0.0625, %v677_v8 }
 0x283   :  { %v679_v11 = vpack.c.bf16 %v678_v9, %v678_v9 }
 0x286   :  { %1305 = vmatmul.mubr.msk.bf16.vlgmr.msra.gmra.mxu1 %vm86_vm2, %v322_v27 }
 0x287   :  { %1325 = vmatpush3.bf16.msra.mxu1 %v1666_v2 }
 0x288   :  { %1338 = vmatprep.subr.bf16.mxu1 %v1514_v0 }
 0x346   :  { %v366_v29 = vpop.f32.mrf.mxu1 }
 0x348   :  { %v1306_v30 = vpop.f32.mrf.mxu1 }
 0x34a   :  { %v369_v31 = vpop.f32.mrf.mxu1 }
 0x34b   :  { %v373_v32 = vpack.c.bf16 %v369_v31, %v366_v29 }
 0x34c   :  { %v1307_v33 = vpop.f32.mrf.mxu1 }
 0x34d   :  { %1313 = vmatmul.mubr.msk.bf16.vlgmr.msra.gmra.mxu0 %vm86_vm2, %v373_v32 }
 0x34e   :  { %1317 = vmatpush3.bf16.msra.mxu0 %v1607_v10  ;;  %1320 = vmatprep.mubr.msk.bf16.mxu0 %vm1515_vm0, %v1514_v0 }
 0x34f   :  { %1318 = vmatprep.subr.bf16.mxu0 %v1514_v0 }
 0x352   :  { %1319 = vmatpush3.bf16.msra.mxu0 %v1613_v12 }
 0x353   :  { %1330 = vmatprep.subr.bf16.mxu0 %v1514_v0 }
 0x355   :  { %1321 = vmatmul.mubr.msk.bf16.vlgmr.msra.gmra.mxu0 %vm86_vm2, %v373_v32 }
 0x356   :  { %1334 = vmatprep.mubr.msk.bf16.mxu0 %vm1515_vm0, %v1514_v0 }
 0x40d   :  { %v417_v36 = vpop.f32.mrf.mxu0 }
 0x40e   :  { %v418_v40 = vadd.f32 %v417_v36, %v1672_v37 }
 0x40f   :  { %v1314_v38 = vpop.f32.mrf.mxu0 }
 0x411   :  { %v420_v39 = vpop.f32.mrf.mxu0 }
 0x412   :  { %v421_v41 = vadd.f32 %v420_v39, %v1672_v37 }
 0x413   :  { %v1315_v42 = vpop.f32.mrf.mxu0 }
 0x414   :  { %v424_v43 = vpack.c.bf16 %v421_v41, %v418_v40  ;;  %v661_v41 = vld [vmem:[%s1821_s8 + $0x8] sm:$0xff] }
 0x415   :  { %v465_v44 = vpop.f32.mrf.mxu0 }
 0x416   :  { %473 = vxpose.xlu0.c.b16.start.end [1/1] (short) (narrow) %v424_v43, 32  ;;  %v466_v48 = vadd.f32 %v465_v44, %v1677_v45 }
 0x417   :  { %v1322_v46 = vpop.f32.mrf.mxu0 }
 0x419   :  { %v468_v47 = vpop.f32.mrf.mxu0 }
 0x41a   :  { %v469_v49 = vadd.f32 %v468_v47, %v1677_v45 }
 0x41b   :  { %v1323_v50 = vpop.f32.mrf.mxu0 }
 0x41c   :  { %v472_v51 = vpack.c.bf16 %v469_v49, %v466_v48 }
 0x478   :  { %v481_v53 = vpop.trf.xlu0 }
 0x479   :  { %1326 = vmatprep.mubr.msk.bf16.mxu1 %vm495_vm5, %v481_v53 }
 0x47c   :  { %v482_v55 = vpop.trf.xlu0 }
 0x47d   :  { %1327 = vmatmul.mubr.msk.bf16.vlgmr.msra.gmra.mxu1 %vm495_vm5, %v482_v55 }
 0x47e   :  { %1339 = vmatpush3.bf16.msra.mxu1 %v1686_v54  ;;  %1342 = vmatprep.mubr.msk.bf16.mxu1 %vm1515_vm0, %v1514_v0 }
 0x47f   :  { %1340 = vmatprep.subr.bf16.mxu1 %v1514_v0 }
 0x482   :  { %1341 = vmatpush3.bf16.msra.mxu1 %v1693_v56 }
 0x483   :  { %1354 = vmatprep.subr.bf16.mxu1 %v1514_v0 }
 0x485   :  { %1343 = vmatmul.mubr.msk.bf16.vlgmr.msra.gmra.mxu1 %vm86_vm2, %v373_v32 }
 0x486   :  { %1355 = vmatpush3.bf16.msra.mxu1 %v1607_v10  ;;  %1358 = vmatprep.mubr.msk.bf16.mxu1 %vm1515_vm0, %v1514_v0 }
 0x487   :  { %1356 = vmatprep.subr.bf16.mxu1 %v1514_v0 }
 0x48a   :  { %1357 = vmatpush3.bf16.msra.mxu1 %v1613_v12 }
 0x48b   :  { %1368 = vmatprep.subr.bf16.mxu1 %v1514_v0 }
 0x48d   :  { %1359 = vmatmul.mubr.msk.bf16.vlgmr.msra.gmra.mxu1 %vm86_vm2, %v679_v11 }
 0x48e   :  { %1372 = vmatprep.mubr.msk.bf16.mxu1 %vm1515_vm0, %v1514_v0 }
 0x53d   :  { %v1328_v13 = vpop.f32.mrf.mxu1 }
 0x53e   :  { %v551_v14 = vpack.c.bf16 %v1328_v13, %v1328_v13 }
 0x53f   :  { %v536_v15 = vpop.f32.mrf.mxu1 }
 0x540   :  { %v556_v16 = vsel %vm110_vm1, %v551_v14, 0 }
 0x541   :  { %v1329_v17 = vpop.f32.mrf.mxu1  ;;  %1331 = vmatpush3.bf16.msra.mxu0 %v556_v16 }
 0x542   :  { %1332 = vmatprep.subr.bf16.mxu0 %v1514_v0 }
 0x543   :  { %v539_v18 = vpop.f32.mrf.mxu1 }
 0x544   :  { %v550_v19 = vpack.c.bf16 %v539_v18, %v536_v15 }
 0x545   :  { %v645_v22 = vpop.f32.mrf.mxu1 }
 0x546   :  { %1333 = vmatpush3.bf16.msra.mxu0 %v550_v19 }
 0x547   :  { %v1344_v23 = vpop.f32.mrf.mxu1  ;;  %1346 = vmatprep.subr.bf16.mxu0 %v1514_v0 }
 0x549   :  { %1335 = vmatmul.mubr.msk.bf16.vlgmr.msra.gmra.mxu0 %vm86_vm2, %v472_v51  ;;  %v648_v24 = vpop.f32.mrf.mxu1 }
 0x54a   :  { %1347 = vmatpush3.bf16.msra.mxu0 %v1588_v3  ;;  %1350 = vmatprep.mubr.msk.bf16.mxu0 %vm1515_vm0, %v1514_v0 }
 0x54b   :  { %v1345_v25 = vpop.f32.mrf.mxu1  ;;  %1348 = vmatprep.subr.bf16.mxu0 %v1514_v0 }
 0x54d   :  { %v757_v26 = vpop.f32.mrf.mxu1 }
 0x54e   :  { %1349 = vmatpush3.bf16.msra.mxu0 %v1598_v6  ;;  %v758_v27 = vadd.f32 %v757_v26, %v1625_v21  ;;  %v660_v21 = vld [vmem:[%s1821_s8] sm:$0xff] }
 0x54f   :  { %v1360_v29 = vpop.f32.mrf.mxu1 }
 0x550   :  { %v764_v30 = vpack.c.bf16 %v758_v27, %v758_v27 }
 0x551   :  { %1351 = vmatmul.mubr.msk.bf16.vlgmr.msra.gmra.mxu0 %vm86_vm2, %v679_v11  ;;  %v760_v31 = vpop.f32.mrf.mxu1 }
 0x552   :  { %v788_v32 = vand.u32 %v764_v30, %v1629_v28 }
 0x553   :  { %v1361_v33 = vpop.f32.mrf.mxu1 }
 0x554   :  { %1362 = vmatprep.subr.bf16.mxu0 %v788_v32 }
 0x555   :  { %1363 = vmatpush3.bf16.msra.mxu0 %v788_v32 }
 0x556   :  { %1376 = vmatprep.subr.bf16.mxu0 %v1514_v0 }
 0x609   :  { %v592_v34 = vpop.f32.mrf.mxu0 }
 0x60a   :  { %v646_v35 = vadd.f32 %v645_v22, %v592_v34 }
 0x60b   :  { %v1336_v36 = vpop.f32.mrf.mxu0 }
 0x60c   :  { %v658_v38 = vadd.f32 %v1734_v4, %v646_v35 }
 0x60d   :  { %v595_v28 = vpop.f32.mrf.mxu0 }
 0x60e   :  { %v662_v39 = vadd.f32 %v660_v21, %v658_v38  ;;  %v649_v40 = vadd.f32 %v648_v24, %v595_v28 }
 0x60f   :  { %v1337_v42 = vpop.f32.mrf.mxu0 }
 0x610   :  { %664 = vst [vmem:[%s1822_s9] sm:$0xff] %v662_v39  ;;  %v659_v43 = vadd.f32 %v1734_v4, %v649_v40 }
 0x611   :  { %v717_v44 = vpop.f32.mrf.mxu0 }
 0x612   :  { %v663_v46 = vadd.f32 %v661_v41, %v659_v43  ;;  %v718_v47 = vadd.f32 %v717_v44, %v1623_v20  ;;  %v875_v43 = vpack.c.bf16 %v1709_v58, %v1707_v57 }
 0x613   :  { %v1352_v48 = vpop.f32.mrf.mxu0 }
 0x614   :  { %665 = vst [vmem:[%s1822_s9 + $0x8] sm:$0xff] %v663_v46  ;;  %v763_v49 = vpack.c.bf16 %v718_v47, %v718_v47 }
 0x615   :  { %v720_v50 = vpop.f32.mrf.mxu0 }
 0x616   :  { %765 = vxpose.xlu1.c.b16.start.end [1/1] (short) (narrow) %v763_v49, 32 }
 0x617   :  { %v1353_v51 = vpop.f32.mrf.mxu0 }
 0x678   :  { %v773_v52 = vpop.trf.xlu1 }
 0x679   :  { %1364 = vmatprep.mubr.msk.bf16.mxu0 %vm224_vm4, %v773_v52 }
 0x67c   :  { %v774_v53 = vpop.trf.xlu1 }
 0x67d   :  { %1365 = vmatmul.mubr.msk.bf16.vlgmr.msra.gmra.mxu0 %vm224_vm4, %v774_v53 }
 0x67e   :  { %1377 = vmatpush3.bf16.msra.mxu0 %v1588_v3  ;;  %1380 = vmatprep.mubr.msk.bf16.mxu0 %vm1515_vm0, %v1514_v0 }
 0x67f   :  { %1378 = vmatprep.subr.bf16.mxu0 %v1514_v0 }
 0x682   :  { %1379 = vmatpush3.bf16.msra.mxu0 %v1598_v6 }
 0x683   :  { %1384 = vmatprep.subr.bf16.mxu0 %v1514_v0 }
 0x73d   :  { %v1366_v20 = vpop.f32.mrf.mxu0 }
 0x73e   :  { %v840_v3 = vsel %vm86_vm2, %v1366_v20, -inf }
 0x73f   :  { %v824_v55 = vpop.f32.mrf.mxu0 }
 0x740   :  { %v838_v61 = vsel %vm86_vm2, %v824_v55, -inf }
 0x741   :  { %v1367_v59 = vpop.f32.mrf.mxu0 }
 0x743   :  { %v827_v60 = vpop.f32.mrf.mxu0 }
 0x744   :  { %v839_v62 = vsel %vm86_vm2, %v827_v60, -inf }
 0x745   :  { %v841_v63 = vmax.f32 %v838_v61, %v839_v62 }
 0x747   :  { %v842_v1 = vmax.f32 %v841_v63, %v840_v3 }
 0x749   :  { %v843_v5 = vrot.slane %v842_v1, 4 }
 0x74b   :  { %v844_v7 = vmax.f32 %v842_v1, %v843_v5 }
 0x74d   :  { %v845_v8 = vrot.slane %v844_v7, 2 }
 0x74f   :  { %v846_v9 = vmax.f32 %v844_v7, %v845_v8 }
 0x751   :  { %v847_v11 = vrot.slane %v846_v9, 1 }
 0x753   :  { %v848_v6 = vmax.f32 %v846_v9, %v847_v11 }
 0x755   :  { %v849_v13 = vsub.f32 %v824_v55, %v848_v6  ;;  %v850_v14 = vsub.f32 %v827_v60, %v848_v6  ;;  %v851_v15 = vsub.f32 %v1366_v20, %v848_v6 }
 0x757   :  { %v852_v16 = vmul.f32 1.442695, %v849_v13  ;;  %v854_v17 = vmul.f32 1.442695, %v850_v14  ;;  %v856_v18 = vmul.f32 1.442695, %v851_v15 }
 0x758   :  { %v1220_v14 = vld [vmem:[%s1821_s8 + $0x10] sm:$0xff] }
 0x759   :  { %1437 = vpow2.f32 %v852_v16 }
 0x75a   :  { %1439 = vpow2.f32 %v854_v17 }
 0x75b   :  { %1441 = vpow2.f32 %v856_v18 }
 0x766   :  { %v1438_v19 = vpop.eup %1437 }
 0x767   :  { %v1440_v22 = vpop.eup %1439  ;;  %v858_v23 = vsel %vm86_vm2, %v1438_v19, 0.0 }
 0x768   :  { %v1442_v24 = vpop.eup %1441  ;;  %v859_v25 = vsel %vm86_vm2, %v1440_v22, 0.0 }
 0x769   :  { %v860_v26 = vadd.f32 %v859_v25, %v858_v23  ;;  %v861_v27 = vsel %vm86_vm2, %v1442_v24, 0.0 }
 0x76b   :  { %v862_v29 = vadd.f32 %v861_v27, %v860_v26 }
 0x76d   :  { %v863_v30 = vrot.slane %v862_v29, 4 }
 0x76f   :  { %v864_v31 = vadd.f32 %v863_v30, %v862_v29 }
 0x771   :  { %v865_v32 = vrot.slane %v864_v31, 2 }
 0x773   :  { %v866_v33 = vadd.f32 %v865_v32, %v864_v31 }
 0x775   :  { %v867_v34 = vrot.slane %v866_v33, 1 }
 0x777   :  { %v868_v35 = vadd.f32 %v867_v34, %v866_v33 }
 0x779   :  { %1443 = vrcp.f32 %v868_v35 }
 0x786   :  { %v1444_v21 = vpop.eup %1443 }
 0x787   :  { %v872_v36 = vmul.f32 %v1444_v21, %v1442_v24  ;;  %v870_v39 = vmul.f32 %v1444_v21, %v1438_v19  ;;  %v871_v40 = vmul.f32 %v1444_v21, %v1440_v22  ;;  %v1221_v19 = vld [vmem:[%s1821_s8 + $0x18] sm:$0xff] }
 0x789   :  { %v874_v38 = vpack.c.bf16 %v872_v36, %v872_v36  ;;  %v873_v41 = vpack.c.bf16 %v871_v40, %v870_v39 }
 0x78b   :  { %v883_v28 = vsel %vm86_vm2, %v874_v38, 0  ;;  %v880_v42 = vsel %vm86_vm2, %v873_v41, 0 }
 0x78c   :  { %1369 = vmatpush3.bf16.xpose.msra.mxu1 %v883_v28 }
 0x78d   :  { %1370 = vmatprep.subr.bf16.mxu1 %v1514_v0 }
 0x794   :  { %1371 = vmatpush3.bf16.xpose.msra.mxu1 %v880_v42 }
 0x795   :  { %1392 = vmatprep.subr.bf16.mxu1 %v1666_v2 }
 0x79b   :  { %1373 = vmatmul.mubr.msk.bf16.vlgmr.msra.gmra.mxu1 %vm86_vm2, %v875_v43 }
 0x79c   :  { %1393 = vmatpush3.bf16.msra.mxu1 %v1666_v2 }
 0x79d   :  { %1406 = vmatprep.subr.bf16.mxu1 %v1514_v0 }
 0x85b   :  { %v919_v44 = vpop.f32.mrf.mxu1 }
 0x85d   :  { %v1374_v46 = vpop.f32.mrf.mxu1 }
 0x85f   :  { %v922_v47 = vpop.f32.mrf.mxu1 }
 0x860   :  { %v926_v48 = vpack.c.bf16 %v922_v47, %v919_v44 }
 0x861   :  { %v1375_v49 = vpop.f32.mrf.mxu1 }
 0x862   :  { %1381 = vmatmul.mubr.msk.bf16.vlgmr.msra.gmra.mxu0 %vm86_vm2, %v926_v48 }
 0x863   :  { %1385 = vmatpush3.bf16.msra.mxu0 %v1607_v10  ;;  %1388 = vmatprep.mubr.msk.bf16.mxu0 %vm1515_vm0, %v1514_v0 }
 0x864   :  { %1386 = vmatprep.subr.bf16.mxu0 %v1514_v0 }
 0x867   :  { %1387 = vmatpush3.bf16.msra.mxu0 %v1613_v12 }
 0x868   :  { %1398 = vmatprep.subr.bf16.mxu0 %v1514_v0 }
 0x86a   :  { %1389 = vmatmul.mubr.msk.bf16.vlgmr.msra.gmra.mxu0 %vm86_vm2, %v926_v48 }
 0x86b   :  { %1402 = vmatprep.mubr.msk.bf16.mxu0 %vm1515_vm0, %v1514_v0 }
 0x922   :  { %v964_v2 = vpop.f32.mrf.mxu0 }
 0x923   :  { %v965_v50 = vadd.f32 %v964_v2, %v1672_v37 }
 0x924   :  { %v1382_v57 = vpop.f32.mrf.mxu0 }
 0x926   :  { %v967_v58 = vpop.f32.mrf.mxu0 }
 0x927   :  { %v968_v10 = vadd.f32 %v967_v58, %v1672_v37 }
 0x928   :  { %v1383_v51 = vpop.f32.mrf.mxu0 }
 0x929   :  { %v971_v52 = vpack.c.bf16 %v968_v10, %v965_v50 }
 0x92a   :  { %v1006_v53 = vpop.f32.mrf.mxu0 }
 0x92b   :  { %1014 = vxpose.xlu1.c.b16.start.end [1/1] (short) (narrow) %v971_v52, 32  ;;  %v1007_v55 = vadd.f32 %v1006_v53, %v1677_v45 }
 0x92c   :  { %v1390_v20 = vpop.f32.mrf.mxu0 }
 0x92e   :  { %v1009_v12 = vpop.f32.mrf.mxu0 }
 0x92f   :  { %v1010_v59 = vadd.f32 %v1009_v12, %v1677_v45 }
 0x930   :  { %v1391_v60 = vpop.f32.mrf.mxu0 }
 0x931   :  { %v1013_v61 = vpack.c.bf16 %v1010_v59, %v1007_v55 }
 0x98d   :  { %v1022_v62 = vpop.trf.xlu1 }
 0x98e   :  { %1394 = vmatprep.mubr.msk.bf16.mxu1 %vm495_vm5, %v1022_v62 }
 0x991   :  { %v1023_v63 = vpop.trf.xlu1 }
 0x992   :  { %1395 = vmatmul.mubr.msk.bf16.vlgmr.msra.gmra.mxu1 %vm495_vm5, %v1023_v63 }
 0x993   :  { %1407 = vmatpush3.bf16.msra.mxu1 %v1686_v54  ;;  %1410 = vmatprep.mubr.msk.bf16.mxu1 %vm1515_vm0, %v1514_v0 }
 0x994   :  { %1408 = vmatprep.subr.bf16.mxu1 %v1514_v0 }
 0x997   :  { %1409 = vmatpush3.bf16.msra.mxu1 %v1693_v56 }
 0x99a   :  { %1411 = vmatmul.mubr.msk.bf16.vlgmr.msra.gmra.mxu1 %vm86_vm2, %v926_v48 }
 0xa52   :  { %v1396_v37 = vpop.f32.mrf.mxu1 }
 0xa53   :  { %v1085_v45 = vpack.c.bf16 %v1396_v37, %v1396_v37 }
 0xa54   :  { %v1070_v3 = vpop.f32.mrf.mxu1 }
 0xa55   :  { %v1090_v1 = vsel %vm110_vm1, %v1085_v45, 0 }
 0xa56   :  { %v1397_v5 = vpop.f32.mrf.mxu1  ;;  %1399 = vmatpush3.bf16.msra.mxu0 %v1090_v1 }
 0xa57   :  { %1400 = vmatprep.subr.bf16.mxu0 %v1514_v0 }
 0xa58   :  { %v1073_v7 = vpop.f32.mrf.mxu1 }
 0xa59   :  { %v1084_v54 = vpack.c.bf16 %v1073_v7, %v1070_v3 }
 0xa5a   :  { %v1167_v8 = vpop.f32.mrf.mxu1 }
 0xa5b   :  { %1401 = vmatpush3.bf16.msra.mxu0 %v1084_v54 }
 0xa5c   :  { %v1412_v9 = vpop.f32.mrf.mxu1 }
 0xa5e   :  { %1403 = vmatmul.mubr.msk.bf16.vlgmr.msra.gmra.mxu0 %vm86_vm2, %v1013_v61  ;;  %v1170_v11 = vpop.f32.mrf.mxu1 }
 0xa60   :  { %v1413_v56 = vpop.f32.mrf.mxu1 }
 0xb1e   :  { %v1126_v6 = vpop.f32.mrf.mxu0 }
 0xb1f   :  { %v1168_v13 = vadd.f32 %v1167_v8, %v1126_v6 }
 0xb20   :  { %v1404_v15 = vpop.f32.mrf.mxu0 }
 0xb21   :  { %v1174_v16 = vadd.f32 %v1734_v4, %v1168_v13 }
 0xb22   :  { %v1129_v17 = vpop.f32.mrf.mxu0 }
 0xb23   :  { %v1179_v0 = vadd.f32 %v1220_v14, %v1174_v16  ;;  %v1171_v18 = vadd.f32 %v1170_v11, %v1129_v17 }
 0xb24   :  { %v1405_v22 = vpop.f32.mrf.mxu0 }
 0xb25   :  { %1222 = vst [vmem:[%s1822_s9 + $0x10] sm:$0xff] %v1179_v0  ;;  %v1175_v23 = vadd.f32 %v1734_v4, %v1171_v18 }
 0xb27   :  { %v1180_v24 = vadd.f32 %v1221_v19, %v1175_v23 }
 0xb29   :  { %1223 = vst [vmem:[%s1822_s9 + $0x18] sm:$0xff] %v1180_v24 }
 0xb2a   :  { %1188 = vsyncpa [#allocation3], 1 }
 0xb2b   :  { %1189 = vsyncpa [#allocation5], 1 }

// kernel: rafcn_forward.5
= control target key start
LH: loop header
LB: loop body
LE: loop exit
PB: predicated region body
PF: predicated region fallthrough
CT: control target
= control target key end

     0   :  { %vm88_vm0 = vcmask 130048   ;;  %v5945_v0 = vmov 0.0   ;;  %vm3800_vm1 = vmmov 0   ;;  %vm229_vm2 = vcmask 1040384   ;;  %s5935_s1 = inlined_call_operand.vmem [shape: bf16[16,16], index: 1, kind: input, shape index: {}]   ;;  %s5936_s0 = inlined_call_operand.vmem [shape: f32[2,64,16], index: 0, kind: input, shape index: {}]   ;;  %s5937_s3 = inlined_call_operand.vmem [shape: bf16[16,16], index: 3, kind: input, shape index: {}]   ;;  %s5938_s2 = inlined_call_operand.vmem [shape: f32[1,16], index: 2, kind: input, shape index: {}]   ;;  %s5939_s4 = inlined_call_operand.vmem [shape: f32[1,16], index: 4, kind: input, shape index: {}]   ;;  %s5940_s6 = inlined_call_operand.vmem [shape: bf16[64,1024], index: 6, kind: input, shape index: {}]   ;;  %s5941_s5 = inlined_call_operand.vmem [shape: bf16[16,1024], index: 5, kind: input, shape index: {}]   ;;  %s5942_s7 = inlined_call_operand.vmem [shape: f32[1,1024], index: 7, kind: input, shape index: {}]   ;;  %s5943_s8 = inlined_call_operand.vmem [shape: f32[2,64,1024], index: 8, kind: input, shape index: {}]   ;;  %s5944_s9 = inlined_call_operand.vmem [shape: f32[2,64,1024], index: 9, kind: output, shape index: {}]  }
   0x1   :  { %3672 = vmatprep.subr.bf16.mxu1 %v5945_v0  ;;  %v3856_v1 = vld [vmem:[%s5935_s1] sm:$0xff]   ;;  %3674 = vmatprep.mubr.msk.bf16.mxu1 %vm3800_vm1, %v5945_v0  ;;  %v3868_v3 = vld [vmem:[%s5936_s0 + $0x8] sm:$0xff]  ;;  %v3873_v4 = vld [vmem:[%s5936_s0 + $0x10] sm:$0xff]  ;;  %v5947_v45 = vmov 0   ;;  %vm225_vm3 = vcmask 7168   ;;  %vm730_vm4 = vcmask 523264  }
   0x2   :  { %v3863_v2 = vld [vmem:[%s5936_s0] sm:$0xff]  ;;  %3684 = vmatprep.subr.bf16.mxu0 %v5945_v0  ;;  %3686 = vmatprep.mubr.msk.bf16.mxu0 %vm3800_vm1, %v5945_v0  ;;  %v3882_v5 = vld [vmem:[%s5936_s0 + $0x18] sm:$0xff]  ;;  %v90_v7 = vsel %vm88_vm0, %v3868_v3, 0.0  ;;  %v92_v8 = vsel %vm88_vm0, %v3873_v4, 0.0  ;;  %v3901_v12 = vld [vmem:[%s5936_s0 + $0x28] sm:$0xff]  ;;  %v3944_v46 = vsel %vm229_vm2, 65535, %v5947_v45 }
   0x3   :  { %3673 = vmatpush3.bf16.msra.mxu1 %v3856_v1  ;;  %v89_v6 = vsel %vm88_vm0, %v3863_v2, 0.0  ;;  %v3893_v9 = vld [vmem:[%s5936_s0 + $0x20] sm:$0xff]  ;;  %v94_v11 = vsel %vm88_vm0, %v3882_v5, 0.0  ;;  %v3908_v15 = vld [vmem:[%s5936_s0 + $0x30] sm:$0xff]  ;;  %v98_v17 = vsel %vm88_vm0, %v3901_v12, 0.0  ;;  %v3915_v18 = vld [vmem:[%s5936_s0 + $0x38] sm:$0xff]  ;;  %v304_v52 = vpack.c.bf16 %v3868_v3, %v3863_v2 }
   0x4   :  { %v91_v10 = vadd.f32 %v90_v7, %v89_v6  ;;  %3678 = vmatprep.subr.bf16.mxu1 %v5945_v0  ;;  %v96_v14 = vsel %vm88_vm0, %v3893_v9, 0.0  ;;  %v100_v20 = vsel %vm88_vm0, %v3908_v15, 0.0  ;;  %v102_v22 = vsel %vm88_vm0, %v3915_v18, 0.0  ;;  %v3924_v32 = vld [vmem:[%s5937_s3] sm:$0xff]   ;;  %5995 = vst [vmem:[#allocation2_spill] sm:$0xff] %v3944_v46 }
   0x5   :  { %v3934_v34 = vld [vmem:[%s5938_s2] sm:$0x1] }
   0x6   :  { %v93_v13 = vadd.f32 %v92_v8, %v91_v10  ;;  %v3940_v41 = vld [vmem:[%s5939_s4] sm:$0x1] }
   0x8   :  { %v95_v16 = vadd.f32 %v94_v11, %v93_v13 }
   0xa   :  { %v97_v19 = vadd.f32 %v96_v14, %v95_v16 }
   0xc   :  { %v99_v21 = vadd.f32 %v98_v17, %v97_v19 }
   0xe   :  { %v101_v23 = vadd.f32 %v100_v20, %v99_v21 }
  0x10   :  { %v103_v24 = vadd.f32 %v102_v22, %v101_v23 }
  0x12   :  { %v104_v25 = vrot.slane %v103_v24, 4 }
  0x14   :  { %v105_v26 = vadd.f32 %v104_v25, %v103_v24 }
  0x16   :  { %v106_v27 = vrot.slane %v105_v26, 2 }
  0x18   :  { %v107_v28 = vadd.f32 %v106_v27, %v105_v26 }
  0x1a   :  { %v108_v29 = vrot.slane %v107_v28, 1 }
  0x1c   :  { %v109_v30 = vadd.f32 %v108_v29, %v107_v28 }
  0x1e   :  { %v110_v31 = vmul.f32 0.015625, %v109_v30  ;;  %v305_v30 = vpack.c.bf16 %v3882_v5, %v3873_v4 }
  0x20   :  { %v111_v33 = vpack.c.bf16 %v110_v31, %v110_v31  ;;  %v306_v31 = vpack.c.bf16 %v3901_v12, %v3893_v9 }
  0x22   :  { %3675 = vmatmul.mubr.msk.bf16.vlgmr.msra.gmra.mxu1 %vm88_vm0, %v111_v33 }
  0x23   :  { %3679 = vmatpush3.bf16.msra.mxu1 %v3924_v32  ;;  %3680 = vmatprep.mubr.msk.bf16.mxu1 %vm3800_vm1, %v5945_v0 }
  0x2a   :  { %3681 = vmatmul.mubr.msk.bf16.vlgmr.msra.gmra.mxu1 %vm88_vm0, %v111_v33  ;;  %v307_v33 = vpack.c.bf16 %v3915_v18, %v3908_v15 }
  0x2b   :  { %3692 = vmatprep.mubr.msk.bf16.mxu1 %vm88_vm0, %v304_v52 }
  0xe2   :  { %v155_v35 = vpop.f32.mrf.mxu1 }
  0xe3   :  { %v156_v36 = vadd.f32 %v155_v35, %v3934_v34 }
  0xe4   :  { %v3676_v37 = vpop.f32.mrf.mxu1 }
  0xe5   :  { %v207_v38 = vpack.c.bf16 %v156_v36, %v156_v36 }
  0xe6   :  { %v158_v39 = vpop.f32.mrf.mxu1 }
  0xe7   :  { %209 = vxpose.xlu0.c.b16.start.end [1/1] (short) (narrow) %v207_v38, 16 }
  0xe8   :  { %v3677_v40 = vpop.f32.mrf.mxu1 }
  0xea   :  { %v201_v42 = vpop.f32.mrf.mxu1 }
  0xeb   :  { %v202_v43 = vadd.f32 %v201_v42, %v3940_v41  ;;  %v71_v42 = vld [vmem:[%s5940_s6 + $0xc0] sm:$0xff] }
  0xec   :  { %v3682_v44 = vpop.f32.mrf.mxu1 }
  0xed   :  { %v208_v47 = vpack.c.bf16 %v202_v43, %v202_v43  ;;  %v75_v43 = vld [vmem:[%s5940_s6 + $0xe0] sm:$0xff]  ;;  %v72_v44 = vld [vmem:[%s5940_s6 + $0xc8] sm:$0xff] }
  0xee   :  { %v204_v48 = vpop.f32.mrf.mxu1 }
  0xef   :  { %v233_v49 = vand.u32 %v3944_v46, %v208_v47  ;;  %v4005_v47 = vcombine.low %v71_v42, %v75_v43  ;;  %v4007_v48 = vcombine.high %v71_v42, %v75_v43 }
  0xf0   :  { %v3683_v50 = vpop.f32.mrf.mxu1 }
  0xf1   :  { %3685 = vmatpush3.bf16.msra.mxu0 %v233_v49  ;;  %5996 = vst [vmem:[#allocation3_spill] sm:$0xff] %v4005_v47  ;;  %5997 = vst [vmem:[#allocation4_spill] sm:$0xff] %v4007_v48  ;;  %v76_v49 = vld [vmem:[%s5940_s6 + $0xe8] sm:$0xff]  ;;  %v63_v50 = vld [vmem:[%s5940_s6 + $0x80] sm:$0xff] }
  0xf2   :  { %3700 = vmatprep.subr.bf16.mxu0 %v3856_v1  ;;  %v4018_v52 = vcombine.low %v72_v44, %v76_v49 }
  0xf4   :  { %5998 = vst [vmem:[#allocation5_spill] sm:$0xff] %v4018_v52 }
 0x149   :  { %v217_v51 = vpop.trf.xlu0 }
 0x14a   :  { %3687 = vmatmul.mubr.msk.bf16.vlgmr.msra.gmra.mxu0 %vm225_vm3, %v217_v51  ;;  %v67_v51 = vld [vmem:[%s5940_s6 + $0xa0] sm:$0xff] }
 0x14b   :  { %3701 = vmatpush3.bf16.msra.mxu0 %v3856_v1 }
 0x14c   :  { %742 = vmatprep.subr.bf16.mxu0 %v4007_v48 }
 0x20a   :  { %v269_v53 = vpop.f32.mrf.mxu0 }
 0x20b   :  { %v276_v56 = vsel %vm88_vm0, %v269_v53, -inf }
 0x20c   :  { %v3688_v54 = vpop.f32.mrf.mxu0 }
 0x20d   :  { %v4022_v54 = vcombine.high %v63_v50, %v67_v51 }
 0x20e   :  { %v272_v55 = vpop.f32.mrf.mxu0 }
 0x20f   :  { %v277_v57 = vsel %vm88_vm0, %v272_v55, -inf  ;;  %6000 = vst [vmem:[#allocation7_spill] sm:$0xff] %v4022_v54 }
 0x210   :  { %v278_v58 = vmax.f32 %v276_v56, %v277_v57  ;;  %v3689_v59 = vpop.f32.mrf.mxu0  ;;  %v68_v56 = vld [vmem:[%s5940_s6 + $0xa8] sm:$0xff]  ;;  %v55_v57 = vld [vmem:[%s5940_s6 + $0x40] sm:$0xff] }
 0x211   :  { %v59_v59 = vld [vmem:[%s5940_s6 + $0x60] sm:$0xff] }
 0x212   :  { %v279_v60 = vrot.slane %v278_v58, 4 }
 0x214   :  { %v280_v61 = vmax.f32 %v278_v58, %v279_v60  ;;  %v56_v60 = vld [vmem:[%s5940_s6 + $0x48] sm:$0xff] }
 0x216   :  { %v281_v62 = vrot.slane %v280_v61, 2 }
 0x218   :  { %v282_v63 = vmax.f32 %v280_v61, %v281_v62  ;;  %v60_v61 = vld [vmem:[%s5940_s6 + $0x68] sm:$0xff]  ;;  %v4047_v62 = vcombine.low %v63_v50, %v67_v51 }
 0x21a   :  { %v283_v6 = vrot.slane %v282_v63, 1  ;;  %6002 = vst [vmem:[#allocation9_spill] sm:$0xff] %v4047_v62 }
 0x21c   :  { %v284_v7 = vmax.f32 %v282_v63, %v283_v6  ;;  %v4053_v6 = vcombine.high %v55_v57, %v59_v59 }
 0x21e   :  { %v285_v8 = vsub.f32 %v269_v53, %v284_v7  ;;  %v286_v10 = vsub.f32 %v272_v55, %v284_v7  ;;  %v4020_v53 = vcombine.high %v72_v44, %v76_v49  ;;  %v64_v55 = vld [vmem:[%s5940_s6 + $0x88] sm:$0xff]  ;;  %6004 = vst [vmem:[#allocation11_spill] sm:$0xff] %v4053_v6  ;;  %v47_v7 = vld [vmem:[%s5940_s6] sm:$0xff] }
 0x21f   :  { %v4034_v58 = vcombine.high %v64_v55, %v68_v56  ;;  %v4051_v63 = vcombine.low %v64_v55, %v68_v56 }
 0x220   :  { %v287_v2 = vmul.f32 1.442695, %v285_v8  ;;  %v289_v3 = vmul.f32 1.442695, %v286_v10  ;;  %5999 = vst [vmem:[#allocation6_spill] sm:$0xff] %v4020_v53  ;;  %v73_v8 = vld [vmem:[%s5940_s6 + $0xd0] sm:$0xff] }
 0x221   :  { %6001 = vst [vmem:[#allocation8_spill] sm:$0xff] %v4034_v58  ;;  %6003 = vst [vmem:[#allocation10_spill] sm:$0xff] %v4051_v63  ;;  %v77_v10 = vld [vmem:[%s5940_s6 + $0xf0] sm:$0xff] }
 0x222   :  { %3775 = vpow2.f32 %v287_v2  ;;  %v4065_v2 = vcombine.high %v56_v60, %v60_v61 }
 0x223   :  { %3777 = vpow2.f32 %v289_v3  ;;  %v51_v3 = vld [vmem:[%s5940_s6 + $0x20] sm:$0xff] }
 0x224   :  { %6005 = vst [vmem:[#allocation12_spill] sm:$0xff] %v4065_v2 }
 0x22f   :  { %v3776_v11 = vpop.eup %3775 }
 0x230   :  { %v3778_v13 = vpop.eup %3777  ;;  %v291_v14 = vsel %vm88_vm0, %v3776_v11, 0.0 }
 0x231   :  { %v292_v16 = vsel %vm88_vm0, %v3778_v13, 0.0 }
 0x232   :  { %v293_v17 = vadd.f32 %v292_v16, %v291_v14  ;;  %v78_v14 = vld [vmem:[%s5940_s6 + $0xf8] sm:$0xff]  ;;  %v48_v16 = vld [vmem:[%s5940_s6 + $0x8] sm:$0xff] }
 0x234   :  { %v294_v19 = vrot.slane %v293_v17, 4 }
 0x236   :  { %v295_v20 = vadd.f32 %v294_v19, %v293_v17  ;;  %v52_v17 = vld [vmem:[%s5940_s6 + $0x28] sm:$0xff] }
 0x238   :  { %v296_v21 = vrot.slane %v295_v20, 2 }
 0x23a   :  { %v297_v22 = vadd.f32 %v296_v21, %v295_v20  ;;  %v4087_v20 = vcombine.low %v55_v57, %v59_v59  ;;  %v4091_v21 = vcombine.low %v56_v60, %v60_v61  ;;  %v65_v60 = vld [vmem:[%s5940_s6 + $0x90] sm:$0xff] }
 0x23b   :  { %v69_v61 = vld [vmem:[%s5940_s6 + $0xb0] sm:$0xff] }
 0x23c   :  { %v298_v23 = vrot.slane %v297_v22, 1  ;;  %6008 = vst [vmem:[#allocation15_spill] sm:$0xff] %v4087_v20  ;;  %6009 = vst [vmem:[#allocation16_spill] sm:$0xff] %v4091_v21 }
 0x23e   :  { %v299_v24 = vadd.f32 %v298_v23, %v297_v22  ;;  %v4093_v22 = vcombine.high %v47_v7, %v51_v3  ;;  %v4096_v23 = vcombine.high %v48_v16, %v52_v17 }
 0x240   :  { %3779 = vrcp.f32 %v299_v24  ;;  %6010 = vst [vmem:[#allocation17_spill] sm:$0xff] %v4093_v22  ;;  %6011 = vst [vmem:[#allocation18_spill] sm:$0xff] %v4096_v23  ;;  %v4099_v24 = vcombine.low %v47_v7, %v51_v3  ;;  %v66_v7 = vld [vmem:[%s5940_s6 + $0x98] sm:$0xff] }
 0x242   :  { %6012 = vst [vmem:[#allocation19_spill] sm:$0xff] %v4099_v24 }
 0x24d   :  { %v3780_v25 = vpop.eup %3779 }
 0x24e   :  { %v301_v26 = vmul.f32 %v3780_v25, %v3776_v11  ;;  %v302_v27 = vmul.f32 %v3780_v25, %v3778_v13  ;;  %v4070_v11 = vcombine.low %v73_v8, %v77_v10  ;;  %v74_v13 = vld [vmem:[%s5940_s6 + $0xd8] sm:$0xff]  ;;  %v4103_v25 = vcombine.low %v48_v16, %v52_v17  ;;  %v61_v16 = vld [vmem:[%s5940_s6 + $0x70] sm:$0xff] }
 0x24f   :  { %v4084_v19 = vcombine.low %v74_v13, %v78_v14  ;;  %v58_v17 = vld [vmem:[%s5940_s6 + $0x58] sm:$0xff] }
 0x250   :  { %v303_v28 = vpack.c.bf16 %v302_v27, %v301_v26  ;;  %6006 = vst [vmem:[#allocation13_spill] sm:$0xff] %v4070_v11  ;;  %6013 = vst [vmem:[#allocation20_spill] sm:$0xff] %v4103_v25  ;;  %v4105_v26 = vcombine.high %v73_v8, %v77_v10  ;;  %v4108_v27 = vcombine.high %v74_v13, %v78_v14  ;;  %v70_v8 = vld [vmem:[%s5940_s6 + $0xb8] sm:$0xff]  ;;  %v57_v13 = vld [vmem:[%s5940_s6 + $0x50] sm:$0xff] }
 0x251   :  { %6007 = vst [vmem:[#allocation14_spill] sm:$0xff] %v4084_v19  ;;  %v4143_v10 = vcombine.high %v65_v60, %v69_v61  ;;  %v4145_v3 = vcombine.high %v66_v7, %v70_v8 }
 0x252   :  { %3768 = vmatprep.subr.msk.bf16.mxu1 %vm88_vm0, %v303_v28  ;;  %v321_v29 = vsel %vm88_vm0, %v303_v28, 0  ;;  %6014 = vst [vmem:[#allocation21_spill] sm:$0xff] %v4105_v26  ;;  %6015 = vst [vmem:[#allocation22_spill] sm:$0xff] %v4108_v27  ;;  %v393_v28 = vlaneseq }
 0x253   :  { %3691 = vmatpush3.bf16.xpose.msra.mxu1 %v321_v29  ;;  %6017 = vst [vmem:[#allocation24_spill] sm:$0xff] %v4143_v10  ;;  %6018 = vst [vmem:[#allocation25_spill] sm:$0xff] %v4145_v3 }
 0x254   :  { %3710 = vmatprep.subr.bf16.mxu1 %v3924_v32  ;;  %v4114_v29 = vshrl.u32 %v393_v28, 7  ;;  %v62_v28 = vld [vmem:[%s5940_s6 + $0x78] sm:$0xff] }
 0x256   :  { %v1561_v48 = vsub.s32 2, %v4114_v29 }
 0x25a   :  { %3693 = vmatmul.mubr.msk.bf16.vlgmr.msra.gmra.mxu1 %vm88_vm0, %v305_v30 }
 0x25b   :  { %3696 = vmatprep.mubr.msk.bf16.mxu1 %vm88_vm0, %v306_v31  ;;  %3711 = vmatpush3.bf16.msra.mxu1 %v3924_v32  ;;  %v4117_v31 = vsub.s32 0, %v4114_v29 }
 0x25c   :  { %785 = vmatprep.subr.bf16.mxu1 %v4020_v53 }
 0x262   :  { %3697 = vmatmul.mubr.msk.bf16.gmra.mxu1 %vm88_vm0, %v307_v33 }
 0x31a   :  { %v3694_v35 = vpop.f32.mrf.mxu1 }
 0x31c   :  { %v357_v36 = vpop.f32.mrf.mxu1 }
 0x31e   :  { %v3695_v37 = vpop.f32.mrf.mxu1 }
 0x31f   :  { %v3972_v4 = vpack.c.bf16 %v3695_v37, %v3694_v35 }
 0x320   :  { %v360_v38 = vpop.f32.mrf.mxu1 }
 0x321   :  { %v3970_v39 = vpack.c.bf16 %v360_v38, %v357_v36  ;;  %v4121_v36 = vrot.slane %v3934_v34, %v4117_v31 }
 0x322   :  { %v3698_v5 = vpop.f32.mrf.mxu1 }
 0x323   :  { %3702 = vmatprep.mubr.msk.bf16.mxu0 %vm88_vm0, %v3970_v39  ;;  %3712 = vmatprep.mubr.msk.bf16.mxu1 %vm88_vm0, %v3970_v39  ;;  %6016 = vst [vmem:[#allocation23_spill] sm:$0xff] %v4121_v36 }
 0x324   :  { %v373_v9 = vpop.f32.mrf.mxu1  ;;  %3703 = vmatmul.mubr.msk.bf16.vlgmr.msra.gmra.mxu0 %vm88_vm0, %v3972_v4  ;;  %3713 = vmatmul.mubr.msk.bf16.vlgmr.msra.gmra.mxu1 %vm88_vm0, %v3972_v4 }
 0x325   :  { %743 = vmatpush1.bf16.msra.mxu0 %v4005_v47  ;;  %786 = vmatpush1.bf16.msra.mxu1 %v4018_v52 }
 0x326   :  { %v3699_v12 = vpop.f32.mrf.mxu1  ;;  %744 = vmatprep.subr.bf16.mxu0 %v4022_v54  ;;  %787 = vmatprep.subr.bf16.mxu1 %v4034_v58 }
 0x327   :  { %v3984_v40 = vpack.c.bf16 %v3699_v12, %v3698_v5 }
 0x328   :  { %v376_v15 = vpop.f32.mrf.mxu1 }
 0x329   :  { %v3982_v18 = vpack.c.bf16 %v376_v15, %v373_v9  ;;  %745 = vmatpush1.bf16.msra.mxu0 %v4047_v62  ;;  %788 = vmatpush1.bf16.msra.mxu1 %v4051_v63 }
 0x32a   :  { %746 = vmatprep.subr.bf16.mxu0 %v4053_v6  ;;  %789 = vmatprep.subr.bf16.mxu1 %v4065_v2 }
 0x32b   :  { %3706 = vmatprep.mubr.msk.bf16.mxu0 %vm88_vm0, %v3982_v18  ;;  %3716 = vmatprep.mubr.msk.bf16.mxu1 %vm88_vm0, %v3982_v18 }
 0x32c   :  { %3707 = vmatmul.mubr.msk.bf16.gmra.mxu0 %vm88_vm0, %v3984_v40  ;;  %3717 = vmatmul.mubr.msk.bf16.gmra.mxu1 %vm88_vm0, %v3984_v40 }
 0x32d   :  { %766 = vmatprep.mubr.bf16.mxu0 %v5947_v45  ;;  %809 = vmatprep.mubr.bf16.mxu1 %v5947_v45 }
 0x32e   :  { %747 = vmatpush1.bf16.msra.mxu0 %v4087_v20  ;;  %790 = vmatpush1.bf16.msra.mxu1 %v4091_v21 }
 0x32f   :  { %748 = vmatprep.subr.bf16.mxu0 %v4093_v22  ;;  %791 = vmatprep.subr.bf16.mxu1 %v4096_v23 }
 0x332   :  { %749 = vmatpush1.bf16.msra.mxu0 %v4099_v24  ;;  %792 = vmatpush1.bf16.msra.mxu1 %v4103_v25 }
 0x333   :  { %828 = vmatprep.subr.bf16.mxu0 %v4105_v26  ;;  %871 = vmatprep.subr.bf16.mxu1 %v4108_v27 }
 0x3e4   :  { %v3704_v30 = vpop.f32.mrf.mxu0 }
 0x3e5   :  { %v453_v43 = vadd.f32 %v3704_v30, %v4121_v36  ;;  %v4163_v30 = vcombine.low %v65_v60, %v69_v61 }
 0x3e6   :  { %v444_v33 = vpop.f32.mrf.mxu0 }
 0x3e7   :  { %v445_v38 = vadd.f32 %v444_v33, %v4121_v36  ;;  %6019 = vst [vmem:[#allocation26_spill] sm:$0xff] %v4163_v30  ;;  %v4165_v33 = vcombine.low %v66_v7, %v70_v8 }
 0x3e8   :  { %v3705_v35 = vpop.f32.mrf.mxu0 }
 0x3e9   :  { %v456_v12 = vadd.f32 %v3705_v35, %v4121_v36  ;;  %6020 = vst [vmem:[#allocation27_spill] sm:$0xff] %v4165_v33  ;;  %v4169_v35 = vcombine.high %v57_v13, %v61_v16 }
 0x3ea   :  { %v447_v37 = vpop.f32.mrf.mxu0 }
 0x3eb   :  { %v448_v5 = vadd.f32 %v447_v37, %v4121_v36  ;;  %v476_v49 = vpack.c.bf16 %v456_v12, %v453_v43  ;;  %6021 = vst [vmem:[#allocation28_spill] sm:$0xff] %v4169_v35  ;;  %v4171_v37 = vcombine.high %v58_v17, %v62_v28  ;;  %v54_v12 = vld [vmem:[%s5940_s6 + $0x38] sm:$0xff] }
 0x3ec   :  { %v3708_v9 = vpop.f32.mrf.mxu0 }
 0x3ed   :  { %v475_v15 = vpack.c.bf16 %v448_v5, %v445_v38  ;;  %v469_v57 = vadd.f32 %v3708_v9, %v4121_v36  ;;  %6022 = vst [vmem:[#allocation29_spill] sm:$0xff] %v4171_v37  ;;  %v49_v38 = vld [vmem:[%s5940_s6 + $0x10] sm:$0xff]  ;;  %v50_v9 = vld [vmem:[%s5940_s6 + $0x18] sm:$0xff] }
 0x3ee   :  { %v460_v42 = vpop.f32.mrf.mxu0  ;;  %v53_v5 = vld [vmem:[%s5940_s6 + $0x30] sm:$0xff] }
 0x3ef   :  { %554 = vxpose.xlu0.c.b16.start [1/4] (short) (narrow) %v475_v15, 16  ;;  %v461_v51 = vadd.f32 %v460_v42, %v4121_v36  ;;  %v4189_v15 = vcombine.low %v57_v13, %v61_v16  ;;  %v4191_v42 = vcombine.low %v58_v17, %v62_v28  ;;  %v4195_v43 = vcombine.high %v49_v38, %v53_v5 }
 0x3f0   :  { %v3709_v44 = vpop.f32.mrf.mxu0  ;;  %v4219_v28 = vrot.slane %v3940_v41, %v4117_v31  ;;  %v6030_v41 = vmov 0  }
 0x3f1   :  { %v472_v55 = vadd.f32 %v3709_v44, %v4121_v36  ;;  %6023 = vst [vmem:[#allocation30_spill] sm:$0xff] %v4189_v15  ;;  %6024 = vst [vmem:[#allocation31_spill] sm:$0xff] %v4191_v42  ;;  %v4197_v44 = vcombine.high %v50_v9, %v54_v12 }
 0x3f2   :  { %v463_v50 = vpop.f32.mrf.mxu0  ;;  %6025 = vst [vmem:[#allocation32_spill] sm:$0xff] %v4195_v43  ;;  %6029 = vst [vmem:[#allocation36_spill] sm:$0xff] %v4219_v28 }
 0x3f3   :  { %v464_v34 = vadd.f32 %v463_v50, %v4121_v36  ;;  %555 = vxpose.xlu0.c.b16.cont [2/4] (short) (narrow) %v476_v49, 16  ;;  %v478_v59 = vpack.c.bf16 %v472_v55, %v469_v57  ;;  %6026 = vst [vmem:[#allocation33_spill] sm:$0xff] %v4197_v44  ;;  %v4201_v49 = vcombine.low %v49_v38, %v53_v5 }
 0x3f4   :  { %v4203_v50 = vcombine.low %v50_v9, %v54_v12 }
 0x3f5   :  { %v477_v56 = vpack.c.bf16 %v464_v34, %v461_v51  ;;  %6027 = vst [vmem:[#allocation34_spill] sm:$0xff] %v4201_v49  ;;  %v3714_v51 = vpop.f32.mrf.mxu1 }
 0x3f6   :  { %6028 = vst [vmem:[#allocation35_spill] sm:$0xff] %v4203_v50 }
 0x3f7   :  { %556 = vxpose.xlu0.c.b16.cont [3/4] (short) (narrow) %v477_v56, 16  ;;  %v519_v34 = vpop.f32.mrf.mxu1 }
 0x3f9   :  { %v3715_v55 = vpop.f32.mrf.mxu1 }
 0x3fb   :  { %557 = vxpose.xlu0.c.b16.end [4/4] (short) (narrow) %v478_v59, 16  ;;  %v522_v56 = vpop.f32.mrf.mxu1 }
 0x3fc   :  { %v523_v9 = vadd.f32 %v522_v56, %v4219_v28  ;;  %v531_v56 = vadd.f32 %v3715_v55, %v4219_v28  ;;  %v40_v55 = vld [vmem:[%s5941_s5 + $0x8] sm:$0xff] }
 0x3fd   :  { %v4213_v57 = vpop.f32.mrf.mxu1 }
 0x3ff   :  { %v535_v59 = vpop.f32.mrf.mxu1 }
 0x401   :  { %v4215_v60 = vpop.f32.mrf.mxu1 }
 0x403   :  { %v538_v61 = vpop.f32.mrf.mxu1 }
 0x451   :  { %v562_v14 = vpop.trf.xlu0 }
 0x452   :  { %3399 = vmatmul.mubr.msk.bf16.vlgmr.msra.gmra.mxu0 %vm730_vm4, %v562_v14  ;;  %3400 = vmatmul.mubr.msk.bf16.vlgmr.msra.gmra.mxu1 %vm730_vm4, %v562_v14 }
 0x453   :  { %829 = vmatpush1.bf16.msra.mxu0 %v4070_v11  ;;  %872 = vmatpush1.bf16.msra.mxu1 %v4084_v19 }
 0x454   :  { %830 = vmatprep.subr.bf16.mxu0 %v4143_v10  ;;  %873 = vmatprep.subr.bf16.mxu1 %v4145_v3 }
 0x455   :  { %852 = vmatprep.mubr.bf16.mxu0 %v5947_v45  ;;  %895 = vmatprep.mubr.bf16.mxu1 %v5947_v45 }
 0x457   :  { %831 = vmatpush1.bf16.msra.mxu0 %v4163_v30  ;;  %874 = vmatpush1.bf16.msra.mxu1 %v4165_v33 }
 0x458   :  { %832 = vmatprep.subr.bf16.mxu0 %v4169_v35  ;;  %875 = vmatprep.subr.bf16.mxu1 %v4171_v37 }
 0x45b   :  { %833 = vmatpush1.bf16.msra.mxu0 %v4189_v15  ;;  %876 = vmatpush1.bf16.msra.mxu1 %v4191_v42  ;;  %v536_v15 = vadd.f32 %v535_v59, %v4219_v28  ;;  %v547_v59 = vadd.f32 %v4215_v60, %v4219_v28  ;;  %v45_v60 = vld [vmem:[%s5941_s5 + $0x30] sm:$0xff] }
 0x45c   :  { %834 = vmatprep.subr.bf16.mxu0 %v4195_v43  ;;  %877 = vmatprep.subr.bf16.mxu1 %v4197_v44 }
 0x45f   :  { %835 = vmatpush1.bf16.msra.mxu0 %v4201_v49  ;;  %878 = vmatpush1.bf16.msra.mxu1 %v4203_v50  ;;  %v520_v49 = vadd.f32 %v519_v34, %v4219_v28 }
 0x461   :  { %v550_v44 = vpack.c.bf16 %v523_v9, %v520_v49 }
 0x462   :  { %3401 = vmatmul.mubr.msk.bf16.vlgmr.msra.gmra.mxu0 %vm730_vm4, %v562_v14  ;;  %3402 = vmatmul.mubr.msk.bf16.vlgmr.msra.gmra.mxu1 %vm730_vm4, %v562_v14 }
 0x463   :  { %958 = vmatprep.mubr.bf16.mxu0 %v5947_v45  ;;  %1031 = vmatprep.mubr.bf16.mxu1 %v5947_v45 }
 0x512   :  { %v768_v7 = vpop.f32.mrf.mxu0  ;;  %v811_v8 = vpop.f32.mrf.mxu1 }
 0x514   :  { %v770_v13 = vpop.f32.mrf.mxu0  ;;  %v813_v16 = vpop.f32.mrf.mxu1 }
 0x516   :  { %v772_v17 = vpop.f32.mrf.mxu0  ;;  %v815_v14 = vpop.f32.mrf.mxu1 }
 0x517   :  { %v906_v45 = vpack.c.bf16 %v772_v17, %v768_v7  ;;  %v908_v50 = vpack.c.bf16 %v815_v14, %v811_v8  ;;  %v528_v8 = vadd.f32 %v3714_v51, %v4219_v28  ;;  %v43_v17 = vld [vmem:[%s5941_s5 + $0x20] sm:$0xff]  ;;  %v44_v51 = vld [vmem:[%s5941_s5 + $0x28] sm:$0xff]  ;;  %v539_v14 = vadd.f32 %v538_v61, %v4219_v28 }
 0x518   :  { %v774_v38 = vpop.f32.mrf.mxu0  ;;  %v817_v5 = vpop.f32.mrf.mxu1 }
 0x519   :  { %v907_v12 = vpack.c.bf16 %v774_v38, %v770_v13  ;;  %v909_v0 = vpack.c.bf16 %v817_v5, %v813_v16  ;;  %v552_v61 = vpack.c.bf16 %v539_v14, %v536_v15  ;;  %v41_v15 = vld [vmem:[%s5941_s5 + $0x10] sm:$0xff]  ;;  %v6039_v14 = vmov 0.0  }
 0x51b   :  { %940 = vmatprep.subr.bf16.mxu0 %v907_v12  ;;  %1013 = vmatprep.subr.bf16.mxu1 %v909_v0  ;;  %v551_v0 = vpack.c.bf16 %v531_v56, %v528_v8  ;;  %v4248_v8 = vcombine.high %v40_v55, %v44_v51 }
 0x51c   :  { %941 = vmatpush1.bf16.msra.mxu0 %v906_v45  ;;  %1014 = vmatpush1.bf16.msra.mxu1 %v908_v50  ;;  %v39_v45 = vld [vmem:[%s5941_s5] sm:$0xff] }
 0x51d   :  { %v4246_v56 = vcombine.high %v39_v45, %v43_v17  ;;  %6032 = vst [vmem:[#allocation38_spill] sm:$0xff] %v4248_v8 }
 0x51f   :  { %3403 = vmatmul.mubr.msk.bf16.vlgmr.msra.gmra.mxu0 %vm88_vm0, %v550_v44  ;;  %3407 = vmatmul.mubr.msk.bf16.vlgmr.msra.gmra.mxu1 %vm88_vm0, %v550_v44  ;;  %6031 = vst [vmem:[#allocation37_spill] sm:$0xff] %v4246_v56 }
 0x520   :  { %968 = vmatprep.mubr.bf16.mxu0 %v6030_v41  ;;  %1041 = vmatprep.mubr.bf16.mxu1 %v6030_v41 }
 0x522   :  { %v854_v13 = vpop.f32.mrf.mxu0  ;;  %v897_v7 = vpop.f32.mrf.mxu1 }
 0x524   :  { %v856_v34 = vpop.f32.mrf.mxu0  ;;  %v899_v16 = vpop.f32.mrf.mxu1 }
 0x526   :  { %v858_v49 = vpop.f32.mrf.mxu0  ;;  %v901_v50 = vpop.f32.mrf.mxu1 }
 0x527   :  { %3404 = vmatmul.mubr.msk.bf16.gmra.mxu0 %vm88_vm0, %v551_v0  ;;  %3408 = vmatmul.mubr.msk.bf16.gmra.mxu1 %vm88_vm0, %v551_v0  ;;  %v910_v43 = vpack.c.bf16 %v858_v49, %v854_v13  ;;  %v912_v42 = vpack.c.bf16 %v901_v50, %v897_v7  ;;  %v46_v13 = vld [vmem:[%s5941_s5 + $0x38] sm:$0xff]  ;;  %v4277_v7 = vcombine.low %v39_v45, %v43_v17  ;;  %v3443_v45 = vld [vmem:[%s5936_s0 + $0x40] sm:$0xff]  ;;  %v3444_v50 = vld [vmem:[%s5936_s0 + $0x48] sm:$0xff] }
 0x528   :  { %v860_v38 = vpop.f32.mrf.mxu0  ;;  %v903_v5 = vpop.f32.mrf.mxu1  ;;  %978 = vmatprep.mubr.bf16.mxu0 %v6030_v41  ;;  %1051 = vmatprep.mubr.bf16.mxu1 %v6030_v41  ;;  %v1856_v17 = vsel %vm88_vm0, %v3443_v45, 0.0 }
 0x529   :  { %v911_v9 = vpack.c.bf16 %v860_v38, %v856_v34  ;;  %v913_v12 = vpack.c.bf16 %v903_v5, %v899_v16  ;;  %6033 = vst [vmem:[#allocation39_spill] sm:$0xff] %v4277_v7  ;;  %v4279_v34 = vcombine.low %v40_v55, %v44_v51  ;;  %v4281_v16 = vcombine.high %v41_v15, %v45_v60  ;;  %v3445_v51 = vld [vmem:[%s5936_s0 + $0x50] sm:$0xff] }
 0x52a   :  { %v1857_v55 = vsel %vm88_vm0, %v3444_v50, 0.0  ;;  %v1859_v5 = vsel %vm88_vm0, %v3445_v51, 0.0 }
 0x52b   :  { %1086 = vmatprep.subr.bf16.mxu0 %v911_v9  ;;  %1159 = vmatprep.subr.bf16.mxu1 %v913_v12  ;;  %6034 = vst [vmem:[#allocation40_spill] sm:$0xff] %v4279_v34  ;;  %6035 = vst [vmem:[#allocation41_spill] sm:$0xff] %v4281_v16  ;;  %v1858_v38 = vadd.f32 %v1857_v55, %v1856_v17  ;;  %v3446_v9 = vld [vmem:[%s5936_s0 + $0x58] sm:$0xff] }
 0x52c   :  { %1087 = vmatpush1.bf16.msra.mxu0 %v910_v43  ;;  %1160 = vmatpush1.bf16.msra.mxu1 %v912_v42  ;;  %v544_v43 = vadd.f32 %v4213_v57, %v4219_v28  ;;  %v42_v57 = vld [vmem:[%s5941_s5 + $0x18] sm:$0xff] }
 0x52d   :  { %1272 = vmatprep.subr.bf16.mxu0 %v4246_v56  ;;  %1345 = vmatprep.subr.bf16.mxu1 %v4248_v8  ;;  %v4283_v49 = vcombine.high %v42_v57, %v46_v13  ;;  %v1860_v12 = vadd.f32 %v1859_v5, %v1858_v38  ;;  %v3450_v17 = vld [vmem:[%s5936_s0 + $0x78] sm:$0xff] }
 0x52e   :  { %v553_v42 = vpack.c.bf16 %v547_v59, %v544_v43  ;;  %v3447_v59 = vld [vmem:[%s5936_s0 + $0x60] sm:$0xff]  ;;  %v1869_v51 = vsel %vm88_vm0, %v3450_v17, 0.0 }
 0x52f   :  { %3405 = vmatmul.mubr.msk.bf16.gmra.mxu0 %vm88_vm0, %v552_v61  ;;  %3409 = vmatmul.mubr.msk.bf16.gmra.mxu1 %vm88_vm0, %v552_v61  ;;  %6036 = vst [vmem:[#allocation42_spill] sm:$0xff] %v4283_v49 }
 0x530   :  { %988 = vmatprep.mubr.bf16.mxu0 %v6030_v41  ;;  %1061 = vmatprep.mubr.bf16.mxu1 %v6030_v41 }
 0x537   :  { %3406 = vmatmul.mubr.msk.bf16.gmra.mxu0 %vm88_vm0, %v553_v42  ;;  %3410 = vmatmul.mubr.msk.bf16.gmra.mxu1 %vm88_vm0, %v553_v42 }
 0x538   :  { %1104 = vmatprep.mubr.bf16.mxu0 %v6030_v41  ;;  %1177 = vmatprep.mubr.bf16.mxu1 %v6030_v41 }
 0x53f   :  { %3411 = vmatmul.mubr.msk.bf16.vlgmr.msra.gmra.mxu0 %vm88_vm0, %v550_v44  ;;  %3415 = vmatmul.mubr.msk.bf16.vlgmr.msra.gmra.mxu1 %vm88_vm0, %v550_v44  ;;  %v4305_v44 = vcombine.low %v41_v15, %v45_v60  ;;  %v3448_v15 = vld [vmem:[%s5936_s0 + $0x68] sm:$0xff] }
 0x540   :  { %1114 = vmatprep.mubr.bf16.mxu0 %v6030_v41  ;;  %1187 = vmatprep.mubr.bf16.mxu1 %v6030_v41 }
 0x541   :  { %1273 = vmatpush1.bf16.msra.mxu0 %v4277_v7  ;;  %1346 = vmatpush1.bf16.msra.mxu1 %v4279_v34  ;;  %6037 = vst [vmem:[#allocation43_spill] sm:$0xff] %v4305_v44 }
 0x542   :  { %1418 = vmatprep.subr.bf16.mxu0 %v4281_v16  ;;  %1491 = vmatprep.subr.bf16.mxu1 %v4283_v49 }
 0x547   :  { %3412 = vmatmul.mubr.msk.bf16.gmra.mxu0 %vm88_vm0, %v551_v0  ;;  %3416 = vmatmul.mubr.msk.bf16.gmra.mxu1 %vm88_vm0, %v551_v0  ;;  %v4307_v0 = vcombine.low %v42_v57, %v46_v13  ;;  %v1865_v57 = vsel %vm88_vm0, %v3448_v15, 0.0  ;;  %v3449_v13 = vld [vmem:[%s5936_s0 + $0x70] sm:$0xff] }
 0x548   :  { %1124 = vmatprep.mubr.bf16.mxu0 %v6030_v41  ;;  %1197 = vmatprep.mubr.bf16.mxu1 %v6030_v41  ;;  %v1867_v50 = vsel %vm88_vm0, %v3449_v13, 0.0 }
 0x549   :  { %6038 = vst [vmem:[#allocation44_spill] sm:$0xff] %v4307_v0 }
 0x54f   :  { %3413 = vmatmul.mubr.msk.bf16.gmra.mxu0 %vm88_vm0, %v552_v61  ;;  %3417 = vmatmul.mubr.msk.bf16.gmra.mxu1 %vm88_vm0, %v552_v61  ;;  %v1861_v61 = vsel %vm88_vm0, %v3446_v9, 0.0 }
 0x550   :  { %1134 = vmatprep.mubr.bf16.mxu0 %v6030_v41  ;;  %1207 = vmatprep.mubr.bf16.mxu1 %v6030_v41  ;;  %v1862_v43 = vadd.f32 %v1861_v61, %v1860_v12 }
 0x557   :  { %3414 = vmatmul.mubr.msk.bf16.gmra.mxu0 %vm88_vm0, %v553_v42  ;;  %3418 = vmatmul.mubr.msk.bf16.gmra.mxu1 %vm88_vm0, %v553_v42  ;;  %v1863_v42 = vsel %vm88_vm0, %v3447_v59, 0.0 }
 0x558   :  { %1290 = vmatprep.mubr.bf16.mxu0 %v6030_v41  ;;  %1363 = vmatprep.mubr.bf16.mxu1 %v6030_v41  ;;  %v1864_v60 = vadd.f32 %v1863_v42, %v1862_v43 }
 0x55a   :  { %v1866_v45 = vadd.f32 %v1865_v57, %v1864_v60 }
 0x55c   :  { %v1868_v55 = vadd.f32 %v1867_v50, %v1866_v45 }
 0x55e   :  { %v1870_v38 = vadd.f32 %v1869_v51, %v1868_v55 }
 0x55f   :  { %3427 = vmatmul.mubr.msk.bf16.vlgmr.msra.gmra.mxu0 %vm88_vm0, %v3970_v39  ;;  %3431 = vmatmul.mubr.msk.bf16.vlgmr.msra.gmra.mxu1 %vm88_vm0, %v3970_v39 }
 0x560   :  { %1300 = vmatprep.mubr.bf16.mxu0 %v6030_v41  ;;  %1373 = vmatprep.mubr.bf16.mxu1 %v6030_v41  ;;  %v1871_v5 = vrot.slane %v1870_v38, 4 }
 0x561   :  { %1419 = vmatpush1.bf16.msra.mxu0 %v4305_v44  ;;  %1492 = vmatpush1.bf16.msra.mxu1 %v4307_v0 }
 0x562   :  { %3720 = vmatprep.subr.bf16.mxu0 %v6039_v14  ;;  %3732 = vmatprep.subr.bf16.mxu1 %v6039_v14  ;;  %v1872_v9 = vadd.f32 %v1871_v5, %v1870_v38 }
 0x564   :  { %v1873_v12 = vrot.slane %v1872_v9, 2 }
 0x567   :  { %3428 = vmatmul.mubr.msk.bf16.gmra.mxu0 %vm88_vm0, %v3972_v4  ;;  %3432 = vmatmul.mubr.msk.bf16.gmra.mxu1 %vm88_vm0, %v3972_v4 }
 0x568   :  { %1310 = vmatprep.mubr.bf16.mxu0 %v6030_v41  ;;  %1383 = vmatprep.mubr.bf16.mxu1 %v6030_v41 }
 0x56f   :  { %3429 = vmatmul.mubr.msk.bf16.gmra.mxu0 %vm88_vm0, %v3982_v18  ;;  %3433 = vmatmul.mubr.msk.bf16.gmra.mxu1 %vm88_vm0, %v3982_v18 }
 0x570   :  { %1320 = vmatprep.mubr.bf16.mxu0 %v6030_v41  ;;  %1393 = vmatprep.mubr.bf16.mxu1 %v6030_v41 }
 0x577   :  { %3430 = vmatmul.mubr.msk.bf16.gmra.mxu0 %vm88_vm0, %v3984_v40  ;;  %3434 = vmatmul.mubr.msk.bf16.gmra.mxu1 %vm88_vm0, %v3984_v40 }
 0x578   :  { %1436 = vmatprep.mubr.bf16.mxu0 %v6030_v41  ;;  %1509 = vmatprep.mubr.bf16.mxu1 %v6030_v41 }
 0x57f   :  { %3435 = vmatmul.mubr.msk.bf16.vlgmr.msra.gmra.mxu0 %vm88_vm0, %v3970_v39  ;;  %3439 = vmatmul.mubr.msk.bf16.vlgmr.msra.gmra.mxu1 %vm88_vm0, %v3970_v39  ;;  %v1874_v39 = vadd.f32 %v1873_v12, %v1872_v9 }
 0x580   :  { %1446 = vmatprep.mubr.bf16.mxu0 %v6030_v41  ;;  %1519 = vmatprep.mubr.bf16.mxu1 %v6030_v41 }
 0x581   :  { %3721 = vmatpush3.bf16.msra.mxu0 %v3856_v1  ;;  %v1875_v1 = vrot.slane %v1874_v39, 1 }
 0x582   :  { %3726 = vmatprep.subr.bf16.mxu0 %v6039_v14 }
 0x583   :  { %v1876_v61 = vadd.f32 %v1875_v1, %v1874_v39 }
 0x587   :  { %3436 = vmatmul.mubr.msk.bf16.gmra.mxu0 %vm88_vm0, %v3972_v4  ;;  %3440 = vmatmul.mubr.msk.bf16.gmra.mxu1 %vm88_vm0, %v3972_v4  ;;  %v1877_v4 = vmul.f32 0.015625, %v1876_v61 }
 0x588   :  { %1456 = vmatprep.mubr.bf16.mxu0 %v6030_v41  ;;  %1529 = vmatprep.mubr.bf16.mxu1 %v6030_v41 }
 0x58f   :  { %3437 = vmatmul.mubr.msk.bf16.gmra.mxu0 %vm88_vm0, %v3982_v18  ;;  %3441 = vmatmul.mubr.msk.bf16.gmra.mxu1 %vm88_vm0, %v3982_v18  ;;  %v1878_v18 = vpack.c.bf16 %v1877_v4, %v1877_v4 }
 0x590   :  { %1466 = vmatprep.mubr.bf16.mxu0 %v6030_v41  ;;  %1539 = vmatprep.mubr.bf16.mxu1 %v6030_v41 }
 0x597   :  { %3438 = vmatmul.mubr.msk.bf16.gmra.mxu0 %vm88_vm0, %v3984_v40  ;;  %3442 = vmatmul.mubr.msk.bf16.gmra.mxu1 %vm88_vm0, %v3984_v40 }
 0x598   :  { %3722 = vmatprep.mubr.msk.bf16.mxu0 %vm3800_vm1, %v6039_v14  ;;  %3734 = vmatprep.mubr.msk.bf16.mxu1 %vm3800_vm1, %v6039_v14 }
 0x59f   :  { %3723 = vmatmul.mubr.msk.bf16.vlgmr.msra.gmra.mxu0 %vm88_vm0, %v1878_v18 }
 0x5a0   :  { %3727 = vmatpush3.bf16.msra.mxu0 %v3924_v32  ;;  %3728 = vmatprep.mubr.msk.bf16.mxu0 %vm3800_vm1, %v6039_v14 }
 0x5a7   :  { %3729 = vmatmul.mubr.msk.bf16.vlgmr.msra.gmra.mxu0 %vm88_vm0, %v1878_v18 }
 0x5df   :  { %v4402_v59 = vpop.f32.mrf.mxu0  ;;  %v4404_v40 = vpop.f32.mrf.mxu1 }
 0x5e1   :  { %v4406_v43 = vpop.f32.mrf.mxu0  ;;  %v4408_v42 = vpop.f32.mrf.mxu1 }
 0x5e3   :  { %v4410_v15 = vpop.f32.mrf.mxu0  ;;  %v4412_v60 = vpop.f32.mrf.mxu1 }
 0x5e5   :  { %v4414_v57 = vpop.f32.mrf.mxu0  ;;  %v4416_v32 = vpop.f32.mrf.mxu1 }
 0x5e7   :  { %v4418_v13 = vpop.f32.mrf.mxu0  ;;  %v4420_v14 = vpop.f32.mrf.mxu1 }
 0x5e9   :  { %v4422_v45 = vpop.f32.mrf.mxu0  ;;  %v4424_v50 = vpop.f32.mrf.mxu1 }
 0x5eb   :  { %v4426_v17 = vpop.f32.mrf.mxu0  ;;  %v4428_v55 = vpop.f32.mrf.mxu1 }
 0x5ed   :  { %v4430_v51 = vpop.f32.mrf.mxu0  ;;  %v4432_v38 = vpop.f32.mrf.mxu1 }
 0x5ef   :  { %v4434_v5 = vpop.f32.mrf.mxu0  ;;  %v4436_v9 = vpop.f32.mrf.mxu1 }
 0x5f1   :  { %v4438_v12 = vpop.f32.mrf.mxu0  ;;  %v4440_v39 = vpop.f32.mrf.mxu1 }
 0x5f3   :  { %v4442_v1 = vpop.f32.mrf.mxu0  ;;  %v4444_v61 = vpop.f32.mrf.mxu1 }
 0x5f5   :  { %v4446_v4 = vpop.f32.mrf.mxu0  ;;  %v4448_v18 = vpop.f32.mrf.mxu1 }
 0x5f7   :  { %v4450_v0 = vpop.f32.mrf.mxu0  ;;  %v4452_v44 = vpop.f32.mrf.mxu1 }
 0x5f9   :  { %v4454_v49 = vpop.f32.mrf.mxu0  ;;  %v4456_v16 = vpop.f32.mrf.mxu1 }
 0x5fb   :  { %v4458_v34 = vpop.f32.mrf.mxu0  ;;  %v4460_v7 = vpop.f32.mrf.mxu1 }
 0x5fd   :  { %v4462_v8 = vpop.f32.mrf.mxu0  ;;  %v4464_v56 = vpop.f32.mrf.mxu1 }
 0x5ff   :  { %v4466_v28 = vpop.f32.mrf.mxu0  ;;  %v4468_v37 = vpop.f32.mrf.mxu1 }
 0x601   :  { %v4470_v35 = vpop.f32.mrf.mxu0  ;;  %v4472_v33 = vpop.f32.mrf.mxu1 }
 0x603   :  { %v4474_v30 = vpop.f32.mrf.mxu0  ;;  %v4476_v3 = vpop.f32.mrf.mxu1 }
 0x605   :  { %v4478_v10 = vpop.f32.mrf.mxu0  ;;  %v4480_v19 = vpop.f32.mrf.mxu1 }
 0x607   :  { %v4482_v11 = vpop.f32.mrf.mxu0  ;;  %v4484_v36 = vpop.f32.mrf.mxu1 }
 0x609   :  { %v4486_v27 = vpop.f32.mrf.mxu0  ;;  %v4488_v26 = vpop.f32.mrf.mxu1 }
 0x60b   :  { %v4490_v25 = vpop.f32.mrf.mxu0  ;;  %v4492_v24 = vpop.f32.mrf.mxu1 }
 0x60c   :  { %6040 = vst [vmem:[#allocation45_spill] sm:$0xff] %v4490_v25  ;;  %6041 = vst [vmem:[#allocation46_spill] sm:$0xff] %v4492_v24 }
 0x60d   :  { %v4494_v41 = vpop.f32.mrf.mxu0  ;;  %v4496_v23 = vpop.f32.mrf.mxu1 }
 0x60e   :  { %6042 = vst [vmem:[#allocation47_spill] sm:$0xff] %v4494_v41  ;;  %6043 = vst [vmem:[#allocation48_spill] sm:$0xff] %v4496_v23 }
 0x60f   :  { %v4498_v22 = vpop.f32.mrf.mxu0  ;;  %v4500_v21 = vpop.f32.mrf.mxu1 }
 0x610   :  { %6044 = vst [vmem:[#allocation49_spill] sm:$0xff] %v4498_v22  ;;  %6045 = vst [vmem:[#allocation50_spill] sm:$0xff] %v4500_v21 }
 0x611   :  { %v4502_v20 = vpop.f32.mrf.mxu0  ;;  %v4504_v2 = vpop.f32.mrf.mxu1 }
 0x612   :  { %6046 = vst [vmem:[#allocation51_spill] sm:$0xff] %v4502_v20  ;;  %6047 = vst [vmem:[#allocation52_spill] sm:$0xff] %v4504_v2 }
 0x613   :  { %v4506_v6 = vpop.f32.mrf.mxu0  ;;  %v4508_v63 = vpop.f32.mrf.mxu1 }
 0x614   :  { %6048 = vst [vmem:[#allocation53_spill] sm:$0xff] %v4506_v6  ;;  %6049 = vst [vmem:[#allocation54_spill] sm:$0xff] %v4508_v63 }
 0x615   :  { %v4510_v62 = vpop.f32.mrf.mxu0  ;;  %v4512_v58 = vpop.f32.mrf.mxu1 }
 0x616   :  { %6050 = vst [vmem:[#allocation55_spill] sm:$0xff] %v4510_v62  ;;  %6051 = vst [vmem:[#allocation56_spill] sm:$0xff] %v4512_v58  ;;  %v4530_v62 = vld [vmem:[%s5942_s7] sm:$0xff]  ;;  %v1557_v58 = vsub.s32 1, %v4114_v29 }
 0x617   :  { %v4514_v54 = vpop.f32.mrf.mxu0  ;;  %v4516_v52 = vpop.f32.mrf.mxu1 }
 0x618   :  { %6052 = vst [vmem:[#allocation57_spill] sm:$0xff] %v4514_v54  ;;  %6053 = vst [vmem:[#allocation58_spill] sm:$0xff] %v4516_v52  ;;  %v1565_v54 = vsub.s32 3, %v4114_v29  ;;  %v4548_v21 = vrot.slane %v4530_v62, %v1557_v58 }
 0x619   :  { %v4518_v47 = vpop.f32.mrf.mxu0  ;;  %v4520_v53 = vpop.f32.mrf.mxu1 }
 0x61a   :  { %6054 = vst [vmem:[#allocation59_spill] sm:$0xff] %v4518_v47  ;;  %6055 = vst [vmem:[#allocation60_spill] sm:$0xff] %v4520_v53  ;;  %v4540_v53 = vrot.slane %v4530_v62, %v4117_v31  ;;  %v1655_v31 = vld [vmem:[%s5943_s8] sm:$0xff] }
 0x61b   :  { %v4523_v46 = vpop.f32.mrf.mxu0  ;;  %v4525_v2 = vpop.f32.mrf.mxu1 }
 0x61c   :  { %6056 = vst [vmem:[#allocation61_spill] sm:$0xff] %v4523_v46  ;;  %6057 = vst [vmem:[#allocation62_spill] sm:$0xff] %v4525_v2  ;;  %v4543_v46 = vrot.slane %v4530_v62, %v1561_v48  ;;  %v1657_v48 = vld [vmem:[%s5943_s8 + $0x10] sm:$0xff] }
 0x61d   :  { %v4534_v52 = vpop.f32.mrf.mxu0  ;;  %v4536_v47 = vpop.f32.mrf.mxu1 }
 0x61e   :  { %6058 = vst [vmem:[#allocation63_spill] sm:$0xff] %v4534_v52  ;;  %6059 = vst [vmem:[#allocation64_spill] sm:$0xff] %v4536_v47  ;;  %v4551_v52 = vrot.slane %v4530_v62, %v1565_v54  ;;  %v1656_v54 = vld [vmem:[%s5943_s8 + $0x8] sm:$0xff] }
 0x61f   :  { %v1292_v2 = vpop.f32.mrf.mxu0  ;;  %v1365_v63 = vpop.f32.mrf.mxu1 }
 0x620   :  { %v1293_v6 = vadd.f32 %v1292_v2, %v4402_v59  ;;  %v1366_v20 = vadd.f32 %v1365_v63, %v4404_v40  ;;  %v1658_v40 = vld [vmem:[%s5943_s8 + $0x18] sm:$0xff] }
 0x621   :  { %v1294_v47 = vpop.f32.mrf.mxu0  ;;  %v1367_v22 = vpop.f32.mrf.mxu1 }
 0x622   :  { %v1591_v2 = vadd.f32 %v4540_v53, %v1293_v6  ;;  %v1593_v63 = vadd.f32 %v4543_v46, %v1366_v20  ;;  %v1295_v58 = vadd.f32 %v1294_v47, %v4406_v43  ;;  %v1368_v59 = vadd.f32 %v1367_v22, %v4408_v42 }
 0x623   :  { %v1296_v23 = vpop.f32.mrf.mxu0  ;;  %v1369_v41 = vpop.f32.mrf.mxu1 }
 0x624   :  { %v1719_v24 = vadd.f32 %v1655_v31, %v1591_v2  ;;  %v1721_v25 = vadd.f32 %v1657_v48, %v1593_v63  ;;  %v1592_v6 = vadd.f32 %v4548_v21, %v1295_v58  ;;  %v1594_v20 = vadd.f32 %v4551_v52, %v1368_v59  ;;  %v1663_v2 = vld [vmem:[%s5943_s8 + $0x40] sm:$0xff]  ;;  %v1666_v63 = vld [vmem:[%s5943_s8 + $0x58] sm:$0xff] }
 0x625   :  { %v1297_v47 = vadd.f32 %v1296_v23, %v4410_v15  ;;  %v1370_v22 = vadd.f32 %v1369_v41, %v4412_v60  ;;  %v1298_v43 = vpop.f32.mrf.mxu0  ;;  %v1371_v42 = vpop.f32.mrf.mxu1  ;;  %v1665_v23 = vld [vmem:[%s5943_s8 + $0x50] sm:$0xff] }
 0x626   :  { %1783 = vst [vmem:[%s5944_s9] sm:$0xff] %v1719_v24  ;;  %1785 = vst [vmem:[%s5944_s9 + $0x10] sm:$0xff] %v1721_v25  ;;  %v1720_v31 = vadd.f32 %v1656_v54, %v1592_v6  ;;  %v1722_v48 = vadd.f32 %v1658_v40, %v1594_v20  ;;  %v1299_v41 = vadd.f32 %v1298_v43, %v4414_v57  ;;  %v1664_v25 = vld [vmem:[%s5943_s8 + $0x48] sm:$0xff] }
 0x627   :  { %v1372_v15 = vadd.f32 %v1371_v42, %v4416_v32  ;;  %v1599_v24 = vadd.f32 %v4540_v53, %v1297_v47  ;;  %v1601_v60 = vadd.f32 %v4543_v46, %v1370_v22  ;;  %v1302_v58 = vpop.f32.mrf.mxu0  ;;  %v1375_v59 = vpop.f32.mrf.mxu1  ;;  %v1671_v47 = vld [vmem:[%s5943_s8 + $0x80] sm:$0xff]  ;;  %v1673_v22 = vld [vmem:[%s5943_s8 + $0x90] sm:$0xff] }
 0x628   :  { %1784 = vst [vmem:[%s5944_s9 + $0x8] sm:$0xff] %v1720_v31  ;;  %1786 = vst [vmem:[%s5944_s9 + $0x18] sm:$0xff] %v1722_v48  ;;  %v1600_v57 = vadd.f32 %v4548_v21, %v1299_v41  ;;  %v1303_v54 = vadd.f32 %v1302_v58, %v4418_v13  ;;  %v1376_v40 = vadd.f32 %v1375_v59, %v4420_v14 }
 0x629   :  { %v1602_v32 = vadd.f32 %v4551_v52, %v1372_v15  ;;  %v1727_v6 = vadd.f32 %v1663_v2, %v1599_v24  ;;  %v1729_v20 = vadd.f32 %v1665_v23, %v1601_v60  ;;  %v1304_v43 = vpop.f32.mrf.mxu0  ;;  %v1377_v42 = vpop.f32.mrf.mxu1 }
 0x62a   :  { %v1728_v31 = vadd.f32 %v1664_v25, %v1600_v57  ;;  %v1607_v41 = vadd.f32 %v4540_v53, %v1303_v54  ;;  %v1609_v13 = vadd.f32 %v4543_v46, %v1376_v40  ;;  %v1305_v14 = vadd.f32 %v1304_v43, %v4422_v45  ;;  %v1672_v25 = vld [vmem:[%s5943_s8 + $0x88] sm:$0xff]  ;;  %v1674_v45 = vld [vmem:[%s5943_s8 + $0x98] sm:$0xff]  ;;  %v1679_v57 = vld [vmem:[%s5943_s8 + $0xc0] sm:$0xff] }
 0x62b   :  { %v1730_v48 = vadd.f32 %v1666_v63, %v1602_v32  ;;  %1791 = vst [vmem:[%s5944_s9 + $0x40] sm:$0xff] %v1727_v6  ;;  %1793 = vst [vmem:[%s5944_s9 + $0x50] sm:$0xff] %v1729_v20  ;;  %v1378_v2 = vadd.f32 %v1377_v42, %v4424_v50  ;;  %v1306_v23 = vpop.f32.mrf.mxu0  ;;  %v1379_v15 = vpop.f32.mrf.mxu1  ;;  %v1681_v32 = vld [vmem:[%s5943_s8 + $0xd0] sm:$0xff]  ;;  %v1680_v43 = vld [vmem:[%s5943_s8 + $0xc8] sm:$0xff] }
 0x62c   :  { %1792 = vst [vmem:[%s5944_s9 + $0x48] sm:$0xff] %v1728_v31  ;;  %v1735_v24 = vadd.f32 %v1671_v47, %v1607_v41  ;;  %v1737_v60 = vadd.f32 %v1673_v22, %v1609_v13  ;;  %v1307_v50 = vadd.f32 %v1306_v23, %v4426_v17  ;;  %v1380_v63 = vadd.f32 %v1379_v15, %v4428_v55  ;;  %v1682_v42 = vld [vmem:[%s5943_s8 + $0xd8] sm:$0xff] }
 0x62d   :  { %1794 = vst [vmem:[%s5944_s9 + $0x58] sm:$0xff] %v1730_v48  ;;  %v1608_v58 = vadd.f32 %v4548_v21, %v1305_v14  ;;  %v1610_v59 = vadd.f32 %v4551_v52, %v1378_v2  ;;  %v1308_v54 = vpop.f32.mrf.mxu0  ;;  %v1381_v40 = vpop.f32.mrf.mxu1 }
 0x62e   :  { %1799 = vst [vmem:[%s5944_s9 + $0x80] sm:$0xff] %v1735_v24  ;;  %1801 = vst [vmem:[%s5944_s9 + $0x90] sm:$0xff] %v1737_v60  ;;  %v1615_v17 = vadd.f32 %v4540_v53, %v1307_v50  ;;  %v1617_v55 = vadd.f32 %v4543_v46, %v1380_v63  ;;  %v1309_v6 = vadd.f32 %v1308_v54, %v4430_v51 }
 0x62f   :  { %v1382_v20 = vadd.f32 %v1381_v40, %v4432_v38  ;;  %v1736_v47 = vadd.f32 %v1672_v25, %v1608_v58  ;;  %v1738_v22 = vadd.f32 %v1674_v45, %v1610_v59  ;;  %v1312_v31 = vpop.f32.mrf.mxu0  ;;  %v1385_v48 = vpop.f32.mrf.mxu1  ;;  %v1687_v25 = vld [vmem:[%s5943_s8 + $0x100] sm:$0xff]  ;;  %v1688_v58 = vld [vmem:[%s5943_s8 + $0x108] sm:$0xff]  ;;  %v1690_v59 = vld [vmem:[%s5943_s8 + $0x118] sm:$0xff] }
 0x630   :  { %v1743_v41 = vadd.f32 %v1679_v57, %v1615_v17  ;;  %v1745_v13 = vadd.f32 %v1681_v32, %v1617_v55  ;;  %v1616_v14 = vadd.f32 %v4548_v21, %v1309_v6  ;;  %v1313_v38 = vadd.f32 %v1312_v31, %v4434_v5  ;;  %v1689_v5 = vld [vmem:[%s5943_s8 + $0x110] sm:$0xff]  ;;  %v1695_v6 = vld [vmem:[%s5943_s8 + $0x140] sm:$0xff] }
 0x631   :  { %v1618_v51 = vadd.f32 %v4551_v52, %v1382_v20  ;;  %1800 = vst [vmem:[%s5944_s9 + $0x88] sm:$0xff] %v1736_v47  ;;  %1802 = vst [vmem:[%s5944_s9 + $0x98] sm:$0xff] %v1738_v22  ;;  %v1386_v2 = vadd.f32 %v1385_v48, %v4436_v9  ;;  %v1314_v23 = vpop.f32.mrf.mxu0  ;;  %v1387_v15 = vpop.f32.mrf.mxu1  ;;  %v1697_v20 = vld [vmem:[%s5943_s8 + $0x150] sm:$0xff] }
 0x632   :  { %1807 = vst [vmem:[%s5944_s9 + $0xc0] sm:$0xff] %v1743_v41  ;;  %1809 = vst [vmem:[%s5944_s9 + $0xd0] sm:$0xff] %v1745_v13  ;;  %v1744_v24 = vadd.f32 %v1680_v43, %v1616_v14  ;;  %v1315_v9 = vadd.f32 %v1314_v23, %v4438_v12  ;;  %v1388_v45 = vadd.f32 %v1387_v15, %v4440_v39  ;;  %v1569_v14 = vsub.s32 4, %v4114_v29 }
 0x633   :  { %v1746_v60 = vadd.f32 %v1682_v42, %v1618_v51  ;;  %v1623_v50 = vadd.f32 %v4540_v53, %v1313_v38  ;;  %v1625_v63 = vadd.f32 %v4543_v46, %v1386_v2  ;;  %v1316_v57 = vpop.f32.mrf.mxu0  ;;  %v1389_v32 = vpop.f32.mrf.mxu1  ;;  %v1577_v51 = vsub.s32 6, %v4114_v29 }
 0x634   :  { %1808 = vst [vmem:[%s5944_s9 + $0xc8] sm:$0xff] %v1744_v24  ;;  %v1624_v12 = vadd.f32 %v4548_v21, %v1315_v9  ;;  %v1626_v39 = vadd.f32 %v4551_v52, %v1388_v45  ;;  %v1317_v54 = vadd.f32 %v1316_v57, %v4442_v1  ;;  %v1390_v40 = vadd.f32 %v1389_v32, %v4444_v61  ;;  %v1704_v57 = vld [vmem:[%s5943_s8 + $0x188] sm:$0xff]  ;;  %v1706_v32 = vld [vmem:[%s5943_s8 + $0x198] sm:$0xff] }
 0x635   :  { %1810 = vst [vmem:[%s5944_s9 + $0xd8] sm:$0xff] %v1746_v60  ;;  %v1751_v17 = vadd.f32 %v1687_v25, %v1623_v50  ;;  %v1753_v55 = vadd.f32 %v1689_v5, %v1625_v63  ;;  %v1318_v47 = vpop.f32.mrf.mxu0  ;;  %v1391_v22 = vpop.f32.mrf.mxu1  ;;  %v1703_v25 = vld [vmem:[%s5943_s8 + $0x180] sm:$0xff]  ;;  %v1705_v5 = vld [vmem:[%s5943_s8 + $0x190] sm:$0xff] }
 0x636   :  { %v1752_v43 = vadd.f32 %v1688_v58, %v1624_v12  ;;  %v1754_v42 = vadd.f32 %v1690_v59, %v1626_v39  ;;  %v1631_v31 = vadd.f32 %v4540_v53, %v1317_v54  ;;  %v1633_v1 = vadd.f32 %v4543_v46, %v1390_v40 }
 0x637   :  { %1815 = vst [vmem:[%s5944_s9 + $0x100] sm:$0xff] %v1751_v17  ;;  %1817 = vst [vmem:[%s5944_s9 + $0x110] sm:$0xff] %v1753_v55  ;;  %v1319_v61 = vadd.f32 %v1318_v47, %v4446_v4  ;;  %v1392_v48 = vadd.f32 %v1391_v22, %v4448_v18  ;;  %v1322_v41 = vpop.f32.mrf.mxu0  ;;  %v1395_v13 = vpop.f32.mrf.mxu1  ;;  %v1696_v4 = vld [vmem:[%s5943_s8 + $0x148] sm:$0xff]  ;;  %v1698_v18 = vld [vmem:[%s5943_s8 + $0x158] sm:$0xff]  ;;  %v4758_v54 = vrot.slane %v4530_v62, %v1569_v14 }
 0x638   :  { %1816 = vst [vmem:[%s5944_s9 + $0x108] sm:$0xff] %v1752_v43  ;;  %1818 = vst [vmem:[%s5944_s9 + $0x118] sm:$0xff] %v1754_v42  ;;  %v1759_v38 = vadd.f32 %v1695_v6, %v1631_v31  ;;  %v1761_v2 = vadd.f32 %v1697_v20, %v1633_v1  ;;  %v1323_v23 = vadd.f32 %v1322_v41, %v4450_v0  ;;  %v1573_v43 = vsub.s32 5, %v4114_v29  ;;  %v1714_v14 = vld [vmem:[%s5943_s8 + $0x1d8] sm:$0xff] }
 0x639   :  { %v1396_v15 = vadd.f32 %v1395_v13, %v4452_v44  ;;  %v1632_v24 = vadd.f32 %v4548_v21, %v1319_v61  ;;  %v1634_v60 = vadd.f32 %v4551_v52, %v1392_v48  ;;  %v1324_v9 = vpop.f32.mrf.mxu0  ;;  %v1397_v45 = vpop.f32.mrf.mxu1  ;;  %v4761_v40 = vrot.slane %v4530_v62, %v1577_v51  ;;  %v1712_v13 = vld [vmem:[%s5943_s8 + $0x1c8] sm:$0xff] }
 0x63a   :  { %1823 = vst [vmem:[%s5944_s9 + $0x140] sm:$0xff] %v1759_v38  ;;  %1825 = vst [vmem:[%s5944_s9 + $0x150] sm:$0xff] %v1761_v2  ;;  %v1639_v44 = vadd.f32 %v4540_v53, %v1323_v23  ;;  %v1325_v50 = vadd.f32 %v1324_v9, %v4454_v49  ;;  %v1398_v63 = vadd.f32 %v1397_v45, %v4456_v16  ;;  %v1581_v42 = vsub.s32 7, %v4114_v29 }
 0x63b   :  { %v1641_v0 = vadd.f32 %v4543_v46, %v1396_v15  ;;  %v1760_v58 = vadd.f32 %v1696_v4, %v1632_v24  ;;  %v1762_v59 = vadd.f32 %v1698_v18, %v1634_v60  ;;  %v1326_v12 = vpop.f32.mrf.mxu0  ;;  %v1399_v39 = vpop.f32.mrf.mxu1  ;;  %v1659_v15 = vld [vmem:[%s5943_s8 + $0x20] sm:$0xff]  ;;  %v1661_v24 = vld [vmem:[%s5943_s8 + $0x30] sm:$0xff] }
 0x63c   :  { %v1767_v49 = vadd.f32 %v1703_v25, %v1639_v44  ;;  %v1640_v17 = vadd.f32 %v4548_v21, %v1325_v50  ;;  %v1642_v55 = vadd.f32 %v4551_v52, %v1398_v63  ;;  %v1327_v6 = vadd.f32 %v1326_v12, %v4458_v34  ;;  %v1713_v34 = vld [vmem:[%s5943_s8 + $0x1d0] sm:$0xff] }
 0x63d   :  { %v1769_v16 = vadd.f32 %v1705_v5, %v1641_v0  ;;  %1824 = vst [vmem:[%s5944_s9 + $0x148] sm:$0xff] %v1760_v58  ;;  %1826 = vst [vmem:[%s5944_s9 + $0x158] sm:$0xff] %v1762_v59  ;;  %v1400_v20 = vadd.f32 %v1399_v39, %v4460_v7  ;;  %v1328_v47 = vpop.f32.mrf.mxu0  ;;  %v1401_v22 = vpop.f32.mrf.mxu1  ;;  %v1711_v7 = vld [vmem:[%s5943_s8 + $0x1c0] sm:$0xff]  ;;  %v4814_v25 = vrot.slane %v4530_v62, %v1573_v43  ;;  %v1668_v43 = vld [vmem:[%s5943_s8 + $0x68] sm:$0xff] }
 0x63e   :  { %1831 = vst [vmem:[%s5944_s9 + $0x180] sm:$0xff] %v1767_v49  ;;  %v1768_v31 = vadd.f32 %v1704_v57, %v1640_v17  ;;  %v1770_v1 = vadd.f32 %v1706_v32, %v1642_v55  ;;  %v1329_v29 = vadd.f32 %v1328_v47, %v4462_v8  ;;  %v1402_v61 = vadd.f32 %v1401_v22, %v4464_v56  ;;  %v1660_v57 = vld [vmem:[%s5943_s8 + $0x28] sm:$0xff]  ;;  %v1667_v49 = vld [vmem:[%s5943_s8 + $0x60] sm:$0xff] }
 0x63f   :  { %1833 = vst [vmem:[%s5944_s9 + $0x190] sm:$0xff] %v1769_v16  ;;  %v1647_v48 = vadd.f32 %v4540_v53, %v1327_v6  ;;  %v1649_v41 = vadd.f32 %v4543_v46, %v1400_v20  ;;  %v1438_v51 = vpop.f32.mrf.mxu0  ;;  %v1511_v38 = vpop.f32.mrf.mxu1  ;;  %v4817_v9 = vrot.slane %v4530_v62, %v1581_v42  ;;  %v1669_v16 = vld [vmem:[%s5943_s8 + $0x70] sm:$0xff]  ;;  %v1670_v42 = vld [vmem:[%s5943_s8 + $0x78] sm:$0xff] }
 0x640   :  { %1832 = vst [vmem:[%s5944_s9 + $0x188] sm:$0xff] %v1768_v31  ;;  %1834 = vst [vmem:[%s5944_s9 + $0x198] sm:$0xff] %v1770_v1  ;;  %v1648_v56 = vadd.f32 %v4548_v21, %v1329_v29  ;;  %v1650_v8 = vadd.f32 %v4551_v52, %v1402_v61  ;;  %v1439_v2 = vadd.f32 %v1438_v51, %v4466_v28  ;;  %v1675_v51 = vld [vmem:[%s5943_s8 + $0xa0] sm:$0xff] }
 0x641   :  { %v1512_v4 = vadd.f32 %v1511_v38, %v4468_v37  ;;  %v1775_v18 = vadd.f32 %v1711_v7, %v1647_v48  ;;  %v1777_v23 = vadd.f32 %v1713_v34, %v1649_v41  ;;  %v1440_v60 = vpop.f32.mrf.mxu0  ;;  %v1513_v5 = vpop.f32.mrf.mxu1 }
 0x642   :  { %v1776_v28 = vadd.f32 %v1712_v13, %v1648_v56  ;;  %v1778_v37 = vadd.f32 %v1714_v14, %v1650_v8  ;;  %v1595_v45 = vadd.f32 %v4758_v54, %v1439_v2  ;;  %v1441_v0 = vadd.f32 %v1440_v60, %v4470_v35  ;;  %v1676_v2 = vld [vmem:[%s5943_s8 + $0xa8] sm:$0xff]  ;;  %v6061_v60 = vld [vmem:[#allocation46_spill] sm:$0xff] }
 0x643   :  { %v1597_v44 = vadd.f32 %v4761_v40, %v1512_v4  ;;  %1839 = vst [vmem:[%s5944_s9 + $0x1c0] sm:$0xff] %v1775_v18  ;;  %1841 = vst [vmem:[%s5944_s9 + $0x1d0] sm:$0xff] %v1777_v23  ;;  %v1514_v50 = vadd.f32 %v1513_v5, %v4472_v33  ;;  %v1442_v62 = vpop.f32.mrf.mxu0  ;;  %v1515_v63 = vpop.f32.mrf.mxu1  ;;  %v1662_v33 = vld [vmem:[%s5943_s8 + $0x38] sm:$0xff] }
 0x644   :  { %1840 = vst [vmem:[%s5944_s9 + $0x1c8] sm:$0xff] %v1776_v28  ;;  %1842 = vst [vmem:[%s5944_s9 + $0x1d8] sm:$0xff] %v1778_v37  ;;  %v1723_v58 = vadd.f32 %v1659_v15, %v1595_v45  ;;  %v1443_v35 = vadd.f32 %v1442_v62, %v4474_v30  ;;  %v1516_v32 = vadd.f32 %v1515_v63, %v4476_v3  ;;  %v1678_v4 = vld [vmem:[%s5943_s8 + $0xb8] sm:$0xff]  ;;  %v1683_v45 = vld [vmem:[%s5943_s8 + $0xe0] sm:$0xff] }
 0x645   :  { %v1725_v59 = vadd.f32 %v1661_v24, %v1597_v44  ;;  %v1596_v12 = vadd.f32 %v4814_v25, %v1441_v0  ;;  %v1598_v39 = vadd.f32 %v4817_v9, %v1514_v50  ;;  %v1444_v17 = vpop.f32.mrf.mxu0  ;;  %v1517_v55 = vpop.f32.mrf.mxu1  ;;  %v6060_v15 = vld [vmem:[#allocation45_spill] sm:$0xff]  ;;  %v1685_v44 = vld [vmem:[%s5943_s8 + $0xf0] sm:$0xff] }
 0x646   :  { %1787 = vst [vmem:[%s5944_s9 + $0x20] sm:$0xff] %v1723_v58  ;;  %v1603_v3 = vadd.f32 %v4758_v54, %v1443_v35  ;;  %v1605_v30 = vadd.f32 %v4761_v40, %v1516_v32  ;;  %v1445_v6 = vadd.f32 %v1444_v17, %v4478_v10  ;;  %v1518_v20 = vadd.f32 %v1517_v55, %v4480_v19  ;;  %v6063_v35 = vld [vmem:[#allocation48_spill] sm:$0xff]  ;;  %v1684_v17 = vld [vmem:[%s5943_s8 + $0xe8] sm:$0xff]  ;;  %v1686_v55 = vld [vmem:[%s5943_s8 + $0xf8] sm:$0xff] }
 0x647   :  { %1789 = vst [vmem:[%s5944_s9 + $0x30] sm:$0xff] %v1725_v59  ;;  %v1724_v47 = vadd.f32 %v1660_v57, %v1596_v12  ;;  %v1726_v22 = vadd.f32 %v1662_v33, %v1598_v39  ;;  %v1448_v31 = vpop.f32.mrf.mxu0  ;;  %v1521_v1 = vpop.f32.mrf.mxu1  ;;  %v6062_v57 = vld [vmem:[#allocation47_spill] sm:$0xff] }
 0x648   :  { %v1731_v7 = vadd.f32 %v1667_v49, %v1603_v3  ;;  %v1733_v34 = vadd.f32 %v1669_v16, %v1605_v30  ;;  %v1604_v29 = vadd.f32 %v4814_v25, %v1445_v6  ;;  %v1606_v10 = vadd.f32 %v4817_v9, %v1518_v20  ;;  %v6064_v3 = vld [vmem:[#allocation49_spill] sm:$0xff]  ;;  %v6065_v6 = vld [vmem:[#allocation50_spill] sm:$0xff] }
 0x649   :  { %1788 = vst [vmem:[%s5944_s9 + $0x28] sm:$0xff] %v1724_v47  ;;  %1790 = vst [vmem:[%s5944_s9 + $0x38] sm:$0xff] %v1726_v22  ;;  %v1449_v19 = vadd.f32 %v1448_v31, %v4482_v11  ;;  %v1522_v61 = vadd.f32 %v1521_v1, %v4484_v36  ;;  %v1450_v48 = vpop.f32.mrf.mxu0  ;;  %v1523_v41 = vpop.f32.mrf.mxu1  ;;  %v1677_v11 = vld [vmem:[%s5943_s8 + $0xb0] sm:$0xff] }
 0x64a   :  { %1795 = vst [vmem:[%s5944_s9 + $0x60] sm:$0xff] %v1731_v7  ;;  %1797 = vst [vmem:[%s5944_s9 + $0x70] sm:$0xff] %v1733_v34  ;;  %v1732_v13 = vadd.f32 %v1668_v43, %v1604_v29  ;;  %v1734_v14 = vadd.f32 %v1670_v42, %v1606_v10  ;;  %v1451_v36 = vadd.f32 %v1450_v48, %v4486_v27  ;;  %v1691_v43 = vld [vmem:[%s5943_s8 + $0x120] sm:$0xff]  ;;  %v1693_v42 = vld [vmem:[%s5943_s8 + $0x130] sm:$0xff] }
 0x64b   :  { %v1524_v38 = vadd.f32 %v1523_v41, %v4488_v26  ;;  %v1611_v56 = vadd.f32 %v4758_v54, %v1449_v19  ;;  %v1613_v8 = vadd.f32 %v4761_v40, %v1522_v61  ;;  %v1452_v18 = vpop.f32.mrf.mxu0  ;;  %v1525_v23 = vpop.f32.mrf.mxu1  ;;  %v6066_v29 = vld [vmem:[#allocation51_spill] sm:$0xff]  ;;  %v6067_v19 = vld [vmem:[#allocation52_spill] sm:$0xff] }
 0x64c   :  { %1796 = vst [vmem:[%s5944_s9 + $0x68] sm:$0xff] %v1732_v13  ;;  %1798 = vst [vmem:[%s5944_s9 + $0x78] sm:$0xff] %v1734_v14  ;;  %v1612_v26 = vadd.f32 %v4814_v25, %v1451_v36  ;;  %v1453_v24 = vadd.f32 %v1452_v18, %v6060_v15  ;;  %v1526_v5 = vadd.f32 %v1525_v23, %v6061_v60  ;;  %v1692_v13 = vld [vmem:[%s5943_s8 + $0x128] sm:$0xff]  ;;  %v1694_v14 = vld [vmem:[%s5943_s8 + $0x138] sm:$0xff] }
 0x64d   :  { %v1614_v27 = vadd.f32 %v4817_v9, %v1524_v38  ;;  %v1739_v28 = vadd.f32 %v1675_v51, %v1611_v56  ;;  %v1741_v37 = vadd.f32 %v1677_v11, %v1613_v8  ;;  %v1454_v0 = vpop.f32.mrf.mxu0  ;;  %v1527_v50 = vpop.f32.mrf.mxu1  ;;  %v6069_v18 = vld [vmem:[#allocation54_spill] sm:$0xff] }
 0x64e   :  { %v1740_v62 = vadd.f32 %v1676_v2, %v1612_v26  ;;  %v1619_v58 = vadd.f32 %v4758_v54, %v1453_v24  ;;  %v1621_v59 = vadd.f32 %v4761_v40, %v1526_v5  ;;  %v1455_v33 = vadd.f32 %v1454_v0, %v6062_v57  ;;  %v6068_v2 = vld [vmem:[#allocation53_spill] sm:$0xff]  ;;  %v1699_v60 = vld [vmem:[%s5943_s8 + $0x160] sm:$0xff]  ;;  %v1701_v5 = vld [vmem:[%s5943_s8 + $0x170] sm:$0xff] }
 0x64f   :  { %v1742_v63 = vadd.f32 %v1678_v4, %v1614_v27  ;;  %1803 = vst [vmem:[%s5944_s9 + $0xa0] sm:$0xff] %v1739_v28  ;;  %1805 = vst [vmem:[%s5944_s9 + $0xb0] sm:$0xff] %v1741_v37  ;;  %v1528_v32 = vadd.f32 %v1527_v50, %v6063_v35  ;;  %v1458_v12 = vpop.f32.mrf.mxu0  ;;  %v1531_v39 = vpop.f32.mrf.mxu1  ;;  %v6070_v28 = vld [vmem:[#allocation55_spill] sm:$0xff]  ;;  %v6072_v35 = vld [vmem:[#allocation57_spill] sm:$0xff] }
 0x650   :  { %1804 = vst [vmem:[%s5944_s9 + $0xa8] sm:$0xff] %v1740_v62  ;;  %v1747_v49 = vadd.f32 %v1683_v45, %v1619_v58  ;;  %v1749_v16 = vadd.f32 %v1685_v44, %v1621_v59  ;;  %v1459_v30 = vadd.f32 %v1458_v12, %v6064_v3  ;;  %v1532_v20 = vadd.f32 %v1531_v39, %v6065_v6  ;;  %v6071_v45 = vld [vmem:[#allocation56_spill] sm:$0xff]  ;;  %v1700_v62 = vld [vmem:[%s5943_s8 + $0x168] sm:$0xff]  ;;  %v6073_v12 = vld [vmem:[#allocation58_spill] sm:$0xff] }
 0x651   :  { %1806 = vst [vmem:[%s5944_s9 + $0xb8] sm:$0xff] %v1742_v63  ;;  %v1620_v47 = vadd.f32 %v4814_v25, %v1455_v33  ;;  %v1622_v22 = vadd.f32 %v4817_v9, %v1528_v32  ;;  %v1460_v31 = vpop.f32.mrf.mxu0  ;;  %v1533_v1 = vpop.f32.mrf.mxu1  ;;  %v1702_v63 = vld [vmem:[%s5943_s8 + $0x178] sm:$0xff] }
 0x652   :  { %1811 = vst [vmem:[%s5944_s9 + $0xe0] sm:$0xff] %v1747_v49  ;;  %1813 = vst [vmem:[%s5944_s9 + $0xf0] sm:$0xff] %v1749_v16  ;;  %v1627_v7 = vadd.f32 %v4758_v54, %v1459_v30  ;;  %v1629_v34 = vadd.f32 %v4761_v40, %v1532_v20  ;;  %v1461_v10 = vadd.f32 %v1460_v31, %v6066_v29  ;;  %v6075_v31 = vld [vmem:[#allocation60_spill] sm:$0xff] }
 0x653   :  { %v1534_v61 = vadd.f32 %v1533_v1, %v6067_v19  ;;  %v1748_v48 = vadd.f32 %v1684_v17, %v1620_v47  ;;  %v1750_v41 = vadd.f32 %v1686_v55, %v1622_v22  ;;  %v1462_v51 = vpop.f32.mrf.mxu0  ;;  %v1535_v11 = vpop.f32.mrf.mxu1  ;;  %v1707_v17 = vld [vmem:[%s5943_s8 + $0x1a0] sm:$0xff]  ;;  %v1709_v55 = vld [vmem:[%s5943_s8 + $0x1b0] sm:$0xff]  ;;  %v1708_v19 = vld [vmem:[%s5943_s8 + $0x1a8] sm:$0xff] }
 0x654   :  { %v1755_v36 = vadd.f32 %v1691_v43, %v1627_v7  ;;  %v1757_v38 = vadd.f32 %v1693_v42, %v1629_v34  ;;  %v1628_v56 = vadd.f32 %v4814_v25, %v1461_v10  ;;  %v1463_v4 = vadd.f32 %v1462_v51, %v6068_v2  ;;  %v6074_v43 = vld [vmem:[#allocation59_spill] sm:$0xff] }
 0x655   :  { %v1630_v8 = vadd.f32 %v4817_v9, %v1534_v61  ;;  %1812 = vst [vmem:[%s5944_s9 + $0xe8] sm:$0xff] %v1748_v48  ;;  %1814 = vst [vmem:[%s5944_s9 + $0xf8] sm:$0xff] %v1750_v41  ;;  %v1536_v23 = vadd.f32 %v1535_v11, %v6069_v18  ;;  %v1464_v26 = vpop.f32.mrf.mxu0  ;;  %v1537_v27 = vpop.f32.mrf.mxu1  ;;  %v1710_v61 = vld [vmem:[%s5943_s8 + $0x1b8] sm:$0xff]  ;;  %v6078_v18 = vld [vmem:[#allocation63_spill] sm:$0xff] }
 0x656   :  { %1819 = vst [vmem:[%s5944_s9 + $0x120] sm:$0xff] %v1755_v36  ;;  %1821 = vst [vmem:[%s5944_s9 + $0x130] sm:$0xff] %v1757_v38  ;;  %v1756_v15 = vadd.f32 %v1692_v13, %v1628_v56  ;;  %v1465_v37 = vadd.f32 %v1464_v26, %v6070_v28  ;;  %v1538_v44 = vadd.f32 %v1537_v27, %v6071_v45  ;;  %v6076_v48 = vld [vmem:[#allocation61_spill] sm:$0xff]  ;;  %v6077_v13 = vld [vmem:[#allocation62_spill] sm:$0xff] }
 0x657   :  { %v1758_v24 = vadd.f32 %v1694_v14, %v1630_v8  ;;  %v1635_v0 = vadd.f32 %v4758_v54, %v1463_v4  ;;  %v1637_v50 = vadd.f32 %v4761_v40, %v1536_v23  ;;  %v1468_v58 = vpop.f32.mrf.mxu0  ;;  %v1541_v59 = vpop.f32.mrf.mxu1  ;;  %v1715_v36 = vld [vmem:[%s5943_s8 + $0x1e0] sm:$0xff]  ;;  %v1717_v38 = vld [vmem:[%s5943_s8 + $0x1f0] sm:$0xff] }
 0x658   :  { %1820 = vst [vmem:[%s5944_s9 + $0x128] sm:$0xff] %v1756_v15  ;;  %v1636_v57 = vadd.f32 %v4814_v25, %v1465_v37  ;;  %v1638_v33 = vadd.f32 %v4817_v9, %v1538_v44  ;;  %v1469_v32 = vadd.f32 %v1468_v58, %v6072_v35  ;;  %v1542_v39 = vadd.f32 %v1541_v59, %v6073_v12  ;;  %v6079_v26 = vld [vmem:[#allocation64_spill] sm:$0xff]  ;;  %v3788_v12 = vld [vmem:[%s5939_s4] sm:$0x1] }
 0x659   :  { %1822 = vst [vmem:[%s5944_s9 + $0x138] sm:$0xff] %v1758_v24  ;;  %v1763_v49 = vadd.f32 %v1699_v60, %v1635_v0  ;;  %v1765_v16 = vadd.f32 %v1701_v5, %v1637_v50  ;;  %v1470_v3 = vpop.f32.mrf.mxu0  ;;  %v1543_v30 = vpop.f32.mrf.mxu1  ;;  %v1716_v60 = vld [vmem:[%s5943_s8 + $0x1e8] sm:$0xff]  ;;  %v1718_v5 = vld [vmem:[%s5943_s8 + $0x1f8] sm:$0xff] }
 0x65a   :  { %v1764_v6 = vadd.f32 %v1700_v62, %v1636_v57  ;;  %v1766_v20 = vadd.f32 %v1702_v63, %v1638_v33  ;;  %v1643_v47 = vadd.f32 %v4758_v54, %v1469_v32  ;;  %v1645_v22 = vadd.f32 %v4761_v40, %v1542_v39  ;;  %v3787_v62 = vld [vmem:[%s5938_s2] sm:$0x1] }
 0x65b   :  { %1827 = vst [vmem:[%s5944_s9 + $0x160] sm:$0xff] %v1763_v49  ;;  %1829 = vst [vmem:[%s5944_s9 + $0x170] sm:$0xff] %v1765_v16  ;;  %v1471_v42 = vadd.f32 %v1470_v3, %v6074_v43  ;;  %v1544_v1 = vadd.f32 %v1543_v30, %v6075_v31  ;;  %v1472_v7 = vpop.f32.mrf.mxu0  ;;  %v1545_v34 = vpop.f32.mrf.mxu1  ;;  %v3791_v43 = vld [vmem:[%s5936_s0 + $0x48] sm:$0xff] }
 0x65c   :  { %1828 = vst [vmem:[%s5944_s9 + $0x168] sm:$0xff] %v1764_v6  ;;  %1830 = vst [vmem:[%s5944_s9 + $0x178] sm:$0xff] %v1766_v20  ;;  %v1771_v29 = vadd.f32 %v1707_v17, %v1643_v47  ;;  %v1773_v10 = vadd.f32 %v1709_v55, %v1645_v22  ;;  %v1473_v41 = vadd.f32 %v1472_v7, %v6076_v48  ;;  %v6080_v55 = vld [vmem:[#allocation2_spill] sm:$0xff]  ;;  %v6081_v47 = vld [vmem:[#allocation4_spill] sm:$0xff] }
 0x65d   :  { %v1546_v14 = vadd.f32 %v1545_v34, %v6077_v13  ;;  %v1644_v51 = vadd.f32 %v4814_v25, %v1471_v42  ;;  %v1646_v11 = vadd.f32 %v4817_v9, %v1544_v1  ;;  %v1474_v56 = vpop.f32.mrf.mxu0  ;;  %v1547_v8 = vpop.f32.mrf.mxu1  ;;  %v3789_v6 = vld [vmem:[%s5935_s1] sm:$0xff]  }
 0x65e   :  { %1835 = vst [vmem:[%s5944_s9 + $0x1a0] sm:$0xff] %v1771_v29  ;;  %1837 = vst [vmem:[%s5944_s9 + $0x1b0] sm:$0xff] %v1773_v10  ;;  %v1651_v2 = vadd.f32 %v4758_v54, %v1473_v41  ;;  %v1475_v23 = vadd.f32 %v1474_v56, %v6078_v18  ;;  %v1548_v27 = vadd.f32 %v1547_v8, %v6079_v26  ;;  %v3790_v22 = vld [vmem:[%s5936_s0 + $0x40] sm:$0xff] }
 0x65f   :  { %v1653_v4 = vadd.f32 %v4761_v40, %v1546_v14  ;;  %v1772_v15 = vadd.f32 %v1708_v19, %v1644_v51  ;;  %v1774_v24 = vadd.f32 %v1710_v61, %v1646_v11  ;;  %v1916_v28 = vpop.f32.mrf.mxu0  ;;  %v2055_v42 = vpack.c.bf16 %v3791_v43, %v3790_v22  ;;  %v6084_v22 = vld [vmem:[#allocation5_spill] sm:$0xff] }
 0x660   :  { %v1779_v37 = vadd.f32 %v1715_v36, %v1651_v2  ;;  %v1652_v44 = vadd.f32 %v4814_v25, %v1475_v23  ;;  %v1654_v0 = vadd.f32 %v4817_v9, %v1548_v27  ;;  %v1917_v63 = vadd.f32 %v3787_v62, %v1916_v28  ;;  %v3793_v62 = vld [vmem:[%s5936_s0 + $0x50] sm:$0xff] }
 0x661   :  { %v1781_v45 = vadd.f32 %v1717_v38, %v1653_v4  ;;  %1836 = vst [vmem:[%s5944_s9 + $0x1a8] sm:$0xff] %v1772_v15  ;;  %1838 = vst [vmem:[%s5944_s9 + $0x1b8] sm:$0xff] %v1774_v24  ;;  %v3724_v50 = vpop.f32.mrf.mxu0  ;;  %3740 = vmatprep.mubr.msk.bf16.mxu0 %vm88_vm0, %v2055_v42  ;;  %v6085_v42 = vld [vmem:[#allocation7_spill] sm:$0xff] }
 0x662   :  { %1843 = vst [vmem:[%s5944_s9 + $0x1e0] sm:$0xff] %v1779_v37  ;;  %v1780_v58 = vadd.f32 %v1716_v60, %v1652_v44  ;;  %v1782_v59 = vadd.f32 %v1718_v5, %v1654_v0  ;;  %v1962_v33 = vpack.c.bf16 %v1917_v63, %v1917_v63  ;;  %v3792_v50 = vld [vmem:[%s5937_s3] sm:$0xff]   ;;  %v3794_v63 = vld [vmem:[%s5936_s0 + $0x58] sm:$0xff] }
 0x663   :  { %1845 = vst [vmem:[%s5944_s9 + $0x1f0] sm:$0xff] %v1781_v45  ;;  %v1919_v57 = vpop.f32.mrf.mxu0 }
 0x664   :  { %1844 = vst [vmem:[%s5944_s9 + $0x1e8] sm:$0xff] %v1780_v58  ;;  %1846 = vst [vmem:[%s5944_s9 + $0x1f8] sm:$0xff] %v1782_v59  ;;  %1964 = vxpose.xlu1.c.b16.start.end [1/1] (short) (narrow) %v1962_v33, 16  ;;  %v2056_v58 = vpack.c.bf16 %v3794_v63, %v3793_v62  ;;  %v3795_v59 = vld [vmem:[%s5936_s0 + $0x60] sm:$0xff]  ;;  %v3796_v57 = vld [vmem:[%s5936_s0 + $0x68] sm:$0xff] }
 0x665   :  { %v3725_v35 = vpop.f32.mrf.mxu0  ;;  %v2057_v33 = vpack.c.bf16 %v3796_v57, %v3795_v59 }
 0x666   :  { %v6082_v35 = vld [vmem:[#allocation6_spill] sm:$0xff] }
 0x667   :  { %v1956_v32 = vpop.f32.mrf.mxu0 }
 0x668   :  { %v1957_v39 = vadd.f32 %v3788_v12, %v1956_v32  ;;  %v3797_v32 = vld [vmem:[%s5936_s0 + $0x70] sm:$0xff]  ;;  %v3798_v12 = vld [vmem:[%s5936_s0 + $0x78] sm:$0xff] }
 0x669   :  { %v3730_v49 = vpop.f32.mrf.mxu0 }
 0x66a   :  { %v1963_v16 = vpack.c.bf16 %v1957_v39, %v1957_v39  ;;  %v2058_v39 = vpack.c.bf16 %v3798_v12, %v3797_v32  ;;  %v6103_v32 = vld [vmem:[#allocation24_spill] sm:$0xff]  ;;  %v6104_v12 = vld [vmem:[#allocation25_spill] sm:$0xff] }
 0x66b   :  { %v1959_v17 = vpop.f32.mrf.mxu0 }
 0x66c   :  { %v1984_v3 = vand.u32 %v1963_v16, %v6080_v55 }
 0x66d   :  { %v3731_v30 = vpop.f32.mrf.mxu0 }
 0x66e   :  { %3733 = vmatpush3.bf16.msra.mxu1 %v1984_v3 }
 0x66f   :  { %3748 = vmatprep.subr.bf16.mxu1 %v3789_v6 }
 0x6c6   :  { %v1972_v20 = vpop.trf.xlu1 }
 0x6c7   :  { %3735 = vmatmul.mubr.msk.bf16.vlgmr.msra.gmra.mxu1 %vm225_vm3, %v1972_v20 }
 0x6c8   :  { %3749 = vmatpush3.bf16.msra.mxu1 %v3789_v6 }
 0x6c9   :  { %2320 = vmatprep.subr.bf16.mxu1 %v6081_v47  ;;  %v6083_v47 = vld [vmem:[#allocation3_spill] sm:$0xff] }
 0x787   :  { %v2020_v31 = vpop.f32.mrf.mxu1 }
 0x788   :  { %v2027_v34 = vsel %vm88_vm0, %v2020_v31, -inf }
 0x789   :  { %v3736_v1 = vpop.f32.mrf.mxu1 }
 0x78b   :  { %v2023_v7 = vpop.f32.mrf.mxu1 }
 0x78c   :  { %v2028_v29 = vsel %vm88_vm0, %v2023_v7, -inf }
 0x78d   :  { %v2029_v10 = vmax.f32 %v2027_v34, %v2028_v29  ;;  %v3737_v19 = vpop.f32.mrf.mxu1  ;;  %v6087_v34 = vld [vmem:[#allocation9_spill] sm:$0xff]  ;;  %v6088_v29 = vld [vmem:[#allocation10_spill] sm:$0xff] }
 0x78e   :  { %v6089_v19 = vld [vmem:[#allocation11_spill] sm:$0xff] }
 0x78f   :  { %v2030_v61 = vrot.slane %v2029_v10, 4 }
 0x791   :  { %v2031_v48 = vmax.f32 %v2029_v10, %v2030_v61  ;;  %v6090_v61 = vld [vmem:[#allocation12_spill] sm:$0xff] }
 0x793   :  { %v2032_v41 = vrot.slane %v2031_v48, 2 }
 0x795   :  { %v2033_v13 = vmax.f32 %v2031_v48, %v2032_v41  ;;  %v6091_v48 = vld [vmem:[#allocation15_spill] sm:$0xff]  ;;  %v6092_v41 = vld [vmem:[#allocation16_spill] sm:$0xff] }
 0x797   :  { %v2034_v14 = vrot.slane %v2033_v13, 1 }
 0x799   :  { %v2035_v51 = vmax.f32 %v2033_v13, %v2034_v14  ;;  %v6093_v13 = vld [vmem:[#allocation17_spill] sm:$0xff]  ;;  %v6094_v14 = vld [vmem:[#allocation18_spill] sm:$0xff] }
 0x79b   :  { %v2036_v11 = vsub.f32 %v2020_v31, %v2035_v51  ;;  %v2037_v36 = vsub.f32 %v2023_v7, %v2035_v51  ;;  %v6086_v31 = vld [vmem:[#allocation8_spill] sm:$0xff]  ;;  %v6095_v51 = vmov 0  }
 0x79d   :  { %v2038_v38 = vmul.f32 1.442695, %v2036_v11  ;;  %v2040_v56 = vmul.f32 1.442695, %v2037_v36  ;;  %v6096_v11 = vld [vmem:[#allocation19_spill] sm:$0xff]  ;;  %v6097_v36 = vld [vmem:[#allocation20_spill] sm:$0xff] }
 0x79f   :  { %3781 = vpow2.f32 %v2038_v38  ;;  %v6098_v38 = vld [vmem:[#allocation21_spill] sm:$0xff] }
 0x7a0   :  { %3783 = vpow2.f32 %v2040_v56  ;;  %v6099_v56 = vld [vmem:[#allocation22_spill] sm:$0xff] }
 0x7ac   :  { %v3782_v8 = vpop.eup %3781 }
 0x7ad   :  { %v3784_v2 = vpop.eup %3783  ;;  %v2042_v4 = vsel %vm88_vm0, %v3782_v8, 0.0 }
 0x7ae   :  { %v2043_v18 = vsel %vm88_vm0, %v3784_v2, 0.0 }
 0x7af   :  { %v2044_v23 = vadd.f32 %v2043_v18, %v2042_v4 }
 0x7b1   :  { %v2045_v26 = vrot.slane %v2044_v23, 4 }
 0x7b3   :  { %v2046_v27 = vadd.f32 %v2045_v26, %v2044_v23  ;;  %v6100_v23 = vld [vmem:[#allocation23_spill] sm:$0xff] }
 0x7b5   :  { %v2047_v15 = vrot.slane %v2046_v27, 2 }
 0x7b7   :  { %v2048_v24 = vadd.f32 %v2047_v15, %v2046_v27 }
 0x7b9   :  { %v2049_v60 = vrot.slane %v2048_v24, 1 }
 0x7bb   :  { %v2050_v5 = vadd.f32 %v2049_v60, %v2048_v24 }
 0x7bd   :  { %3785 = vrcp.f32 %v2050_v5 }
 0x7ca   :  { %v3786_v28 = vpop.eup %3785 }
 0x7cb   :  { %v2052_v37 = vmul.f32 %v3786_v28, %v3782_v8  ;;  %v2053_v45 = vmul.f32 %v3786_v28, %v3784_v2 }
 0x7cd   :  { %v2054_v44 = vpack.c.bf16 %v2053_v45, %v2052_v37 }
 0x7cf   :  { %3769 = vmatprep.subr.msk.bf16.mxu0 %vm88_vm0, %v2054_v44  ;;  %v2072_v0 = vsel %vm88_vm0, %v2054_v44, 0 }
 0x7d0   :  { %3739 = vmatpush3.bf16.xpose.msra.mxu0 %v2072_v0 }
 0x7d1   :  { %3758 = vmatprep.subr.bf16.mxu0 %v3792_v50 }
 0x7d7   :  { %3741 = vmatmul.mubr.msk.bf16.vlgmr.msra.gmra.mxu0 %vm88_vm0, %v2056_v58 }
 0x7d8   :  { %3744 = vmatprep.mubr.msk.bf16.mxu0 %vm88_vm0, %v2057_v33  ;;  %3759 = vmatpush3.bf16.msra.mxu0 %v3792_v50  ;;  %v6101_v33 = vld [vmem:[#allocation13_spill] sm:$0xff] }
 0x7d9   :  { %2363 = vmatprep.subr.bf16.mxu0 %v6082_v35  ;;  %v6102_v35 = vld [vmem:[#allocation14_spill] sm:$0xff] }
 0x7df   :  { %3745 = vmatmul.mubr.msk.bf16.gmra.mxu0 %vm88_vm0, %v2058_v39  ;;  %v6105_v39 = vld [vmem:[#allocation26_spill] sm:$0xff] }
 0x897   :  { %v3742_v49 = vpop.f32.mrf.mxu0 }
 0x899   :  { %v2108_v16 = vpop.f32.mrf.mxu0 }
 0x89b   :  { %v3743_v17 = vpop.f32.mrf.mxu0 }
 0x89c   :  { %v5131_v30 = vpack.c.bf16 %v3743_v17, %v3742_v49  ;;  %v6106_v49 = vld [vmem:[#allocation27_spill] sm:$0xff]  ;;  %v6108_v17 = vld [vmem:[#allocation29_spill] sm:$0xff] }
 0x89d   :  { %v2111_v55 = vpop.f32.mrf.mxu0 }
 0x89e   :  { %v5129_v3 = vpack.c.bf16 %v2111_v55, %v2108_v16  ;;  %v6107_v16 = vld [vmem:[#allocation28_spill] sm:$0xff]  ;;  %v6109_v55 = vld [vmem:[#allocation30_spill] sm:$0xff] }
 0x89f   :  { %v3746_v6 = vpop.f32.mrf.mxu0 }
 0x8a0   :  { %3750 = vmatprep.mubr.msk.bf16.mxu1 %vm88_vm0, %v5129_v3  ;;  %3760 = vmatprep.mubr.msk.bf16.mxu0 %vm88_vm0, %v5129_v3 }
 0x8a1   :  { %v2124_v20 = vpop.f32.mrf.mxu0  ;;  %3751 = vmatmul.mubr.msk.bf16.vlgmr.msra.gmra.mxu1 %vm88_vm0, %v5131_v30  ;;  %3761 = vmatmul.mubr.msk.bf16.vlgmr.msra.gmra.mxu0 %vm88_vm0, %v5131_v30 }
 0x8a2   :  { %2321 = vmatpush1.bf16.msra.mxu1 %v6083_v47  ;;  %2364 = vmatpush1.bf16.msra.mxu0 %v6084_v22  ;;  %v6112_v47 = vld [vmem:[#allocation33_spill] sm:$0xff]  ;;  %v6113_v22 = vld [vmem:[#allocation34_spill] sm:$0xff] }
 0x8a3   :  { %v3747_v43 = vpop.f32.mrf.mxu0  ;;  %2322 = vmatprep.subr.bf16.mxu1 %v6085_v42  ;;  %2365 = vmatprep.subr.bf16.mxu0 %v6086_v31 }
 0x8a4   :  { %v5149_v10 = vpack.c.bf16 %v3747_v43, %v3746_v6  ;;  %v6110_v6 = vld [vmem:[#allocation31_spill] sm:$0xff] }
 0x8a5   :  { %v2127_v1 = vpop.f32.mrf.mxu0  ;;  %v6114_v43 = vld [vmem:[#allocation35_spill] sm:$0xff] }
 0x8a6   :  { %v5145_v7 = vpack.c.bf16 %v2127_v1, %v2124_v20  ;;  %2323 = vmatpush1.bf16.msra.mxu1 %v6087_v34  ;;  %2366 = vmatpush1.bf16.msra.mxu0 %v6088_v29  ;;  %v6111_v20 = vld [vmem:[#allocation32_spill] sm:$0xff] }
 0x8a7   :  { %2324 = vmatprep.subr.bf16.mxu1 %v6089_v19  ;;  %2367 = vmatprep.subr.bf16.mxu0 %v6090_v61 }
 0x8a8   :  { %3754 = vmatprep.mubr.msk.bf16.mxu1 %vm88_vm0, %v5145_v7  ;;  %3764 = vmatprep.mubr.msk.bf16.mxu0 %vm88_vm0, %v5145_v7 }
 0x8a9   :  { %3755 = vmatmul.mubr.msk.bf16.gmra.mxu1 %vm88_vm0, %v5149_v10  ;;  %3765 = vmatmul.mubr.msk.bf16.gmra.mxu0 %vm88_vm0, %v5149_v10 }
 0x8aa   :  { %2325 = vmatpush1.bf16.msra.mxu1 %v6091_v48  ;;  %2368 = vmatpush1.bf16.msra.mxu0 %v6092_v41 }
 0x8ab   :  { %2326 = vmatprep.subr.bf16.mxu1 %v6093_v13  ;;  %2369 = vmatprep.subr.bf16.mxu0 %v6094_v14 }
 0x8ac   :  { %2344 = vmatprep.mubr.bf16.mxu1 %v6095_v51  ;;  %2387 = vmatprep.mubr.bf16.mxu0 %v6095_v51 }
 0x8ae   :  { %2327 = vmatpush1.bf16.msra.mxu1 %v6096_v11  ;;  %2370 = vmatpush1.bf16.msra.mxu0 %v6097_v36 }
 0x8af   :  { %2406 = vmatprep.subr.bf16.mxu1 %v6098_v38  ;;  %2449 = vmatprep.subr.bf16.mxu0 %v6099_v56 }
 0x961   :  { %v3752_v8 = vpop.f32.mrf.mxu1  ;;  %v3762_v42 = vpop.f32.mrf.mxu0 }
 0x962   :  { %v2198_v28 = vadd.f32 %v3752_v8, %v6100_v23 }
 0x963   :  { %v2189_v2 = vpop.f32.mrf.mxu1  ;;  %v2258_v31 = vpop.f32.mrf.mxu0 }
 0x964   :  { %v2190_v26 = vadd.f32 %v2189_v2, %v6100_v23  ;;  %v6115_v2 = vld [vmem:[#allocation36_spill] sm:$0xff] }
 0x965   :  { %v3753_v4 = vpop.f32.mrf.mxu1  ;;  %v3763_v1 = vpop.f32.mrf.mxu0 }
 0x966   :  { %v2201_v24 = vadd.f32 %v3753_v4, %v6100_v23 }
 0x967   :  { %v2192_v18 = vpop.f32.mrf.mxu1  ;;  %v2261_v34 = vpop.f32.mrf.mxu0 }
 0x968   :  { %v2193_v27 = vadd.f32 %v2192_v18, %v6100_v23  ;;  %v2221_v45 = vpack.c.bf16 %v2201_v24, %v2198_v28  ;;  %v2262_v4 = vadd.f32 %v2261_v34, %v6115_v2 }
 0x969   :  { %v3756_v15 = vpop.f32.mrf.mxu1  ;;  %v3766_v29 = vpop.f32.mrf.mxu0 }
 0x96a   :  { %v2220_v60 = vpack.c.bf16 %v2193_v27, %v2190_v26  ;;  %v2214_v58 = vadd.f32 %v3756_v15, %v6100_v23  ;;  %v2259_v15 = vadd.f32 %v2258_v31, %v6115_v2  ;;  %v6123_v31 = vld [vmem:[#allocation44_spill] sm:$0xff] }
 0x96b   :  { %v2205_v5 = vpop.f32.mrf.mxu1  ;;  %v2274_v19 = vpop.f32.mrf.mxu0 }
 0x96c   :  { %2293 = vxpose.xlu1.c.b16.start [1/4] (short) (narrow) %v2220_v60, 16  ;;  %v2206_v0 = vadd.f32 %v2205_v5, %v6100_v23  ;;  %v2289_v24 = vpack.c.bf16 %v2262_v4, %v2259_v15  ;;  %v2270_v60 = vadd.f32 %v3763_v1, %v6115_v2 }
 0x96d   :  { %v3757_v37 = vpop.f32.mrf.mxu1  ;;  %v3767_v61 = vpop.f32.mrf.mxu0 }
 0x96e   :  { %v2217_v62 = vadd.f32 %v3757_v37, %v6100_v23  ;;  %v2267_v37 = vadd.f32 %v3762_v42, %v6115_v2  ;;  %v6122_v42 = vld [vmem:[#allocation43_spill] sm:$0xff] }
 0x96f   :  { %v2208_v44 = vpop.f32.mrf.mxu1  ;;  %v2277_v48 = vpop.f32.mrf.mxu0 }
 0x970   :  { %v2209_v50 = vadd.f32 %v2208_v44, %v6100_v23  ;;  %2294 = vxpose.xlu1.c.b16.cont [2/4] (short) (narrow) %v2221_v45, 16  ;;  %v2223_v59 = vpack.c.bf16 %v2217_v62, %v2214_v58 }
 0x972   :  { %v2222_v63 = vpack.c.bf16 %v2209_v50, %v2206_v0  ;;  %v2290_v0 = vpack.c.bf16 %v2270_v60, %v2267_v37 }
 0x974   :  { %2295 = vxpose.xlu1.c.b16.cont [3/4] (short) (narrow) %v2222_v63, 16 }
 0x978   :  { %2296 = vxpose.xlu1.c.b16.end [4/4] (short) (narrow) %v2223_v59, 16  ;;  %v2278_v59 = vadd.f32 %v2277_v48, %v6115_v2 }
 0x9ce   :  { %v2301_v57 = vpop.trf.xlu1 }
 0x9cf   :  { %3466 = vmatmul.mubr.msk.bf16.vlgmr.msra.gmra.mxu1 %vm730_vm4, %v2301_v57  ;;  %3467 = vmatmul.mubr.msk.bf16.vlgmr.msra.gmra.mxu0 %vm730_vm4, %v2301_v57 }
 0x9d0   :  { %2407 = vmatpush1.bf16.msra.mxu1 %v6101_v33  ;;  %2450 = vmatpush1.bf16.msra.mxu0 %v6102_v35 }
 0x9d1   :  { %2408 = vmatprep.subr.bf16.mxu1 %v6103_v32  ;;  %2451 = vmatprep.subr.bf16.mxu0 %v6104_v12  ;;  %v2275_v12 = vadd.f32 %v2274_v19, %v6115_v2 }
 0x9d2   :  { %2430 = vmatprep.mubr.bf16.mxu1 %v6095_v51  ;;  %2473 = vmatprep.mubr.bf16.mxu0 %v6095_v51 }
 0x9d4   :  { %2409 = vmatpush1.bf16.msra.mxu1 %v6105_v39  ;;  %2452 = vmatpush1.bf16.msra.mxu0 %v6106_v49  ;;  %v2291_v39 = vpack.c.bf16 %v2278_v59, %v2275_v12  ;;  %v6116_v49 = vld [vmem:[#allocation37_spill] sm:$0xff] }
 0x9d5   :  { %2410 = vmatprep.subr.bf16.mxu1 %v6107_v16  ;;  %2453 = vmatprep.subr.bf16.mxu0 %v6108_v17  ;;  %v6117_v16 = vld [vmem:[#allocation38_spill] sm:$0xff]  ;;  %v2286_v17 = vadd.f32 %v3767_v61, %v6115_v2 }
 0x9d8   :  { %2411 = vmatpush1.bf16.msra.mxu1 %v6109_v55  ;;  %2454 = vmatpush1.bf16.msra.mxu0 %v6110_v6  ;;  %v2283_v55 = vadd.f32 %v3766_v29, %v6115_v2 }
 0x9d9   :  { %2412 = vmatprep.subr.bf16.mxu1 %v6111_v20  ;;  %2455 = vmatprep.subr.bf16.mxu0 %v6112_v47  ;;  %v6118_v20 = vld [vmem:[#allocation39_spill] sm:$0xff]  ;;  %v6119_v47 = vld [vmem:[#allocation40_spill] sm:$0xff] }
 0x9da   :  { %v2292_v6 = vpack.c.bf16 %v2286_v17, %v2283_v55 }
 0x9dc   :  { %2413 = vmatpush1.bf16.msra.mxu1 %v6113_v22  ;;  %2456 = vmatpush1.bf16.msra.mxu0 %v6114_v43  ;;  %v6120_v22 = vld [vmem:[#allocation41_spill] sm:$0xff]  ;;  %v6121_v43 = vld [vmem:[#allocation42_spill] sm:$0xff] }
 0x9df   :  { %3468 = vmatmul.mubr.msk.bf16.vlgmr.msra.gmra.mxu1 %vm730_vm4, %v2301_v57  ;;  %3469 = vmatmul.mubr.msk.bf16.vlgmr.msra.gmra.mxu0 %vm730_vm4, %v2301_v57 }
 0x9e0   :  { %2536 = vmatprep.mubr.bf16.mxu1 %v6095_v51  ;;  %2609 = vmatprep.mubr.bf16.mxu0 %v6095_v51 }
 0xa8f   :  { %v2346_v41 = vpop.f32.mrf.mxu1  ;;  %v2389_v13 = vpop.f32.mrf.mxu0 }
 0xa91   :  { %v2348_v14 = vpop.f32.mrf.mxu1  ;;  %v2391_v11 = vpop.f32.mrf.mxu0 }
 0xa93   :  { %v2350_v36 = vpop.f32.mrf.mxu1  ;;  %v2393_v38 = vpop.f32.mrf.mxu0 }
 0xa94   :  { %v2484_v26 = vpack.c.bf16 %v2350_v36, %v2346_v41  ;;  %v2486_v27 = vpack.c.bf16 %v2393_v38, %v2389_v13 }
 0xa95   :  { %v2352_v56 = vpop.f32.mrf.mxu1  ;;  %v2395_v8 = vpop.f32.mrf.mxu0 }
 0xa96   :  { %v2485_v18 = vpack.c.bf16 %v2352_v56, %v2348_v14  ;;  %v2487_v23 = vpack.c.bf16 %v2395_v8, %v2391_v11 }
 0xa98   :  { %2518 = vmatprep.subr.bf16.mxu1 %v2485_v18  ;;  %2591 = vmatprep.subr.bf16.mxu0 %v2487_v23 }
 0xa99   :  { %2519 = vmatpush1.bf16.msra.mxu1 %v2484_v26  ;;  %2592 = vmatpush1.bf16.msra.mxu0 %v2486_v27 }
 0xa9c   :  { %3470 = vmatmul.mubr.msk.bf16.vlgmr.msra.gmra.mxu1 %vm88_vm0, %v2289_v24  ;;  %3474 = vmatmul.mubr.msk.bf16.vlgmr.msra.gmra.mxu0 %vm88_vm0, %v2289_v24 }
 0xa9d   :  { %2546 = vmatprep.mubr.bf16.mxu1 %v6095_v51  ;;  %2619 = vmatprep.mubr.bf16.mxu0 %v6095_v51 }
 0xa9f   :  { %v2432_v5 = vpop.f32.mrf.mxu1  ;;  %v2475_v28 = vpop.f32.mrf.mxu0 }
 0xaa1   :  { %v2434_v45 = vpop.f32.mrf.mxu1  ;;  %v2477_v44 = vpop.f32.mrf.mxu0 }
 0xaa3   :  { %v2436_v50 = vpop.f32.mrf.mxu1  ;;  %v2479_v62 = vpop.f32.mrf.mxu0 }
 0xaa4   :  { %3471 = vmatmul.mubr.msk.bf16.gmra.mxu1 %vm88_vm0, %v2290_v0  ;;  %3475 = vmatmul.mubr.msk.bf16.gmra.mxu0 %vm88_vm0, %v2290_v0  ;;  %v2488_v35 = vpack.c.bf16 %v2436_v50, %v2432_v5  ;;  %v2490_v32 = vpack.c.bf16 %v2479_v62, %v2475_v28 }
 0xaa5   :  { %v2438_v63 = vpop.f32.mrf.mxu1  ;;  %v2481_v58 = vpop.f32.mrf.mxu0  ;;  %2556 = vmatprep.mubr.bf16.mxu1 %v6095_v51  ;;  %2629 = vmatprep.mubr.bf16.mxu0 %v6095_v51 }
 0xaa6   :  { %v2489_v57 = vpack.c.bf16 %v2438_v63, %v2434_v45  ;;  %v2491_v33 = vpack.c.bf16 %v2481_v58, %v2477_v44 }
 0xaa8   :  { %2664 = vmatprep.subr.bf16.mxu1 %v2489_v57  ;;  %2737 = vmatprep.subr.bf16.mxu0 %v2491_v33 }
 0xaa9   :  { %2665 = vmatpush1.bf16.msra.mxu1 %v2488_v35  ;;  %2738 = vmatpush1.bf16.msra.mxu0 %v2490_v32 }
 0xaaa   :  { %2810 = vmatprep.subr.bf16.mxu1 %v6116_v49  ;;  %2883 = vmatprep.subr.bf16.mxu0 %v6117_v16 }
 0xaac   :  { %3472 = vmatmul.mubr.msk.bf16.gmra.mxu1 %vm88_vm0, %v2291_v39  ;;  %3476 = vmatmul.mubr.msk.bf16.gmra.mxu0 %vm88_vm0, %v2291_v39 }
 0xaad   :  { %2566 = vmatprep.mubr.bf16.mxu1 %v6095_v51  ;;  %2639 = vmatprep.mubr.bf16.mxu0 %v6095_v51 }
 0xab4   :  { %3473 = vmatmul.mubr.msk.bf16.gmra.mxu1 %vm88_vm0, %v2292_v6  ;;  %3477 = vmatmul.mubr.msk.bf16.gmra.mxu0 %vm88_vm0, %v2292_v6 }
 0xab5   :  { %2682 = vmatprep.mubr.bf16.mxu1 %v6095_v51  ;;  %2755 = vmatprep.mubr.bf16.mxu0 %v6095_v51 }
 0xabc   :  { %3478 = vmatmul.mubr.msk.bf16.vlgmr.msra.gmra.mxu1 %vm88_vm0, %v2289_v24  ;;  %3482 = vmatmul.mubr.msk.bf16.vlgmr.msra.gmra.mxu0 %vm88_vm0, %v2289_v24 }
 0xabd   :  { %2692 = vmatprep.mubr.bf16.mxu1 %v6095_v51  ;;  %2765 = vmatprep.mubr.bf16.mxu0 %v6095_v51 }
 0xabe   :  { %2811 = vmatpush1.bf16.msra.mxu1 %v6118_v20  ;;  %2884 = vmatpush1.bf16.msra.mxu0 %v6119_v47 }
 0xabf   :  { %2956 = vmatprep.subr.bf16.mxu1 %v6120_v22  ;;  %3029 = vmatprep.subr.bf16.mxu0 %v6121_v43 }
 0xac4   :  { %3479 = vmatmul.mubr.msk.bf16.gmra.mxu1 %vm88_vm0, %v2290_v0  ;;  %3483 = vmatmul.mubr.msk.bf16.gmra.mxu0 %vm88_vm0, %v2290_v0 }
 0xac5   :  { %2702 = vmatprep.mubr.bf16.mxu1 %v6095_v51  ;;  %2775 = vmatprep.mubr.bf16.mxu0 %v6095_v51 }
 0xacc   :  { %3480 = vmatmul.mubr.msk.bf16.gmra.mxu1 %vm88_vm0, %v2291_v39  ;;  %3484 = vmatmul.mubr.msk.bf16.gmra.mxu0 %vm88_vm0, %v2291_v39 }
 0xacd   :  { %2712 = vmatprep.mubr.bf16.mxu1 %v6095_v51  ;;  %2785 = vmatprep.mubr.bf16.mxu0 %v6095_v51 }
 0xad4   :  { %3481 = vmatmul.mubr.msk.bf16.gmra.mxu1 %vm88_vm0, %v2292_v6  ;;  %3485 = vmatmul.mubr.msk.bf16.gmra.mxu0 %vm88_vm0, %v2292_v6 }
 0xad5   :  { %2828 = vmatprep.mubr.bf16.mxu1 %v6095_v51  ;;  %2901 = vmatprep.mubr.bf16.mxu0 %v6095_v51 }
 0xadc   :  { %3486 = vmatmul.mubr.msk.bf16.vlgmr.msra.gmra.mxu1 %vm88_vm0, %v5129_v3  ;;  %3490 = vmatmul.mubr.msk.bf16.vlgmr.msra.gmra.mxu0 %vm88_vm0, %v5129_v3 }
 0xadd   :  { %2838 = vmatprep.mubr.bf16.mxu1 %v6095_v51  ;;  %2911 = vmatprep.mubr.bf16.mxu0 %v6095_v51 }
 0xade   :  { %2957 = vmatpush1.bf16.msra.mxu1 %v6122_v42  ;;  %3030 = vmatpush1.bf16.msra.mxu0 %v6123_v31 }
 0xae4   :  { %3487 = vmatmul.mubr.msk.bf16.gmra.mxu1 %vm88_vm0, %v5131_v30  ;;  %3491 = vmatmul.mubr.msk.bf16.gmra.mxu0 %vm88_vm0, %v5131_v30 }
 0xae5   :  { %2848 = vmatprep.mubr.bf16.mxu1 %v6095_v51  ;;  %2921 = vmatprep.mubr.bf16.mxu0 %v6095_v51 }
 0xaec   :  { %3488 = vmatmul.mubr.msk.bf16.gmra.mxu1 %vm88_vm0, %v5145_v7  ;;  %3492 = vmatmul.mubr.msk.bf16.gmra.mxu0 %vm88_vm0, %v5145_v7 }
 0xaed   :  { %2858 = vmatprep.mubr.bf16.mxu1 %v6095_v51  ;;  %2931 = vmatprep.mubr.bf16.mxu0 %v6095_v51 }
 0xaf4   :  { %3489 = vmatmul.mubr.msk.bf16.gmra.mxu1 %vm88_vm0, %v5149_v10  ;;  %3493 = vmatmul.mubr.msk.bf16.gmra.mxu0 %vm88_vm0, %v5149_v10 }
 0xaf5   :  { %2974 = vmatprep.mubr.bf16.mxu1 %v6095_v51  ;;  %3047 = vmatprep.mubr.bf16.mxu0 %v6095_v51 }
 0xafc   :  { %3494 = vmatmul.mubr.msk.bf16.vlgmr.msra.gmra.mxu1 %vm88_vm0, %v5129_v3  ;;  %3498 = vmatmul.mubr.msk.bf16.vlgmr.msra.gmra.mxu0 %vm88_vm0, %v5129_v3 }
 0xafd   :  { %2984 = vmatprep.mubr.bf16.mxu1 %v6095_v51  ;;  %3057 = vmatprep.mubr.bf16.mxu0 %v6095_v51 }
 0xb04   :  { %3495 = vmatmul.mubr.msk.bf16.gmra.mxu1 %vm88_vm0, %v5131_v30  ;;  %3499 = vmatmul.mubr.msk.bf16.gmra.mxu0 %vm88_vm0, %v5131_v30 }
 0xb05   :  { %2994 = vmatprep.mubr.bf16.mxu1 %v6095_v51  ;;  %3067 = vmatprep.mubr.bf16.mxu0 %v6095_v51 }
 0xb0c   :  { %3496 = vmatmul.mubr.msk.bf16.gmra.mxu1 %vm88_vm0, %v5145_v7  ;;  %3500 = vmatmul.mubr.msk.bf16.gmra.mxu0 %vm88_vm0, %v5145_v7 }
 0xb0d   :  { %3004 = vmatprep.mubr.bf16.mxu1 %v6095_v51  ;;  %3077 = vmatprep.mubr.bf16.mxu0 %v6095_v51 }
 0xb14   :  { %3497 = vmatmul.mubr.msk.bf16.gmra.mxu1 %vm88_vm0, %v5149_v10  ;;  %3501 = vmatmul.mubr.msk.bf16.gmra.mxu0 %vm88_vm0, %v5149_v10 }
 0xb5c   :  { %v5295_v3 = vpop.f32.mrf.mxu1  ;;  %v5297_v30 = vpop.f32.mrf.mxu0 }
 0xb5e   :  { %v5299_v1 = vpop.f32.mrf.mxu1  ;;  %v5301_v34 = vpop.f32.mrf.mxu0 }
 0xb60   :  { %v5303_v29 = vpop.f32.mrf.mxu1  ;;  %v5305_v7 = vpop.f32.mrf.mxu0 }
 0xb62   :  { %v5307_v19 = vpop.f32.mrf.mxu1  ;;  %v5309_v51 = vpop.f32.mrf.mxu0 }
 0xb64   :  { %v5311_v61 = vpop.f32.mrf.mxu1  ;;  %v5313_v48 = vpop.f32.mrf.mxu0 }
 0xb66   :  { %v5315_v10 = vpop.f32.mrf.mxu1  ;;  %v5317_v41 = vpop.f32.mrf.mxu0 }
 0xb68   :  { %v5319_v13 = vpop.f32.mrf.mxu1  ;;  %v5321_v14 = vpop.f32.mrf.mxu0 }
 0xb6a   :  { %v5323_v11 = vpop.f32.mrf.mxu1  ;;  %v5325_v36 = vpop.f32.mrf.mxu0 }
 0xb6c   :  { %v5327_v38 = vpop.f32.mrf.mxu1  ;;  %v5329_v56 = vpop.f32.mrf.mxu0 }
 0xb6e   :  { %v5331_v8 = vpop.f32.mrf.mxu1  ;;  %v5333_v2 = vpop.f32.mrf.mxu0 }
 0xb70   :  { %v5335_v4 = vpop.f32.mrf.mxu1  ;;  %v5337_v18 = vpop.f32.mrf.mxu0 }
 0xb72   :  { %v5339_v23 = vpop.f32.mrf.mxu1  ;;  %v5341_v26 = vpop.f32.mrf.mxu0 }
 0xb74   :  { %v5343_v27 = vpop.f32.mrf.mxu1  ;;  %v5345_v15 = vpop.f32.mrf.mxu0 }
 0xb76   :  { %v5347_v24 = vpop.f32.mrf.mxu1  ;;  %v5349_v60 = vpop.f32.mrf.mxu0 }
 0xb78   :  { %v5351_v5 = vpop.f32.mrf.mxu1  ;;  %v5353_v28 = vpop.f32.mrf.mxu0 }
 0xb7a   :  { %v5355_v37 = vpop.f32.mrf.mxu1  ;;  %v5357_v45 = vpop.f32.mrf.mxu0 }
 0xb7c   :  { %v5359_v44 = vpop.f32.mrf.mxu1  ;;  %v5361_v0 = vpop.f32.mrf.mxu0 }
 0xb7e   :  { %v5363_v50 = vpop.f32.mrf.mxu1  ;;  %v5365_v62 = vpop.f32.mrf.mxu0 }
 0xb80   :  { %v5367_v63 = vpop.f32.mrf.mxu1  ;;  %v5369_v58 = vpop.f32.mrf.mxu0 }
 0xb82   :  { %v5371_v59 = vpop.f32.mrf.mxu1  ;;  %v5373_v57 = vpop.f32.mrf.mxu0 }
 0xb84   :  { %v5375_v33 = vpop.f32.mrf.mxu1  ;;  %v5377_v35 = vpop.f32.mrf.mxu0 }
 0xb86   :  { %v5379_v32 = vpop.f32.mrf.mxu1  ;;  %v5381_v12 = vpop.f32.mrf.mxu0 }
 0xb87   :  { %6124 = vst [vmem:[#allocation45_spill] sm:$0xff] %v5379_v32  ;;  %6125 = vst [vmem:[#allocation46_spill] sm:$0xff] %v5381_v12 }
 0xb88   :  { %v5383_v39 = vpop.f32.mrf.mxu1  ;;  %v5385_v49 = vpop.f32.mrf.mxu0 }
 0xb89   :  { %6126 = vst [vmem:[#allocation47_spill] sm:$0xff] %v5383_v39  ;;  %6127 = vst [vmem:[#allocation48_spill] sm:$0xff] %v5385_v49 }
 0xb8a   :  { %v5387_v16 = vpop.f32.mrf.mxu1  ;;  %v5389_v17 = vpop.f32.mrf.mxu0 }
 0xb8b   :  { %6128 = vst [vmem:[#allocation49_spill] sm:$0xff] %v5387_v16  ;;  %6129 = vst [vmem:[#allocation50_spill] sm:$0xff] %v5389_v17 }
 0xb8c   :  { %v5391_v55 = vpop.f32.mrf.mxu1  ;;  %v5393_v6 = vpop.f32.mrf.mxu0 }
 0xb8d   :  { %6130 = vst [vmem:[#allocation51_spill] sm:$0xff] %v5391_v55  ;;  %6131 = vst [vmem:[#allocation52_spill] sm:$0xff] %v5393_v6 }
 0xb8e   :  { %v5395_v20 = vpop.f32.mrf.mxu1  ;;  %v5397_v47 = vpop.f32.mrf.mxu0 }
 0xb8f   :  { %6132 = vst [vmem:[#allocation53_spill] sm:$0xff] %v5395_v20  ;;  %6133 = vst [vmem:[#allocation54_spill] sm:$0xff] %v5397_v47 }
 0xb90   :  { %v5399_v22 = vpop.f32.mrf.mxu1  ;;  %v5401_v43 = vpop.f32.mrf.mxu0 }
 0xb91   :  { %6134 = vst [vmem:[#allocation55_spill] sm:$0xff] %v5399_v22  ;;  %6135 = vst [vmem:[#allocation56_spill] sm:$0xff] %v5401_v43 }
 0xb92   :  { %v5403_v42 = vpop.f32.mrf.mxu1  ;;  %v5405_v31 = vpop.f32.mrf.mxu0 }
 0xb93   :  { %6136 = vst [vmem:[#allocation57_spill] sm:$0xff] %v5403_v42  ;;  %6137 = vst [vmem:[#allocation58_spill] sm:$0xff] %v5405_v31 }
 0xb94   :  { %v5407_v49 = vpop.f32.mrf.mxu1  ;;  %v5409_v16 = vpop.f32.mrf.mxu0 }
 0xb95   :  { %6138 = vst [vmem:[#allocation59_spill] sm:$0xff] %v5407_v49  ;;  %6139 = vst [vmem:[#allocation60_spill] sm:$0xff] %v5409_v16 }
 0xb96   :  { %v5411_v17 = vpop.f32.mrf.mxu1  ;;  %v5413_v55 = vpop.f32.mrf.mxu0 }
 0xb97   :  { %6140 = vst [vmem:[#allocation61_spill] sm:$0xff] %v5411_v17  ;;  %6141 = vst [vmem:[#allocation62_spill] sm:$0xff] %v5413_v55  ;;  %v3502_v17 = vld [vmem:[%s5943_s8 + $0x200] sm:$0xff] }
 0xb98   :  { %v5415_v6 = vpop.f32.mrf.mxu1  ;;  %v5417_v20 = vpop.f32.mrf.mxu0 }
 0xb99   :  { %6142 = vst [vmem:[#allocation63_spill] sm:$0xff] %v5415_v6  ;;  %6143 = vst [vmem:[#allocation64_spill] sm:$0xff] %v5417_v20  ;;  %v3504_v6 = vld [vmem:[%s5943_s8 + $0x210] sm:$0xff] }
 0xb9a   :  { %v5419_v47 = vpop.f32.mrf.mxu1  ;;  %v5421_v22 = vpop.f32.mrf.mxu0 }
 0xb9b   :  { %6144 = vst [vmem:[#allocation2_spill] sm:$0xff] %v5419_v47  ;;  %6145 = vst [vmem:[#allocation4_spill] sm:$0xff] %v5421_v22 }
 0xb9c   :  { %v2830_v43 = vpop.f32.mrf.mxu1  ;;  %v2903_v42 = vpop.f32.mrf.mxu0 }
 0xb9d   :  { %v2831_v31 = vadd.f32 %v2830_v43, %v5295_v3  ;;  %v2904_v49 = vadd.f32 %v2903_v42, %v5297_v30  ;;  %v3503_v30 = vld [vmem:[%s5943_s8 + $0x208] sm:$0xff]  ;;  %v3505_v43 = vld [vmem:[%s5943_s8 + $0x218] sm:$0xff] }
 0xb9e   :  { %v2832_v55 = vpop.f32.mrf.mxu1  ;;  %v2905_v20 = vpop.f32.mrf.mxu0 }
 0xb9f   :  { %v3088_v47 = vadd.f32 %v2831_v31, %v4540_v53  ;;  %v3090_v22 = vadd.f32 %v2904_v49, %v4543_v46  ;;  %v2833_v16 = vadd.f32 %v2832_v55, %v5299_v1  ;;  %v2906_v3 = vadd.f32 %v2905_v20, %v5301_v34 }
 0xba0   :  { %v2834_v42 = vpop.f32.mrf.mxu1  ;;  %v2907_v39 = vpop.f32.mrf.mxu0 }
 0xba1   :  { %v3217_v12 = vadd.f32 %v3502_v17, %v3088_v47  ;;  %v3219_v32 = vadd.f32 %v3504_v6, %v3090_v22  ;;  %v3089_v31 = vadd.f32 %v2833_v16, %v4548_v21  ;;  %v3091_v49 = vadd.f32 %v2906_v3, %v4551_v52  ;;  %v3510_v16 = vld [vmem:[%s5943_s8 + $0x240] sm:$0xff]  ;;  %v3513_v22 = vld [vmem:[%s5943_s8 + $0x258] sm:$0xff] }
 0xba2   :  { %v2835_v1 = vadd.f32 %v2834_v42, %v5303_v29  ;;  %v2908_v34 = vadd.f32 %v2907_v39, %v5305_v7  ;;  %v2836_v55 = vpop.f32.mrf.mxu1  ;;  %v2909_v20 = vpop.f32.mrf.mxu0  ;;  %v3512_v29 = vld [vmem:[%s5943_s8 + $0x250] sm:$0xff] }
 0xba3   :  { %3566 = vst [vmem:[%s5944_s9 + $0x200] sm:$0xff] %v3217_v12  ;;  %3568 = vst [vmem:[%s5944_s9 + $0x210] sm:$0xff] %v3219_v32  ;;  %v3218_v17 = vadd.f32 %v3503_v30, %v3089_v31  ;;  %v3220_v6 = vadd.f32 %v3505_v43, %v3091_v49  ;;  %v2837_v7 = vadd.f32 %v2836_v55, %v5307_v19  ;;  %v3511_v32 = vld [vmem:[%s5943_s8 + $0x248] sm:$0xff] }
 0xba4   :  { %v2910_v39 = vadd.f32 %v2909_v20, %v5309_v51  ;;  %v3096_v12 = vadd.f32 %v2835_v1, %v4540_v53  ;;  %v3098_v47 = vadd.f32 %v2908_v34, %v4543_v46  ;;  %v2840_v3 = vpop.f32.mrf.mxu1  ;;  %v2913_v30 = vpop.f32.mrf.mxu0  ;;  %v3518_v1 = vld [vmem:[%s5943_s8 + $0x280] sm:$0xff]  ;;  %v3520_v34 = vld [vmem:[%s5943_s8 + $0x290] sm:$0xff] }
 0xba5   :  { %3567 = vst [vmem:[%s5944_s9 + $0x208] sm:$0xff] %v3218_v17  ;;  %3569 = vst [vmem:[%s5944_s9 + $0x218] sm:$0xff] %v3220_v6  ;;  %v3097_v19 = vadd.f32 %v2837_v7, %v4548_v21  ;;  %v2841_v43 = vadd.f32 %v2840_v3, %v5311_v61  ;;  %v2914_v42 = vadd.f32 %v2913_v30, %v5313_v48 }
 0xba6   :  { %v3099_v51 = vadd.f32 %v2910_v39, %v4551_v52  ;;  %v3225_v31 = vadd.f32 %v3510_v16, %v3096_v12  ;;  %v3227_v49 = vadd.f32 %v3512_v29, %v3098_v47  ;;  %v2842_v55 = vpop.f32.mrf.mxu1  ;;  %v2915_v20 = vpop.f32.mrf.mxu0 }
 0xba7   :  { %v3226_v17 = vadd.f32 %v3511_v32, %v3097_v19  ;;  %v3104_v7 = vadd.f32 %v2841_v43, %v4540_v53  ;;  %v3106_v61 = vadd.f32 %v2914_v42, %v4543_v46  ;;  %v2843_v48 = vadd.f32 %v2842_v55, %v5315_v10  ;;  %v3519_v32 = vld [vmem:[%s5943_s8 + $0x288] sm:$0xff]  ;;  %v3521_v10 = vld [vmem:[%s5943_s8 + $0x298] sm:$0xff]  ;;  %v3526_v19 = vld [vmem:[%s5943_s8 + $0x2c0] sm:$0xff] }
 0xba8   :  { %v3228_v6 = vadd.f32 %v3513_v22, %v3099_v51  ;;  %3574 = vst [vmem:[%s5944_s9 + $0x240] sm:$0xff] %v3225_v31  ;;  %3576 = vst [vmem:[%s5944_s9 + $0x250] sm:$0xff] %v3227_v49  ;;  %v2916_v16 = vadd.f32 %v2915_v20, %v5317_v41  ;;  %v2844_v29 = vpop.f32.mrf.mxu1  ;;  %v2917_v39 = vpop.f32.mrf.mxu0  ;;  %v3528_v51 = vld [vmem:[%s5943_s8 + $0x2d0] sm:$0xff]  ;;  %v3527_v55 = vld [vmem:[%s5943_s8 + $0x2c8] sm:$0xff] }
 0xba9   :  { %3575 = vst [vmem:[%s5944_s9 + $0x248] sm:$0xff] %v3226_v17  ;;  %v3233_v12 = vadd.f32 %v3518_v1, %v3104_v7  ;;  %v3235_v47 = vadd.f32 %v3520_v34, %v3106_v61  ;;  %v2845_v41 = vadd.f32 %v2844_v29, %v5319_v13  ;;  %v2918_v22 = vadd.f32 %v2917_v39, %v5321_v14  ;;  %v3529_v20 = vld [vmem:[%s5943_s8 + $0x2d8] sm:$0xff] }
 0xbaa   :  { %3577 = vst [vmem:[%s5944_s9 + $0x258] sm:$0xff] %v3228_v6  ;;  %v3105_v3 = vadd.f32 %v2843_v48, %v4548_v21  ;;  %v3107_v30 = vadd.f32 %v2916_v16, %v4551_v52  ;;  %v2846_v43 = vpop.f32.mrf.mxu1  ;;  %v2919_v42 = vpop.f32.mrf.mxu0 }
 0xbab   :  { %3582 = vst [vmem:[%s5944_s9 + $0x280] sm:$0xff] %v3233_v12  ;;  %3584 = vst [vmem:[%s5944_s9 + $0x290] sm:$0xff] %v3235_v47  ;;  %v3112_v13 = vadd.f32 %v2845_v41, %v4540_v53  ;;  %v3114_v14 = vadd.f32 %v2918_v22, %v4543_v46  ;;  %v2847_v31 = vadd.f32 %v2846_v43, %v5323_v11 }
 0xbac   :  { %v2920_v49 = vadd.f32 %v2919_v42, %v5325_v36  ;;  %v3234_v1 = vadd.f32 %v3519_v32, %v3105_v3  ;;  %v3236_v34 = vadd.f32 %v3521_v10, %v3107_v30  ;;  %v2850_v17 = vpop.f32.mrf.mxu1  ;;  %v2923_v6 = vpop.f32.mrf.mxu0  ;;  %v3534_v32 = vld [vmem:[%s5943_s8 + $0x300] sm:$0xff]  ;;  %v3535_v3 = vld [vmem:[%s5943_s8 + $0x308] sm:$0xff]  ;;  %v3537_v30 = vld [vmem:[%s5943_s8 + $0x318] sm:$0xff] }
 0xbad   :  { %v3241_v7 = vadd.f32 %v3526_v19, %v3112_v13  ;;  %v3243_v61 = vadd.f32 %v3528_v51, %v3114_v14  ;;  %v3113_v48 = vadd.f32 %v2847_v31, %v4548_v21  ;;  %v2851_v36 = vadd.f32 %v2850_v17, %v5327_v38  ;;  %v3536_v38 = vld [vmem:[%s5943_s8 + $0x310] sm:$0xff]  ;;  %v3542_v31 = vld [vmem:[%s5943_s8 + $0x340] sm:$0xff] }
 0xbae   :  { %v3115_v11 = vadd.f32 %v2920_v49, %v4551_v52  ;;  %3583 = vst [vmem:[%s5944_s9 + $0x288] sm:$0xff] %v3234_v1  ;;  %3585 = vst [vmem:[%s5944_s9 + $0x298] sm:$0xff] %v3236_v34  ;;  %v2924_v16 = vadd.f32 %v2923_v6, %v5329_v56  ;;  %v2852_v29 = vpop.f32.mrf.mxu1  ;;  %v2925_v39 = vpop.f32.mrf.mxu0  ;;  %v3544_v49 = vld [vmem:[%s5943_s8 + $0x350] sm:$0xff] }
 0xbaf   :  { %3590 = vst [vmem:[%s5944_s9 + $0x2c0] sm:$0xff] %v3241_v7  ;;  %3592 = vst [vmem:[%s5944_s9 + $0x2d0] sm:$0xff] %v3243_v61  ;;  %v3242_v12 = vadd.f32 %v3527_v55, %v3113_v48  ;;  %v2853_v56 = vadd.f32 %v2852_v29, %v5331_v8  ;;  %v2926_v10 = vadd.f32 %v2925_v39, %v5333_v2 }
 0xbb0   :  { %v3244_v47 = vadd.f32 %v3529_v20, %v3115_v11  ;;  %v3120_v41 = vadd.f32 %v2851_v36, %v4540_v53  ;;  %v3122_v22 = vadd.f32 %v2924_v16, %v4543_v46  ;;  %v2854_v19 = vpop.f32.mrf.mxu1  ;;  %v2927_v51 = vpop.f32.mrf.mxu0  ;;  %v3543_v36 = vld [vmem:[%s5943_s8 + $0x348] sm:$0xff] }
 0xbb1   :  { %3591 = vst [vmem:[%s5944_s9 + $0x2c8] sm:$0xff] %v3242_v12  ;;  %v3121_v8 = vadd.f32 %v2853_v56, %v4548_v21  ;;  %v3123_v2 = vadd.f32 %v2926_v10, %v4551_v52  ;;  %v2855_v43 = vadd.f32 %v2854_v19, %v5335_v4  ;;  %v2928_v42 = vadd.f32 %v2927_v51, %v5337_v18  ;;  %v3550_v12 = vld [vmem:[%s5943_s8 + $0x380] sm:$0xff] }
 0xbb2   :  { %3593 = vst [vmem:[%s5944_s9 + $0x2d8] sm:$0xff] %v3244_v47  ;;  %v3249_v13 = vadd.f32 %v3534_v32, %v3120_v41  ;;  %v3251_v14 = vadd.f32 %v3536_v38, %v3122_v22  ;;  %v2856_v1 = vpop.f32.mrf.mxu1  ;;  %v2929_v34 = vpop.f32.mrf.mxu0  ;;  %v3552_v47 = vld [vmem:[%s5943_s8 + $0x390] sm:$0xff] }
 0xbb3   :  { %v3250_v55 = vadd.f32 %v3535_v3, %v3121_v8  ;;  %v3252_v20 = vadd.f32 %v3537_v30, %v3123_v2  ;;  %v3128_v17 = vadd.f32 %v2855_v43, %v4540_v53  ;;  %v3130_v4 = vadd.f32 %v2928_v42, %v4543_v46  ;;  %v3551_v3 = vld [vmem:[%s5943_s8 + $0x388] sm:$0xff]  ;;  %v3553_v30 = vld [vmem:[%s5943_s8 + $0x398] sm:$0xff] }
 0xbb4   :  { %3598 = vst [vmem:[%s5944_s9 + $0x300] sm:$0xff] %v3249_v13  ;;  %3600 = vst [vmem:[%s5944_s9 + $0x310] sm:$0xff] %v3251_v14  ;;  %v2857_v18 = vadd.f32 %v2856_v1, %v5339_v23  ;;  %v2930_v6 = vadd.f32 %v2929_v34, %v5341_v26  ;;  %v2860_v7 = vpop.f32.mrf.mxu1  ;;  %v2933_v61 = vpop.f32.mrf.mxu0  ;;  %v3545_v23 = vld [vmem:[%s5943_s8 + $0x358] sm:$0xff]  ;;  %v3558_v1 = vld [vmem:[%s5943_s8 + $0x3c0] sm:$0xff] }
 0xbb5   :  { %3599 = vst [vmem:[%s5944_s9 + $0x308] sm:$0xff] %v3250_v55  ;;  %3601 = vst [vmem:[%s5944_s9 + $0x318] sm:$0xff] %v3252_v20  ;;  %v3257_v48 = vadd.f32 %v3542_v31, %v3128_v17  ;;  %v3259_v11 = vadd.f32 %v3544_v49, %v3130_v4  ;;  %v2861_v26 = vadd.f32 %v2860_v7, %v5343_v27  ;;  %v3559_v17 = vld [vmem:[%s5943_s8 + $0x3c8] sm:$0xff]  ;;  %v3561_v4 = vld [vmem:[%s5943_s8 + $0x3d8] sm:$0xff] }
 0xbb6   :  { %v2934_v16 = vadd.f32 %v2933_v61, %v5345_v15  ;;  %v3129_v29 = vadd.f32 %v2857_v18, %v4548_v21  ;;  %v3131_v39 = vadd.f32 %v2930_v6, %v4551_v52  ;;  %v2862_v32 = vpop.f32.mrf.mxu1  ;;  %v2935_v38 = vpop.f32.mrf.mxu0 }
 0xbb7   :  { %3606 = vst [vmem:[%s5944_s9 + $0x340] sm:$0xff] %v3257_v48  ;;  %3608 = vst [vmem:[%s5944_s9 + $0x350] sm:$0xff] %v3259_v11  ;;  %v3136_v27 = vadd.f32 %v2861_v26, %v4540_v53  ;;  %v2863_v56 = vadd.f32 %v2862_v32, %v5347_v24  ;;  %v2936_v10 = vadd.f32 %v2935_v38, %v5349_v60  ;;  %v3506_v48 = vld [vmem:[%s5943_s8 + $0x220] sm:$0xff]  ;;  %v3508_v11 = vld [vmem:[%s5943_s8 + $0x230] sm:$0xff] }
 0xbb8   :  { %v3138_v15 = vadd.f32 %v2934_v16, %v4543_v46  ;;  %v3258_v41 = vadd.f32 %v3543_v36, %v3129_v29  ;;  %v3260_v22 = vadd.f32 %v3545_v23, %v3131_v39  ;;  %v2864_v19 = vpop.f32.mrf.mxu1  ;;  %v2937_v51 = vpop.f32.mrf.mxu0  ;;  %v3507_v32 = vld [vmem:[%s5943_s8 + $0x228] sm:$0xff] }
 0xbb9   :  { %v3265_v8 = vadd.f32 %v3550_v12, %v3136_v27  ;;  %v3137_v43 = vadd.f32 %v2863_v56, %v4548_v21  ;;  %v3139_v24 = vadd.f32 %v2936_v10, %v4551_v52  ;;  %v2865_v60 = vadd.f32 %v2864_v19, %v5351_v5  ;;  %v3560_v5 = vld [vmem:[%s5943_s8 + $0x3d0] sm:$0xff]  ;;  %v3514_v56 = vld [vmem:[%s5943_s8 + $0x260] sm:$0xff] }
 0xbba   :  { %v3267_v2 = vadd.f32 %v3552_v47, %v3138_v15  ;;  %3607 = vst [vmem:[%s5944_s9 + $0x348] sm:$0xff] %v3258_v41  ;;  %3609 = vst [vmem:[%s5944_s9 + $0x358] sm:$0xff] %v3260_v22  ;;  %v2938_v42 = vadd.f32 %v2937_v51, %v5353_v28  ;;  %v2866_v13 = vpop.f32.mrf.mxu1  ;;  %v2939_v14 = vpop.f32.mrf.mxu0  ;;  %v3516_v10 = vld [vmem:[%s5943_s8 + $0x270] sm:$0xff] }
 0xbbb   :  { %3614 = vst [vmem:[%s5944_s9 + $0x380] sm:$0xff] %v3265_v8  ;;  %v3266_v31 = vadd.f32 %v3551_v3, %v3137_v43  ;;  %v3268_v49 = vadd.f32 %v3553_v30, %v3139_v24  ;;  %v2867_v28 = vadd.f32 %v2866_v13, %v5355_v37  ;;  %v2940_v34 = vadd.f32 %v2939_v14, %v5357_v45  ;;  %v3515_v8 = vld [vmem:[%s5943_s8 + $0x268] sm:$0xff] }
 0xbbc   :  { %3616 = vst [vmem:[%s5944_s9 + $0x390] sm:$0xff] %v3267_v2  ;;  %v3144_v55 = vadd.f32 %v2865_v60, %v4540_v53  ;;  %v3146_v20 = vadd.f32 %v2938_v42, %v4543_v46  ;;  %v2976_v18 = vpop.f32.mrf.mxu1  ;;  %v3049_v6 = vpop.f32.mrf.mxu0  ;;  %v3517_v2 = vld [vmem:[%s5943_s8 + $0x278] sm:$0xff] }
 0xbbd   :  { %3615 = vst [vmem:[%s5944_s9 + $0x388] sm:$0xff] %v3266_v31  ;;  %3617 = vst [vmem:[%s5944_s9 + $0x398] sm:$0xff] %v3268_v49  ;;  %v3145_v46 = vadd.f32 %v2867_v28, %v4548_v21  ;;  %v3147_v53 = vadd.f32 %v2940_v34, %v4551_v52  ;;  %v2977_v37 = vadd.f32 %v2976_v18, %v5359_v44  ;;  %v3522_v28 = vld [vmem:[%s5943_s8 + $0x2a0] sm:$0xff]  ;;  %v3523_v18 = vld [vmem:[%s5943_s8 + $0x2a8] sm:$0xff] }
 0xbbe   :  { %v3050_v45 = vadd.f32 %v3049_v6, %v5361_v0  ;;  %v3273_v7 = vadd.f32 %v3558_v1, %v3144_v55  ;;  %v3275_v61 = vadd.f32 %v3560_v5, %v3146_v20  ;;  %v2978_v36 = vpop.f32.mrf.mxu1  ;;  %v3051_v23 = vpop.f32.mrf.mxu0  ;;  %v6147_v55 = vld [vmem:[#allocation46_spill] sm:$0xff]  ;;  %v3525_v6 = vld [vmem:[%s5943_s8 + $0x2b8] sm:$0xff] }
 0xbbf   :  { %v3274_v26 = vadd.f32 %v3559_v17, %v3145_v46  ;;  %v3276_v21 = vadd.f32 %v3561_v4, %v3147_v53  ;;  %v3092_v52 = vadd.f32 %v2977_v37, %v4758_v54  ;;  %v2979_v0 = vadd.f32 %v2978_v36, %v5363_v50  ;;  %v3509_v50 = vld [vmem:[%s5943_s8 + $0x238] sm:$0xff] }
 0xbc0   :  { %v3094_v44 = vadd.f32 %v3050_v45, %v4761_v40  ;;  %3622 = vst [vmem:[%s5944_s9 + $0x3c0] sm:$0xff] %v3273_v7  ;;  %3624 = vst [vmem:[%s5944_s9 + $0x3d0] sm:$0xff] %v3275_v61  ;;  %v3052_v16 = vadd.f32 %v3051_v23, %v5365_v62  ;;  %v2980_v29 = vpop.f32.mrf.mxu1  ;;  %v3053_v39 = vpop.f32.mrf.mxu0  ;;  %v6148_v7 = vld [vmem:[#allocation47_spill] sm:$0xff] }
 0xbc1   :  { %3623 = vst [vmem:[%s5944_s9 + $0x3c8] sm:$0xff] %v3274_v26  ;;  %3625 = vst [vmem:[%s5944_s9 + $0x3d8] sm:$0xff] %v3276_v21  ;;  %v3221_v12 = vadd.f32 %v3506_v48, %v3092_v52  ;;  %v2981_v62 = vadd.f32 %v2980_v29, %v5367_v63  ;;  %v3054_v38 = vadd.f32 %v3053_v39, %v5369_v58  ;;  %v6149_v48 = vld [vmem:[#allocation48_spill] sm:$0xff]  ;;  %v3530_v26 = vld [vmem:[%s5943_s8 + $0x2e0] sm:$0xff] }
 0xbc2   :  { %v3223_v47 = vadd.f32 %v3508_v11, %v3094_v44  ;;  %v3093_v27 = vadd.f32 %v2979_v0, %v4814_v25  ;;  %v3095_v15 = vadd.f32 %v3052_v16, %v4817_v9  ;;  %v2982_v41 = vpop.f32.mrf.mxu1  ;;  %v3055_v22 = vpop.f32.mrf.mxu0  ;;  %v3532_v21 = vld [vmem:[%s5943_s8 + $0x2f0] sm:$0xff] }
 0xbc3   :  { %3570 = vst [vmem:[%s5944_s9 + $0x220] sm:$0xff] %v3221_v12  ;;  %v3100_v63 = vadd.f32 %v2981_v62, %v4758_v54  ;;  %v3102_v58 = vadd.f32 %v3054_v38, %v4761_v40  ;;  %v2983_v3 = vadd.f32 %v2982_v41, %v5371_v59  ;;  %v3056_v30 = vadd.f32 %v3055_v22, %v5373_v57  ;;  %v6150_v12 = vld [vmem:[#allocation49_spill] sm:$0xff]  ;;  %v6152_v41 = vld [vmem:[#allocation51_spill] sm:$0xff] }
 0xbc4   :  { %3572 = vst [vmem:[%s5944_s9 + $0x230] sm:$0xff] %v3223_v47  ;;  %v3222_v19 = vadd.f32 %v3507_v32, %v3093_v27  ;;  %v3224_v51 = vadd.f32 %v3509_v50, %v3095_v15  ;;  %v2986_v43 = vpop.f32.mrf.mxu1  ;;  %v3059_v24 = vpop.f32.mrf.mxu0  ;;  %v6151_v32 = vld [vmem:[#allocation50_spill] sm:$0xff] }
 0xbc5   :  { %v3229_v60 = vadd.f32 %v3514_v56, %v3100_v63  ;;  %v3231_v42 = vadd.f32 %v3516_v10, %v3102_v58  ;;  %v3101_v13 = vadd.f32 %v2983_v3, %v4814_v25  ;;  %v3103_v59 = vadd.f32 %v3056_v30, %v4817_v9  ;;  %v3531_v56 = vld [vmem:[%s5943_s8 + $0x2e8] sm:$0xff]  ;;  %v3533_v10 = vld [vmem:[%s5943_s8 + $0x2f8] sm:$0xff]  ;;  %v6153_v63 = vld [vmem:[#allocation52_spill] sm:$0xff] }
 0xbc6   :  { %3571 = vst [vmem:[%s5944_s9 + $0x228] sm:$0xff] %v3222_v19  ;;  %3573 = vst [vmem:[%s5944_s9 + $0x238] sm:$0xff] %v3224_v51  ;;  %v2987_v57 = vadd.f32 %v2986_v43, %v5375_v33  ;;  %v3060_v14 = vadd.f32 %v3059_v24, %v5377_v35  ;;  %v2988_v31 = vpop.f32.mrf.mxu1  ;;  %v3061_v49 = vpop.f32.mrf.mxu0  ;;  %v3524_v33 = vld [vmem:[%s5943_s8 + $0x2b0] sm:$0xff]  ;;  %v6146_v35 = vld [vmem:[#allocation45_spill] sm:$0xff] }
 0xbc7   :  { %3578 = vst [vmem:[%s5944_s9 + $0x260] sm:$0xff] %v3229_v60  ;;  %3580 = vst [vmem:[%s5944_s9 + $0x270] sm:$0xff] %v3231_v42  ;;  %v3230_v1 = vadd.f32 %v3515_v8, %v3101_v13  ;;  %v3232_v5 = vadd.f32 %v3517_v2, %v3103_v59  ;;  %v2989_v34 = vadd.f32 %v2988_v31, %v6146_v35  ;;  %v3538_v19 = vld [vmem:[%s5943_s8 + $0x320] sm:$0xff]  ;;  %v3540_v51 = vld [vmem:[%s5943_s8 + $0x330] sm:$0xff] }
 0xbc8   :  { %v3062_v20 = vadd.f32 %v3061_v49, %v6147_v55  ;;  %v3108_v17 = vadd.f32 %v2987_v57, %v4758_v54  ;;  %v3110_v4 = vadd.f32 %v3060_v14, %v4761_v40  ;;  %v2990_v46 = vpop.f32.mrf.mxu1  ;;  %v3063_v53 = vpop.f32.mrf.mxu0  ;;  %v6154_v60 = vld [vmem:[#allocation53_spill] sm:$0xff]  ;;  %v6155_v13 = vld [vmem:[#allocation54_spill] sm:$0xff]  ;;  %v3539_v31 = vld [vmem:[%s5943_s8 + $0x328] sm:$0xff] }
 0xbc9   :  { %3579 = vst [vmem:[%s5944_s9 + $0x268] sm:$0xff] %v3230_v1  ;;  %3581 = vst [vmem:[%s5944_s9 + $0x278] sm:$0xff] %v3232_v5  ;;  %v3109_v37 = vadd.f32 %v2989_v34, %v4814_v25  ;;  %v2991_v61 = vadd.f32 %v2990_v46, %v6148_v7  ;;  %v3064_v11 = vadd.f32 %v3063_v53, %v6149_v48  ;;  %v3541_v49 = vld [vmem:[%s5943_s8 + $0x338] sm:$0xff]  ;;  %v6156_v55 = vld [vmem:[#allocation55_spill] sm:$0xff] }
 0xbca   :  { %v3111_v45 = vadd.f32 %v3062_v20, %v4817_v9  ;;  %v3237_v36 = vadd.f32 %v3522_v28, %v3108_v17  ;;  %v3239_v23 = vadd.f32 %v3524_v33, %v3110_v4  ;;  %v2992_v52 = vpop.f32.mrf.mxu1  ;;  %v3065_v44 = vpop.f32.mrf.mxu0  ;;  %v6157_v17 = vld [vmem:[#allocation56_spill] sm:$0xff]  ;;  %v6158_v7 = vld [vmem:[#allocation57_spill] sm:$0xff]  ;;  %v6159_v48 = vld [vmem:[#allocation58_spill] sm:$0xff] }
 0xbcb   :  { %v3238_v0 = vadd.f32 %v3523_v18, %v3109_v37  ;;  %v3116_v29 = vadd.f32 %v2991_v61, %v4758_v54  ;;  %v3118_v39 = vadd.f32 %v3064_v11, %v4761_v40  ;;  %v2993_v47 = vadd.f32 %v2992_v52, %v6150_v12  ;;  %v3546_v37 = vld [vmem:[%s5943_s8 + $0x360] sm:$0xff]  ;;  %v6161_v12 = vld [vmem:[#allocation60_spill] sm:$0xff] }
 0xbcc   :  { %v3240_v16 = vadd.f32 %v3525_v6, %v3111_v45  ;;  %3586 = vst [vmem:[%s5944_s9 + $0x2a0] sm:$0xff] %v3237_v36  ;;  %3588 = vst [vmem:[%s5944_s9 + $0x2b0] sm:$0xff] %v3239_v23  ;;  %v3066_v50 = vadd.f32 %v3065_v44, %v6151_v32  ;;  %v2996_v62 = vpop.f32.mrf.mxu1  ;;  %v3069_v38 = vpop.f32.mrf.mxu0  ;;  %v3548_v45 = vld [vmem:[%s5943_s8 + $0x370] sm:$0xff] }
 0xbcd   :  { %3587 = vst [vmem:[%s5944_s9 + $0x2a8] sm:$0xff] %v3238_v0  ;;  %v3245_v27 = vadd.f32 %v3530_v26, %v3116_v29  ;;  %v3247_v15 = vadd.f32 %v3532_v21, %v3118_v39  ;;  %v2997_v22 = vadd.f32 %v2996_v62, %v6152_v41  ;;  %v3070_v58 = vadd.f32 %v3069_v38, %v6153_v63  ;;  %v3547_v26 = vld [vmem:[%s5943_s8 + $0x368] sm:$0xff]  ;;  %v3549_v21 = vld [vmem:[%s5943_s8 + $0x378] sm:$0xff]  ;;  %v3554_v62 = vld [vmem:[%s5943_s8 + $0x3a0] sm:$0xff] }
 0xbce   :  { %3589 = vst [vmem:[%s5944_s9 + $0x2b8] sm:$0xff] %v3240_v16  ;;  %v3117_v3 = vadd.f32 %v2993_v47, %v4814_v25  ;;  %v3119_v30 = vadd.f32 %v3066_v50, %v4817_v9  ;;  %v2998_v8 = vpop.f32.mrf.mxu1  ;;  %v3071_v2 = vpop.f32.mrf.mxu0  ;;  %v6160_v29 = vld [vmem:[#allocation59_spill] sm:$0xff]  ;;  %v3556_v38 = vld [vmem:[%s5943_s8 + $0x3b0] sm:$0xff]  ;;  %v6162_v63 = vld [vmem:[#allocation61_spill] sm:$0xff] }
 0xbcf   :  { %3594 = vst [vmem:[%s5944_s9 + $0x2e0] sm:$0xff] %v3245_v27  ;;  %3596 = vst [vmem:[%s5944_s9 + $0x2f0] sm:$0xff] %v3247_v15  ;;  %v3124_v43 = vadd.f32 %v2997_v22, %v4758_v54  ;;  %v3126_v24 = vadd.f32 %v3070_v58, %v4761_v40  ;;  %v2999_v42 = vadd.f32 %v2998_v8, %v6154_v60  ;;  %v6164_v60 = vld [vmem:[#allocation63_spill] sm:$0xff] }
 0xbd0   :  { %v3072_v59 = vadd.f32 %v3071_v2, %v6155_v13  ;;  %v3246_v57 = vadd.f32 %v3531_v56, %v3117_v3  ;;  %v3248_v14 = vadd.f32 %v3533_v10, %v3119_v30  ;;  %v3000_v1 = vpop.f32.mrf.mxu1  ;;  %v3073_v5 = vpop.f32.mrf.mxu0  ;;  %v6163_v3 = vld [vmem:[#allocation62_spill] sm:$0xff]  ;;  %v6165_v13 = vld [vmem:[#allocation64_spill] sm:$0xff] }
 0xbd1   :  { %v3253_v28 = vadd.f32 %v3538_v19, %v3124_v43  ;;  %v3255_v33 = vadd.f32 %v3540_v51, %v3126_v24  ;;  %v3125_v35 = vadd.f32 %v2999_v42, %v4814_v25  ;;  %v3001_v20 = vadd.f32 %v3000_v1, %v6156_v55  ;;  %v3555_v43 = vld [vmem:[%s5943_s8 + $0x3a8] sm:$0xff]  ;;  %v3557_v24 = vld [vmem:[%s5943_s8 + $0x3b8] sm:$0xff]  ;;  %v6167_v55 = vld [vmem:[#allocation4_spill] sm:$0xff] }
 0xbd2   :  { %v3127_v34 = vadd.f32 %v3072_v59, %v4817_v9  ;;  %3595 = vst [vmem:[%s5944_s9 + $0x2e8] sm:$0xff] %v3246_v57  ;;  %3597 = vst [vmem:[%s5944_s9 + $0x2f8] sm:$0xff] %v3248_v14  ;;  %v3074_v4 = vadd.f32 %v3073_v5, %v6157_v17  ;;  %v3002_v18 = vpop.f32.mrf.mxu1  ;;  %v3075_v6 = vpop.f32.mrf.mxu0 }
 0xbd3   :  { %3602 = vst [vmem:[%s5944_s9 + $0x320] sm:$0xff] %v3253_v28  ;;  %3604 = vst [vmem:[%s5944_s9 + $0x330] sm:$0xff] %v3255_v33  ;;  %v3254_v46 = vadd.f32 %v3539_v31, %v3125_v35  ;;  %v3003_v61 = vadd.f32 %v3002_v18, %v6158_v7  ;;  %v3076_v11 = vadd.f32 %v3075_v6, %v6159_v48  ;;  %v3562_v31 = vld [vmem:[%s5943_s8 + $0x3e0] sm:$0xff]  ;;  %v3563_v18 = vld [vmem:[%s5943_s8 + $0x3e8] sm:$0xff] }
 0xbd4   :  { %v3256_v53 = vadd.f32 %v3541_v49, %v3127_v34  ;;  %v3132_v36 = vadd.f32 %v3001_v20, %v4758_v54  ;;  %v3134_v23 = vadd.f32 %v3074_v4, %v4761_v40  ;;  %v3006_v52 = vpop.f32.mrf.mxu1  ;;  %v3079_v44 = vpop.f32.mrf.mxu0  ;;  %v3564_v49 = vld [vmem:[%s5943_s8 + $0x3f0] sm:$0xff]  ;;  %v6166_v35 = vld [vmem:[#allocation2_spill] sm:$0xff]  ;;  %v3565_v6 = vld [vmem:[%s5943_s8 + $0x3f8] sm:$0xff] }
 0xbd5   :  { %3603 = vst [vmem:[%s5944_s9 + $0x328] sm:$0xff] %v3254_v46  ;;  %v3133_v0 = vadd.f32 %v3003_v61, %v4814_v25  ;;  %v3135_v16 = vadd.f32 %v3076_v11, %v4817_v9  ;;  %v3007_v39 = vadd.f32 %v3006_v52, %v6160_v29  ;;  %v3080_v47 = vadd.f32 %v3079_v44, %v6161_v12 }
 0xbd6   :  { %3605 = vst [vmem:[%s5944_s9 + $0x338] sm:$0xff] %v3256_v53  ;;  %v3261_v32 = vadd.f32 %v3546_v37, %v3132_v36  ;;  %v3263_v50 = vadd.f32 %v3548_v45, %v3134_v23  ;;  %v3008_v27 = vpop.f32.mrf.mxu1  ;;  %v3081_v15 = vpop.f32.mrf.mxu0 }
 0xbd7   :  { %v3262_v56 = vadd.f32 %v3547_v26, %v3133_v0  ;;  %v3264_v10 = vadd.f32 %v3549_v21, %v3135_v16  ;;  %v3140_v41 = vadd.f32 %v3007_v39, %v4758_v54  ;;  %v3142_v22 = vadd.f32 %v3080_v47, %v4761_v40 }
 0xbd8   :  { %3610 = vst [vmem:[%s5944_s9 + $0x360] sm:$0xff] %v3261_v32  ;;  %3612 = vst [vmem:[%s5944_s9 + $0x370] sm:$0xff] %v3263_v50  ;;  %v3009_v58 = vadd.f32 %v3008_v27, %v6162_v63  ;;  %v3082_v30 = vadd.f32 %v3081_v15, %v6163_v3  ;;  %v3010_v19 = vpop.f32.mrf.mxu1  ;;  %v3083_v51 = vpop.f32.mrf.mxu0 }
 0xbd9   :  { %3611 = vst [vmem:[%s5944_s9 + $0x368] sm:$0xff] %v3262_v56  ;;  %3613 = vst [vmem:[%s5944_s9 + $0x378] sm:$0xff] %v3264_v10  ;;  %v3269_v8 = vadd.f32 %v3554_v62, %v3140_v41  ;;  %v3271_v2 = vadd.f32 %v3556_v38, %v3142_v22  ;;  %v3011_v42 = vadd.f32 %v3010_v19, %v6164_v60 }
 0xbda   :  { %v3084_v59 = vadd.f32 %v3083_v51, %v6165_v13  ;;  %v3141_v57 = vadd.f32 %v3009_v58, %v4814_v25  ;;  %v3143_v14 = vadd.f32 %v3082_v30, %v4817_v9  ;;  %v3012_v1 = vpop.f32.mrf.mxu1  ;;  %v3085_v5 = vpop.f32.mrf.mxu0 }
 0xbdb   :  { %3618 = vst [vmem:[%s5944_s9 + $0x3a0] sm:$0xff] %v3269_v8  ;;  %3620 = vst [vmem:[%s5944_s9 + $0x3b0] sm:$0xff] %v3271_v2  ;;  %v3148_v28 = vadd.f32 %v3011_v42, %v4758_v54  ;;  %v3013_v34 = vadd.f32 %v3012_v1, %v6166_v35  ;;  %v3086_v20 = vadd.f32 %v3085_v5, %v6167_v55 }
 0xbdc   :  { %v3150_v33 = vadd.f32 %v3084_v59, %v4761_v40  ;;  %v3270_v17 = vadd.f32 %v3555_v43, %v3141_v57  ;;  %v3272_v4 = vadd.f32 %v3557_v24, %v3143_v14 }
 0xbdd   :  { %v3277_v46 = vadd.f32 %v3562_v31, %v3148_v28  ;;  %v3149_v54 = vadd.f32 %v3013_v34, %v4814_v25  ;;  %v3151_v40 = vadd.f32 %v3086_v20, %v4817_v9 }
 0xbde   :  { %v3279_v53 = vadd.f32 %v3564_v49, %v3150_v33  ;;  %3619 = vst [vmem:[%s5944_s9 + $0x3a8] sm:$0xff] %v3270_v17  ;;  %3621 = vst [vmem:[%s5944_s9 + $0x3b8] sm:$0xff] %v3272_v4 }
 0xbdf   :  { %3626 = vst [vmem:[%s5944_s9 + $0x3e0] sm:$0xff] %v3277_v46  ;;  %v3278_v37 = vadd.f32 %v3563_v18, %v3149_v54  ;;  %v3280_v25 = vadd.f32 %v3565_v6, %v3151_v40 }
 0xbe0   :  { %3628 = vst [vmem:[%s5944_s9 + $0x3f0] sm:$0xff] %v3279_v53 }
 0xbe1   :  { %3627 = vst [vmem:[%s5944_s9 + $0x3e8] sm:$0xff] %v3278_v37  ;;  %3629 = vst [vmem:[%s5944_s9 + $0x3f8] sm:$0xff] %v3280_v25 }

</bundles_post_ra>
